<compile_context>
chip_gen: v7x
topology: tpu7x:2x2x1
jax: 0.10.0
libtpu: 0.0.40
codegen_flags: <defaults>
</compile_context>

<pallas_src>
import functools

import jax
import jax.numpy as jnp
from jax import lax
from jax.experimental import pallas as pl
from jax.experimental.pallas import tpu as pltpu


def _round_up(x, m):
    return (x + m - 1) // m * m


# ---------------------------------------------------------------------------
# Fused kernel: one (batch, row-tile) grid step
# ---------------------------------------------------------------------------
def _double_conv_kernel(x_ref, w1_ref, t1_ref, w2_ref, tf_ref, wi_ref,
                        o_ref, h1s_ref, h1c_ref, *, th, wp8, W, H, n_taps1):
    """
    x_ref  : ((th+1+n_taps1)*wp8, K1) bf16  tap-concatenated input slab
    w1_ref : (n_taps1, K1, Cp)        bf16  conv1 taps (BN1 scale folded)
    t1_ref : (1, Cp)                  f32   BN1 shift (conv1 bias folded)
    w2_ref : (3, 3*Cp, Cp)            bf16  conv2 per-ky kx-stacked taps (BN2 scale folded)
    tf_ref : (1, Cp)                  f32   BN2 shift + BNi shift (biases folded)
    wi_ref : (K1, Cp)                 bf16  1x1 identity conv embedded at its tap rows
    o_ref  : (th*wp8, Cp)             bf16  flattened output rows
    h1s_ref: ((th+2)*wp8 + 8, Cp)     bf16  scratch: intermediate (+8 zero rows)
    h1c_ref: ((th+2)*wp8, 3*Cp)       bf16  scratch: kx lane-concat of intermediate
    """
    r = pl.program_id(1)
    cp = w2_ref.shape[-1]
    m1 = (th + 2) * wp8            # intermediate rows (1-row halo each side)
    m2 = th * wp8                  # output rows of this tile

    # ---- conv1 (+BN1 scale pre-folded): n_taps1 aligned MXU matmuls ---------
    acc1 = jnp.zeros((m1, cp), jnp.float32)
    for t in range(n_taps1):
        acc1 = acc1 + jnp.dot(x_ref[pl.ds(t * wp8, m1), :], w1_ref[t],
                              preferred_element_type=jnp.float32)

    # ---- BN1 shift -> ReLU -> zero every non-image intermediate pixel -------
    # Mask built in-kernel (no operand / DMA).  Flat index p = i1*wp8 + c with
    # image row g = r*th - 1 + i1 and image col j = c - 1.  The row/col split
    # uses a float reciprocal (exact here) so it lowers on every VPU.
    p = lax.broadcasted_iota(jnp.int32, (m1, 1), 0)
    qf = (p.astype(jnp.float32) + 0.5) * jnp.float32(1.0 / wp8)
    i1 = qf.astype(jnp.int32)                      # trunc == floor (p >= 0)
    c = p - i1 * wp8
    g = r * th - 1 + i1
    valid = (g >= 0) & (g < H) & (c >= 1) & (c <= W)
    h1 = jnp.where(valid, jnp.maximum(acc1 + t1_ref[...], 0.0), 0.0)
    h1 = h1.astype(jnp.bfloat16)

    # ---- lane-concat the three kx shifts of the intermediate ----------------
    # h1c[p, kx*Cp:(kx+1)*Cp] = h1[p + kx]  -> conv2 becomes 3 aligned matmuls
    # with K = 3*Cp (vs 9 matmuls with unaligned sublane starts).
    h1s_ref[pl.ds(0, m1), :] = h1
    h1s_ref[pl.ds(m1, 8), :] = jnp.zeros((8, cp), jnp.bfloat16)
    h1c_ref[:, 0:cp] = h1
    h1c_ref[:, cp:2 * cp] = h1s_ref[pl.ds(1, m1), :]
    h1c_ref[:, 2 * cp:3 * cp] = h1s_ref[pl.ds(2, m1), :]

    # ---- identity 1x1 conv (+BNi scale folded) ------------------------------
    id_off = (1 if n_taps1 == 1 else 2) * wp8      # centre-tap row of the slab
    acc2 = jnp.dot(x_ref[pl.ds(id_off, m2), :], wi_ref[...],
                   preferred_element_type=jnp.float32)

    # ---- conv2 (+BN2 scale folded): 3 aligned matmuls over the concat -------
    for ky in range(3):
        acc2 = acc2 + jnp.dot(h1c_ref[pl.ds(ky * wp8, m2), :], w2_ref[ky],
                              preferred_element_type=jnp.float32)

    # BN2+BNi shifts folded into one vector; final ReLU; bf16 writeback.
    o_ref[...] = jnp.maximum(acc2 + tf_ref[...], 0.0).astype(o_ref.dtype)


# ---------------------------------------------------------------------------
# Parameter folding / packing (wrapper-side, one-time)
# ---------------------------------------------------------------------------
def _fold_bn(bn_stats, conv_bias, eps=1e-5):
    gamma, beta, mean, var = bn_stats
    scale = gamma / jnp.sqrt(var + eps)
    shift = beta + (conv_bias - mean) * scale
    return scale, shift


def _prepare_params(p, cin, cout, k1, cp, n_taps1, eps=1e-5):
    bf16, f32 = jnp.bfloat16, jnp.float32
    s1, t1 = _fold_bn(p["bn1"], p["conv1_b"], eps)
    s2, t2 = _fold_bn(p["bn2"], p["conv2_b"], eps)
    si, ti = _fold_bn(p["bni"], p["id_b"], eps)

    w1f = p["conv1_w"] * s1            # (3,3,cin,cout): BN1 scale folded
    w2f = p["conv2_w"] * s2
    wif = p["id_w"] * si               # (cin, cout)

    # conv1 weights: tap groups must match the slab channel-concat order
    if n_taps1 == 1:
        groups = [[(ky, kx) for ky in range(3) for kx in range(3)]]
    else:
        groups = [[(ky, kx) for kx in range(3)] for ky in range(3)]
    w1cat = []
    for grp in groups:
        blk = jnp.concatenate([w1f[ky, kx] for ky, kx in grp], axis=0)
        blk = jnp.pad(blk, ((0, k1 - blk.shape[0]), (0, cp - cout)))
        w1cat.append(blk)
    w1cat = jnp.stack(w1cat).astype(bf16)            # (n_taps1, K1, Cp)

    # conv2 weights: per-ky stack of the 3 kx taps, each padded to Cp rows so
    # the row blocks line up with the lane-concat of the intermediate.
    w2cat = jnp.stack([
        jnp.concatenate([jnp.pad(w2f[ky, kx], ((0, cp - cout), (0, cp - cout)))
                         for kx in range(3)], axis=0)
        for ky in range(3)]).astype(bf16)            # (3, 3*Cp, Cp)

    # identity 1x1 conv embedded at its tap's channel block of the input slab
    id_block = 5 if n_taps1 == 1 else 2              # (ky=1,kx=2) / (kx=2)
    wi_emb = jnp.zeros((k1, cp), f32)
    wi_emb = wi_emb.at[id_block * cin:(id_block + 1) * cin, :cout].set(wif)
    wi_emb = wi_emb.astype(bf16)

    def pad_vec(v):
        return jnp.pad(v, (0, cp - cout)).reshape(1, cp).astype(f32)

    return dict(w1=w1cat, t1=pad_vec(t1), w2=w2cat, tf=pad_vec(t2 + ti),
                wi=wi_emb)


# ---------------------------------------------------------------------------
# Input slab: tap-concatenated channels, 8-aligned padded width, row-tile
# windows with halo.
# ---------------------------------------------------------------------------
def _build_input_slab(x_nhwc, th, n_tiles, wp8, n_taps1, k1):
    N, H, W, _ = x_nhwc.shape
    Hp = n_tiles * th + 4
    x_zp = jnp.pad(x_nhwc, ((0, 0), (2, Hp - 2 - H), (2, wp8 - W), (0, 0)))
    if n_taps1 == 3:
        rows_tile = th + 4
        slab = jnp.concatenate([x_zp[:, :, kx:kx + wp8, :] for kx in range(3)],
                               axis=-1)              # (N, Hp, wp8, 3*Cin)
    else:
        rows_tile = th + 2
        rtot = n_tiles * th + 2
        slab = jnp.concatenate(
            [x_zp[:, ky:ky + rtot, kx:kx + wp8, :]
             for ky in range(3) for kx in range(3)], axis=-1)  # (N, R, wp8, 9*Cin)
    slab = jnp.pad(slab, ((0, 0), (0, 0), (0, 0), (0, k1 - slab.shape[-1])))
    slab = slab.astype(jnp.bfloat16)
    # overlapping row-tile windows (2 / 4 halo rows between neighbours)
    tiles = jnp.stack([slab[:, r * th:r * th + rows_tile] for r in range(n_tiles)],
                      axis=1)
    return tiles.reshape(N, n_tiles, rows_tile * wp8, k1), rows_tile


# ---------------------------------------------------------------------------
# Wrapper
# ---------------------------------------------------------------------------
def double_conv_forward(x_nchw, params, *, row_tile=32, force_row_taps=None):
    N, Cin, H, W = x_nchw.shape
    Cout = params["conv1_w"].shape[-1]

    th = max(1, min(row_tile, H))
    n_tiles = -(-H // th)                       # ceil-div: partial last tile OK
    wp8 = _round_up(W + 2, 8)                   # 8-aligned padded width
    m1 = (th + 2) * wp8
    m2 = th * wp8

    # Fold all 9 taps into one MXU contraction when they fit in 128 lanes,
    # otherwise fold the 3 kx taps per ky (3 matmuls, still sublane-aligned).
    n_taps1 = (1 if 9 * Cin <= 128 else 3) if force_row_taps is None else force_row_taps
    group = 9 if n_taps1 == 1 else 3
    k1 = _round_up(group * Cin, 128)
    cp = _round_up(Cout, 128)

    kp = _prepare_params(params, Cin, Cout, k1, cp, n_taps1)
    x_nhwc = jnp.transpose(x_nchw, (0, 2, 3, 1))
    x_tiles, rows_tile = _build_input_slab(x_nhwc, th, n_tiles, wp8, n_taps1, k1)

    kernel = functools.partial(_double_conv_kernel, th=th, wp8=wp8, W=W, H=H,
                               n_taps1=n_taps1)

    out = pl.pallas_call(
        kernel,
        grid=(N, n_tiles),
        in_specs=[
            pl.BlockSpec((None, None, rows_tile * wp8, k1),
                         lambda n, r: (n, r, 0, 0)),           # input slab
            pl.BlockSpec((n_taps1, k1, cp), lambda n, r: (0, 0, 0)),   # w1
            pl.BlockSpec((1, cp), lambda n, r: (0, 0)),                # t1
            pl.BlockSpec((3, 3 * cp, cp), lambda n, r: (0, 0, 0)),     # w2
            pl.BlockSpec((1, cp), lambda n, r: (0, 0)),                # t2+ti
            pl.BlockSpec((k1, cp), lambda n, r: (0, 0)),               # wi
        ],
        out_specs=pl.BlockSpec((None, None, m2, cp), lambda n, r: (n, r, 0, 0)),
        out_shape=jax.ShapeDtypeStruct((N, n_tiles, m2, cp), jnp.bfloat16),
        scratch_shapes=[pltpu.VMEM((m1 + 8, cp), jnp.bfloat16),
                        pltpu.VMEM((m1, 3 * cp), jnp.bfloat16)],
        compiler_params=pltpu.CompilerParams(
            dimension_semantics=("parallel", "parallel"),
            vmem_limit_bytes=48 * 1024 * 1024),
    )(x_tiles, kp["w1"], kp["t1"], kp["w2"], kp["tf"], kp["wi"])

    # (N, n_tiles, th*wp8, Cp) -> NCHW, dropping row/width/channel padding.
    out = out.reshape(N, n_tiles * th, wp8, cp)[:, :H, :W, :Cout]
    return jnp.transpose(out, (0, 3, 1, 2)).astype(jnp.float32)


# ---------------------------------------------------------------------------
# Deterministic synthetic parameters (shapes from DoubleConv.__init__)
# ---------------------------------------------------------------------------
def init_params(key, in_ch, out_ch):
    ks = jax.random.split(key, 9)
    f32 = jnp.float32

    def bn_params(k, c):
        kg, kb, km, kv = jax.random.split(k, 4)
        gamma = jax.random.uniform(kg, (c,), minval=0.8, maxval=1.2)
        beta = jax.random.normal(kb, (c,)) * 0.1
        mean = jax.random.normal(km, (c,)) * 0.1
        var = jax.random.uniform(kv, (c,), minval=0.8, maxval=1.2)
        return (gamma.astype(f32), beta.astype(f32),
                mean.astype(f32), var.astype(f32))

    conv1_w = (jax.random.normal(ks[0], (3, 3, in_ch, out_ch)) * 0.1).astype(f32)
    conv1_b = (jax.random.normal(ks[1], (out_ch,)) * 0.05).astype(f32)
    conv2_w = (jax.random.normal(ks[2], (3, 3, out_ch, out_ch)) * 0.1).astype(f32)
    conv2_b = (jax.random.normal(ks[3], (out_ch,)) * 0.05).astype(f32)
    id_w = (jax.random.normal(ks[4], (in_ch, out_ch)) * 0.1).astype(f32)
    id_b = (jax.random.normal(ks[5], (out_ch,)) * 0.05).astype(f32)

    return dict(conv1_w=conv1_w, conv1_b=conv1_b, bn1=bn_params(ks[6], out_ch),
                conv2_w=conv2_w, conv2_b=conv2_b, bn2=bn_params(ks[7], out_ch),
                id_w=id_w, id_b=id_b, bni=bn_params(ks[8], out_ch))


# ---------------------------------------------------------------------------
# Pure-JAX reference (f32) for the correctness check
# ---------------------------------------------------------------------------
def ref_forward(x_nchw, p, eps=1e-5):
    x = jnp.transpose(x_nchw, (0, 2, 3, 1))

    def bn(h, stats):
        gamma, beta, mean, var = stats
        return (h - mean) * (gamma / jnp.sqrt(var + eps)) + beta

    dn = ("NHWC", "HWIO", "NHWC")
    h = lax.conv_general_dilated(x, p["conv1_w"], (1, 1), "SAME",
                                 dimension_numbers=dn) + p["conv1_b"]
    h = jax.nn.relu(bn(h, p["bn1"]))
    h = lax.conv_general_dilated(h, p["conv2_w"], (1, 1), "SAME",
                                 dimension_numbers=dn) + p["conv2_b"]
    h = bn(h, p["bn2"])
    ident = jnp.einsum("nhwc,cd->nhwd", x, p["id_w"]) + p["id_b"]
    ident = bn(ident, p["bni"])
    return jnp.transpose(jax.nn.relu(h + ident), (0, 3, 1, 2))


# ---------------------------------------------------------------------------
if __name__ == "__main__":
    key = jax.random.PRNGKey(0)
    kx_, kparam = jax.random.split(key)

    N, Cin, Cout, H, W = 2, 4, 8, 16, 16
    x = jax.random.normal(kx_, (N, Cin, H, W), dtype=jnp.float32)
    params = init_params(kparam, Cin, Cout)
    ref = ref_forward(x, params)

    # bf16 MXU inputs/weights (f32 accumulation) + bf16 writeback -> loose tol.
    configs = (dict(row_tile=32),                    # single tile, 1-matmul conv1 (im2col)
               dict(row_tile=6),                     # multi-tile with partial last tile
               dict(row_tile=8, force_row_taps=3))   # kx-concat (large-channel) path
    for cfg in configs:
        out = jax.block_until_ready(double_conv_forward(x, params, **cfg))
        assert out.shape == ref.shape, (out.shape, ref.shape)
        err = float(jnp.max(jnp.abs(out - ref)))
        assert jnp.allclose(out, ref, atol=8e-2, rtol=8e-2), \
            f"max abs err={err} for {cfg}"
    print("KERNEL_OK")
</pallas_src>

<mosaic_0001>
module attributes {stable_mosaic.version = 11 : i64} {
  func.func @_double_conv_kernel(%arg0: i32, %arg1: i32, %arg2: memref<1x1x432x128xbf16, #tpu.memory_space<vmem>>, %arg3: memref<1x128x128xbf16, #tpu.memory_space<vmem>>, %arg4: memref<1x128xf32, #tpu.memory_space<vmem>>, %arg5: memref<3x384x128xbf16, #tpu.memory_space<vmem>>, %arg6: memref<1x128xf32, #tpu.memory_space<vmem>>, %arg7: memref<128x128xbf16, #tpu.memory_space<vmem>>, %arg8: memref<1x1x384x128xbf16, #tpu.memory_space<vmem>>, %arg9: memref<440x128xbf16, #tpu.memory_space<vmem>>, %arg10: memref<432x384xbf16, #tpu.memory_space<vmem>>) attributes {dimension_semantics = [#tpu.dimension_semantics<parallel>, #tpu.dimension_semantics<parallel>], iteration_bounds = array<i64: 2, 1>, scalar_prefetch = 0 : i64, scratch_operands = 2 : i64, tpu.core_type = #tpu.core_type<tc>, window_params = [{transform_indices = @transform_0, window_bounds = array<i64: 1, 1, 432, 128>}, {pipeline_mode = #tpu.pipeline_mode<synchronous>, transform_indices = @transform_1, window_bounds = array<i64: 1, 128, 128>}, {pipeline_mode = #tpu.pipeline_mode<synchronous>, transform_indices = @transform_2, window_bounds = array<i64: 1, 128>}, {pipeline_mode = #tpu.pipeline_mode<synchronous>, transform_indices = @transform_3, window_bounds = array<i64: 3, 384, 128>}, {pipeline_mode = #tpu.pipeline_mode<synchronous>, transform_indices = @transform_4, window_bounds = array<i64: 1, 128>}, {pipeline_mode = #tpu.pipeline_mode<synchronous>, transform_indices = @transform_5, window_bounds = array<i64: 128, 128>}, {transform_indices = @transform_6, window_bounds = array<i64: 1, 1, 384, 128>}]} {
    %cst = arith.constant 0.000000e+00 : f32
    %0 = vector.broadcast %cst : f32 to vector<432x128xf32>
    %c0 = arith.constant 0 : index
    %c0_0 = arith.constant 0 : index
    %c0_1 = arith.constant 0 : index
    %c0_2 = arith.constant 0 : index
    %1 = vector.load %arg2[%c0, %c0_0, %c0_1, %c0_2] : memref<1x1x432x128xbf16, #tpu.memory_space<vmem>>, vector<1x1x432x128xbf16>
    %2 = vector.shape_cast %1 : vector<1x1x432x128xbf16> to vector<432x128xbf16>
    %c0_3 = arith.constant 0 : index
    %c0_4 = arith.constant 0 : index
    %c0_5 = arith.constant 0 : index
    %3 = vector.load %arg3[%c0_3, %c0_4, %c0_5] : memref<1x128x128xbf16, #tpu.memory_space<vmem>>, vector<1x128x128xbf16>
    %4 = vector.shape_cast %3 : vector<1x128x128xbf16> to vector<128x128xbf16>
    %cst_6 = arith.constant dense<0.000000e+00> : vector<432x128xf32>
    %5 = tpu.matmul %2, %4, %cst_6 {dimension_numbers = #tpu.dot_dimension_numbers<[1], [0], [0], [1], [0, 0, 1, 1], [], []>} : vector<432x128xbf16>, vector<128x128xbf16>, vector<432x128xf32> -> vector<432x128xf32>
    %6 = arith.addf %0, %5 : vector<432x128xf32>
    %7 = tpu.iota {dimensions = array<i32: 0>} : vector<432x1xi32>
    %8 = arith.sitofp %7 : vector<432x1xi32> to vector<432x1xf32>
    %cst_7 = arith.constant 5.000000e-01 : f32
    %9 = vector.broadcast %cst_7 : f32 to vector<432x1xf32>
    %10 = arith.addf %8, %9 : vector<432x1xf32>
    %cst_8 = arith.constant 0.0416666679 : f32
    %11 = vector.broadcast %cst_8 : f32 to vector<432x1xf32>
    %12 = arith.mulf %10, %11 : vector<432x1xf32>
    %13 = arith.fptosi %12 : vector<432x1xf32> to vector<432x1xi32>
    %c24_i32 = arith.constant 24 : i32
    %14 = vector.broadcast %c24_i32 : i32 to vector<432x1xi32>
    %15 = arith.muli %13, %14 : vector<432x1xi32>
    %16 = arith.subi %7, %15 : vector<432x1xi32>
    %c16_i32 = arith.constant 16 : i32
    %17 = arith.muli %arg1, %c16_i32 : i32
    %c1_i32 = arith.constant 1 : i32
    %18 = arith.subi %17, %c1_i32 : i32
    %19 = vector.broadcast %18 : i32 to vector<432x1xi32>
    %20 = arith.addi %19, %13 : vector<432x1xi32>
    %c0_i32 = arith.constant 0 : i32
    %21 = vector.broadcast %c0_i32 : i32 to vector<432x1xi32>
    %22 = arith.cmpi sge, %20, %21 : vector<432x1xi32>
    %c16_i32_9 = arith.constant 16 : i32
    %23 = vector.broadcast %c16_i32_9 : i32 to vector<432x1xi32>
    %24 = arith.cmpi slt, %20, %23 : vector<432x1xi32>
    %25 = arith.andi %22, %24 : vector<432x1xi1>
    %c1_i32_10 = arith.constant 1 : i32
    %26 = vector.broadcast %c1_i32_10 : i32 to vector<432x1xi32>
    %27 = arith.cmpi sge, %16, %26 : vector<432x1xi32>
    %28 = arith.andi %25, %27 : vector<432x1xi1>
    %c16_i32_11 = arith.constant 16 : i32
    %29 = vector.broadcast %c16_i32_11 : i32 to vector<432x1xi32>
    %30 = arith.cmpi sle, %16, %29 : vector<432x1xi32>
    %31 = arith.andi %28, %30 : vector<432x1xi1>
    %c0_12 = arith.constant 0 : index
    %c0_13 = arith.constant 0 : index
    %32 = vector.load %arg4[%c0_12, %c0_13] : memref<1x128xf32, #tpu.memory_space<vmem>>, vector<1x128xf32>
    %33 = vector.broadcast %32 : vector<1x128xf32> to vector<432x128xf32>
    %34 = arith.addf %6, %33 : vector<432x128xf32>
    %cst_14 = arith.constant 0.000000e+00 : f32
    %35 = vector.broadcast %cst_14 : f32 to vector<432x128xf32>
    %36 = arith.maximumf %34, %35 : vector<432x128xf32>
    %cst_15 = arith.constant 0.000000e+00 : f32
    %37 = vector.shape_cast %31 : vector<432x1xi1> to vector<432x1xi1>
    %38 = vector.broadcast %37 : vector<432x1xi1> to vector<432x128xi1>
    %39 = vector.broadcast %cst_15 : f32 to vector<432x128xf32>
    %40 = arith.select %38, %36, %39 : vector<432x128xi1>, vector<432x128xf32>
    %41 = arith.truncf %40 : vector<432x128xf32> to vector<432x128xbf16>
    %c0_16 = arith.constant 0 : index
    %c0_17 = arith.constant 0 : index
    %42 = vector.load %arg9[%c0_16, %c0_17] : memref<440x128xbf16, #tpu.memory_space<vmem>>, vector<432x128xbf16>
    tpu.vector_store %arg9[%c0_16, %c0_17], %41 {strides = array<i32>} : memref<440x128xbf16, #tpu.memory_space<vmem>>, vector<432x128xbf16>,
    %cst_18 = arith.constant 0.000000e+00 : bf16
    %43 = vector.broadcast %cst_18 : bf16 to vector<8x128xbf16>
    %c432 = arith.constant 432 : index
    %c0_19 = arith.constant 0 : index
    %44 = vector.load %arg9[%c432, %c0_19] : memref<440x128xbf16, #tpu.memory_space<vmem>>, vector<8x128xbf16>
    tpu.vector_store %arg9[%c432, %c0_19], %43 {strides = array<i32>} : memref<440x128xbf16, #tpu.memory_space<vmem>>, vector<8x128xbf16>,
    %c0_20 = arith.constant 0 : index
    %c0_21 = arith.constant 0 : index
    %45 = vector.load %arg10[%c0_20, %c0_21] : memref<432x384xbf16, #tpu.memory_space<vmem>>, vector<432x128xbf16>
    tpu.vector_store %arg10[%c0_20, %c0_21], %41 {strides = array<i32>} : memref<432x384xbf16, #tpu.memory_space<vmem>>, vector<432x128xbf16>,
    %c1 = arith.constant 1 : index
    %c0_22 = arith.constant 0 : index
    %46 = vector.load %arg9[%c1, %c0_22] : memref<440x128xbf16, #tpu.memory_space<vmem>>, vector<432x128xbf16>
    %c0_23 = arith.constant 0 : index
    %c128 = arith.constant 128 : index
    %47 = vector.load %arg10[%c0_23, %c128] : memref<432x384xbf16, #tpu.memory_space<vmem>>, vector<432x128xbf16>
    tpu.vector_store %arg10[%c0_23, %c128], %46 {strides = array<i32>} : memref<432x384xbf16, #tpu.memory_space<vmem>>, vector<432x128xbf16>,
    %c2 = arith.constant 2 : index
    %c0_24 = arith.constant 0 : index
    %48 = vector.load %arg9[%c2, %c0_24] : memref<440x128xbf16, #tpu.memory_space<vmem>>, vector<432x128xbf16>
    %c0_25 = arith.constant 0 : index
    %c256 = arith.constant 256 : index
    %49 = vector.load %arg10[%c0_25, %c256] : memref<432x384xbf16, #tpu.memory_space<vmem>>, vector<432x128xbf16>
    tpu.vector_store %arg10[%c0_25, %c256], %48 {strides = array<i32>} : memref<432x384xbf16, #tpu.memory_space<vmem>>, vector<432x128xbf16>,
    %c0_26 = arith.constant 0 : index
    %c0_27 = arith.constant 0 : index
    %c24 = arith.constant 24 : index
    %c0_28 = arith.constant 0 : index
    %50 = vector.load %arg2[%c0_26, %c0_27, %c24, %c0_28] : memref<1x1x432x128xbf16, #tpu.memory_space<vmem>>, vector<1x1x384x128xbf16>
    %51 = vector.shape_cast %50 : vector<1x1x384x128xbf16> to vector<384x128xbf16>
    %c0_29 = arith.constant 0 : index
    %c0_30 = arith.constant 0 : index
    %52 = vector.load %arg7[%c0_29, %c0_30] : memref<128x128xbf16, #tpu.memory_space<vmem>>, vector<128x128xbf16>
    %cst_31 = arith.constant dense<0.000000e+00> : vector<384x128xf32>
    %53 = tpu.matmul %51, %52, %cst_31 {dimension_numbers = #tpu.dot_dimension_numbers<[1], [0], [0], [1], [0, 0, 1, 1], [], []>} : vector<384x128xbf16>, vector<128x128xbf16>, vector<384x128xf32> -> vector<384x128xf32>
    %c0_32 = arith.constant 0 : index
    %c0_33 = arith.constant 0 : index
    %54 = vector.load %arg10[%c0_32, %c0_33] : memref<432x384xbf16, #tpu.memory_space<vmem>>, vector<384x384xbf16>
    %c0_34 = arith.constant 0 : index
    %c0_35 = arith.constant 0 : index
    %c0_36 = arith.constant 0 : index
    %55 = vector.load %arg5[%c0_34, %c0_35, %c0_36] : memref<3x384x128xbf16, #tpu.memory_space<vmem>>, vector<1x384x128xbf16>
    %56 = vector.shape_cast %55 : vector<1x384x128xbf16> to vector<384x128xbf16>
    %cst_37 = arith.constant dense<0.000000e+00> : vector<384x128xf32>
    %57 = tpu.matmul %54, %56, %cst_37 {dimension_numbers = #tpu.dot_dimension_numbers<[1], [0], [0], [1], [0, 0, 1, 1], [], []>} : vector<384x384xbf16>, vector<384x128xbf16>, vector<384x128xf32> -> vector<384x128xf32>
    %58 = arith.addf %53, %57 : vector<384x128xf32>
    %c24_38 = arith.constant 24 : index
    %c0_39 = arith.constant 0 : index
    %59 = vector.load %arg10[%c24_38, %c0_39] : memref<432x384xbf16, #tpu.memory_space<vmem>>, vector<384x384xbf16>
    %c1_40 = arith.constant 1 : index
    %c0_41 = arith.constant 0 : index
    %c0_42 = arith.constant 0 : index
    %60 = vector.load %arg5[%c1_40, %c0_41, %c0_42] : memref<3x384x128xbf16, #tpu.memory_space<vmem>>, vector<1x384x128xbf16>
    %61 = vector.shape_cast %60 : vector<1x384x128xbf16> to vector<384x128xbf16>
    %cst_43 = arith.constant dense<0.000000e+00> : vector<384x128xf32>
    %62 = tpu.matmul %59, %61, %cst_43 {dimension_numbers = #tpu.dot_dimension_numbers<[1], [0], [0], [1], [0, 0, 1, 1], [], []>} : vector<384x384xbf16>, vector<384x128xbf16>, vector<384x128xf32> -> vector<384x128xf32>
    %63 = arith.addf %58, %62 : vector<384x128xf32>
    %c48 = arith.constant 48 : index
    %c0_44 = arith.constant 0 : index
    %64 = vector.load %arg10[%c48, %c0_44] : memref<432x384xbf16, #tpu.memory_space<vmem>>, vector<384x384xbf16>
    %c2_45 = arith.constant 2 : index
    %c0_46 = arith.constant 0 : index
    %c0_47 = arith.constant 0 : index
    %65 = vector.load %arg5[%c2_45, %c0_46, %c0_47] : memref<3x384x128xbf16, #tpu.memory_space<vmem>>, vector<1x384x128xbf16>
    %66 = vector.shape_cast %65 : vector<1x384x128xbf16> to vector<384x128xbf16>
    %cst_48 = arith.constant dense<0.000000e+00> : vector<384x128xf32>
    %67 = tpu.matmul %64, %66, %cst_48 {dimension_numbers = #tpu.dot_dimension_numbers<[1], [0], [0], [1], [0, 0, 1, 1], [], []>} : vector<384x384xbf16>, vector<384x128xbf16>, vector<384x128xf32> -> vector<384x128xf32>
    %68 = arith.addf %63, %67 : vector<384x128xf32>
    %c0_49 = arith.constant 0 : index
    %c0_50 = arith.constant 0 : index
    %69 = vector.load %arg6[%c0_49, %c0_50] : memref<1x128xf32, #tpu.memory_space<vmem>>, vector<1x128xf32>
    %70 = vector.broadcast %69 : vector<1x128xf32> to vector<384x128xf32>
    %71 = arith.addf %68, %70 : vector<384x128xf32>
    %cst_51 = arith.constant 0.000000e+00 : f32
    %72 = vector.broadcast %cst_51 : f32 to vector<384x128xf32>
    %73 = arith.maximumf %71, %72 : vector<384x128xf32>
    %74 = arith.truncf %73 : vector<384x128xf32> to vector<384x128xbf16>
    %c0_52 = arith.constant 0 : index
    %c0_53 = arith.constant 0 : index
    %c0_54 = arith.constant 0 : index
    %c0_55 = arith.constant 0 : index
    %75 = vector.load %arg8[%c0_52, %c0_53, %c0_54, %c0_55] : memref<1x1x384x128xbf16, #tpu.memory_space<vmem>>, vector<1x1x384x128xbf16>
    %76 = vector.shape_cast %75 : vector<1x1x384x128xbf16> to vector<384x128xbf16>
    %77 = vector.shape_cast %74 : vector<384x128xbf16> to vector<1x1x384x128xbf16>
    tpu.vector_store %arg8[%c0_52, %c0_53, %c0_54, %c0_55], %77 {strides = array<i32>} : memref<1x1x384x128xbf16, #tpu.memory_space<vmem>>, vector<1x1x384x128xbf16>,
    return
  }
  func.func @transform_0(%arg0: i32, %arg1: i32) -> (i32, i32, i32, i32) {
    %c0_i32 = arith.constant 0 : i32
    %c0_i32_0 = arith.constant 0 : i32
    %c0_i32_1 = arith.constant 0 : i32
    return %arg0, %arg1, %c0_i32, %c0_i32_0 : i32, i32, i32, i32
  }
  func.func @transform_1(%arg0: i32, %arg1: i32) -> (i32, i32, i32) {
    %c0_i32 = arith.constant 0 : i32
    %c0_i32_0 = arith.constant 0 : i32
    %c0_i32_1 = arith.constant 0 : i32
    %c0_i32_2 = arith.constant 0 : i32
    return %c0_i32, %c0_i32_0, %c0_i32_1 : i32, i32, i32
  }
  func.func @transform_2(%arg0: i32, %arg1: i32) -> (i32, i32) {
    %c0_i32 = arith.constant 0 : i32
    %c0_i32_0 = arith.constant 0 : i32
    %c0_i32_1 = arith.constant 0 : i32
    return %c0_i32, %c0_i32_0 : i32, i32
  }
  func.func @transform_3(%arg0: i32, %arg1: i32) -> (i32, i32, i32) {
    %c0_i32 = arith.constant 0 : i32
    %c0_i32_0 = arith.constant 0 : i32
    %c0_i32_1 = arith.constant 0 : i32
    %c0_i32_2 = arith.constant 0 : i32
    return %c0_i32, %c0_i32_0, %c0_i32_1 : i32, i32, i32
  }
  func.func @transform_4(%arg0: i32, %arg1: i32) -> (i32, i32) {
    %c0_i32 = arith.constant 0 : i32
    %c0_i32_0 = arith.constant 0 : i32
    %c0_i32_1 = arith.constant 0 : i32
    return %c0_i32, %c0_i32_0 : i32, i32
  }
  func.func @transform_5(%arg0: i32, %arg1: i32) -> (i32, i32) {
    %c0_i32 = arith.constant 0 : i32
    %c0_i32_0 = arith.constant 0 : i32
    %c0_i32_1 = arith.constant 0 : i32
    return %c0_i32, %c0_i32_0 : i32, i32
  }
  func.func @transform_6(%arg0: i32, %arg1: i32) -> (i32, i32, i32, i32) {
    %c0_i32 = arith.constant 0 : i32
    %c0_i32_0 = arith.constant 0 : i32
    %c0_i32_1 = arith.constant 0 : i32
    return %arg0, %arg1, %c0_i32, %c0_i32_0 : i32, i32, i32, i32
  }
}

</mosaic_0001>

<bundles_post_ra>
// kernel: tpu_custom_call.1
= control target key start
LH: loop header
LB: loop body
LE: loop exit
PB: predicated region body
PF: predicated region fallthrough
CT: control target
= control target key end

     0   :  { %s13032_s0 = inlined_call_operand.hbm [shape: bf16[2,1,432,128], index: 0, kind: input, shape index: {}]   ;;  %s13033_s1 = inlined_call_operand.hbm [shape: bf16[1,128,128], index: 1, kind: input, shape index: {}]   ;;  %s13034_s2 = inlined_call_operand.vmem [shape: f32[1,128], index: 2, kind: input, shape index: {}]   ;;  %s13035_s3 = inlined_call_operand.hbm [shape: bf16[3,384,128], index: 3, kind: input, shape index: {}]   ;;  %s13036_s4 = inlined_call_operand.vmem [shape: f32[1,128], index: 4, kind: input, shape index: {}]   ;;  %s13037_s5 = inlined_call_operand.hbm [shape: bf16[128,128], index: 5, kind: input, shape index: {}]   ;;  %s13038_s6 = inlined_call_operand.hbm [shape: bf16[2,1,384,128], index: 6, kind: output, shape index: {}]  }
   0x1   :  { %13128 = sst [smem:[#allocation44_spill]] %s13038_s6 }
   0x2   :  { %11 = vsyncpa [#allocation5], 0 }
   0x3   :  { %13 = vsyncpa [#allocation5 + $0x1], 0 }
   0x4   :  { %14 = vsyncpa [#allocation8], 0 }
   0x5   :  { %15 = vsyncpa [#allocation11], 0 }
   0x6   :  { %16 = vsyncpa [#allocation6], 0 }
   0x7   :  { %18 = vsyncpa [#allocation6 + $0x1], 0  ;;  %s8466_s21 = smov 0   ;;  %s8468_s22 = smov 0  }
   0x8   :  { %s8470_s23 = smov 0   ;;  %s8472_s24 = smov 0  }
   0x9   :  { %s8474_s25 = smov 0   ;;  %s8476_s26 = smov 0  }
   0xa LB: > { %13129 = sst [smem:[#allocation17_spill]] %s8397_s21  ;;  %s6462_s27 = sadd.s32 4294967295, %s8417_s26   ;;  %s8417_s26 = sphi %s8476_s26, %s24_s26   ;;  %s8413_s25 = sphi %s8474_s25, %s13951_s25   ;;  %s8409_s24 = sphi %s8472_s24, %s13950_s24   ;;  %s8405_s23 = sphi %s8470_s23, %s13949_s23   ;;  %s8401_s22 = sphi %s8468_s22, %s13948_s22   ;;  %s8397_s21 = sphi %s8466_s21, %s13947_s21  }
   0xb   : > { %s6463_s28 = sadd.s32 4294967294, %s8417_s26   ;;  %p58_p0 = scmp.ne.s32.totalorder %s8401_s22, %s8397_s21 }
   0xc   : > { %p8500_p1 = scmp.eq.s32.totalorder %s6462_s27, 0  ;;  %p8504_p2 = scmp.eq.s32.totalorder %s6462_s27, 1 }
   0xd   : > { %p195_p3 = scmp.eq.s32.totalorder %s6463_s28, 1  ;;  %p6464_p5 = scmp.ge.s32.totalorder %s8417_s26, 1 }
   0xe   : > { %s13130_s29 = scalar_select %p8500_p1, 1, 0 }
   0xf   : > { %s13131_s30 = scalar_select %p8504_p2, 1, 0 }
  0x10   : > { %p8510_p4 = por %p8500_p1, %p58_p0  ;;  %p8515_p6 = por %p195_p3, %p58_p0 }
  0x11   : > { %p202_p7 = scmp.lt.s32.totalorder %s8417_s26, 3  ;;  %s8419_s10 = smov [#allocation7]  }
  0x12   : > { %s13132_s7 = scalar_select %p8510_p4, 1, 0 }
  0x13   : > { %s13133_s8 = scalar_select %p8515_p6, 1, 0 }
  0x14   : > { %p8520_p8 = pnand %p6464_p5, %p202_p7  ;;  %s214_s11 = sshll.u32 %s8419_s10, 4  ;;  %s8524_s11 = int_to_ptr.vmem [resolvable:$true] %s214_s11 }
  0x15   : > { %13134 = sst [smem:[#allocation18_spill]] %s13133_s8  ;;  %s8420_s13 = smov [#allocation9]  }
  0x16   : > { %s13135_s9 = scalar_select %p8520_p8, 1, 0 }
  0x17   : > { %p7854_p9 = pneg %p8520_p8  ;;  %s230_s14 = sshll.u32 %s8420_s13, 4  ;;  %s8535_s14 = int_to_ptr.vmem [resolvable:$true] %s230_s14 }
  0x18   : > { %s8421_s15 = smov [#allocation10]   ;;  %s8213_s19 = scalar_lea.hbm %s13033_s1, 1024 }
  0x19   : > { %p8531_p11 = pnand %p7854_p9, %p8500_p1  ;;  %s8537_s16 = sshll.u32 %s8421_s15, 4  ;;  %s247_s16 = int_to_ptr.vmem [resolvable:$true] %s8537_s16 }
  0x1a   : > { %p8214_p12 = scmp.ne.s32.totalorder %s13033_s1, %s8213_s19  ;;  %p8220_p5 = scmp.lt.u32.totalorder %s8213_s19, %s13033_s1 }
  0x1b   : > { %p8547_p13 = pneg %p8531_p11 }
  0x1d   : > { %p8216_p0 = pnand %p8547_p13, %p8214_p12 }
  0x1f   : > { %p8217_p3 = pneg %p8216_p0 }
  0x21   : > { %p8222_p7 = pnand %p8220_p5, %p8217_p3 }
  0x23   : > { %8225 = shalt.err (!%p8222_p7)
}
  0x24   : > { %s8226_s15 = scalar_lea.vmem %s8524_s11, 1024  ;;  %p8234_p1 = scmp.lt.s32.totalorder %s8524_s11, %s8524_s11 }
  0x25   : > { %p8227_p9 = scmp.ne.s32.totalorder %s8524_s11, %s8226_s15  ;;  %p8235_p4 = scmp.lt.s32.totalorder %s8226_s15, %s8226_s15 }
  0x27   : > { %p8229_p10 = pnand %p8227_p9, %p8547_p13  ;;  %p8236_p12 = por %p8235_p4, %p8234_p1 }
  0x29   : > { %p8230_p6 = pneg %p8229_p10 }
  0x2b   : > { %p8237_p0 = pnand %p8236_p12, %p8230_p6 }
  0x2d   : > { %8240 = shalt.err (!%p8237_p0)
}
  0x2e   : > { %s13046_s17 = smov 64   ;;  %s8423_s18 = smov 4  }
  0x2f   : > { %7857 = dma.hbm_to_vmem [thread:$0]  (!%p8531_p11), %s13033_s1, 1024, %s8524_s11, [#allocation8], %s13046_s17, %s13046_s17, %s8423_s18  }
  0x30   : > { %s8241_s13 = scalar_lea.hbm %s13035_s3, 9216 }
  0x31   : > { %p8242_p1 = scmp.ne.s32.totalorder %s13035_s3, %s8241_s13  ;;  %p8248_p10 = scmp.lt.u32.totalorder %s8241_s13, %s13035_s3 }
  0x33   : > { %p8244_p4 = pnand %p8242_p1, %p8547_p13 }
  0x35   : > { %p8245_p6 = pneg %p8244_p4 }
  0x37   : > { %p8250_p3 = pnand %p8248_p10, %p8245_p6 }
  0x39   : > { %8253 = shalt.err (!%p8250_p3)
}
  0x3a   : > { %s8254_s11 = scalar_lea.vmem %s8535_s14, 9216  ;;  %p8262_p12 = scmp.lt.s32.totalorder %s8535_s14, %s8535_s14 }
  0x3b   : > { %p8255_p5 = scmp.ne.s32.totalorder %s8535_s14, %s8254_s11  ;;  %p8263_p0 = scmp.lt.s32.totalorder %s8254_s11, %s8254_s11 }
  0x3d   : > { %p8257_p7 = pnand %p8255_p5, %p8547_p13  ;;  %p8264_p1 = por %p8263_p0, %p8262_p12 }
  0x3f   : > { %p8258_p9 = pneg %p8257_p7 }
  0x41   : > { %p8265_p4 = pnand %p8264_p1, %p8258_p9 }
  0x43   : > { %8268 = shalt.err (!%p8265_p4)
}
  0x44   : > { %7860 = dma.hbm_to_vmem [thread:$0]  (!%p8531_p11), %s13035_s3, 9216, %s8535_s14, [#allocation8], %s13046_s17, %s13046_s17, %s8423_s18  }
  0x45   : > { %s8269_s20 = scalar_lea.hbm %s13037_s5, 1024 }
  0x46   : > { %p8270_p6 = scmp.ne.s32.totalorder %s13037_s5, %s8269_s20  ;;  %p8276_p5 = scmp.lt.u32.totalorder %s8269_s20, %s13037_s5 }
  0x48   : > { %p8272_p10 = pnand %p8270_p6, %p8547_p13 }
  0x4a   : > { %p8273_p3 = pneg %p8272_p10 }
  0x4c   : > { %p8278_p7 = pnand %p8276_p5, %p8273_p3 }
  0x4e   : > { %8281 = shalt.err (!%p8278_p7)
}
  0x4f   : > { %s8282_s11 = scalar_lea.vmem %s247_s16, 1024  ;;  %p8290_p1 = scmp.lt.s32.totalorder %s247_s16, %s247_s16 }
  0x50   : > { %p8283_p9 = scmp.ne.s32.totalorder %s247_s16, %s8282_s11  ;;  %p8291_p4 = scmp.lt.s32.totalorder %s8282_s11, %s8282_s11 }
  0x52   : > { %p8285_p12 = pnand %p8283_p9, %p8547_p13  ;;  %p8292_p8 = por %p8291_p4, %p8290_p1 }
  0x54   : > { %p8286_p0 = pneg %p8285_p12 }
  0x56   : > { %p8293_p2 = pnand %p8292_p8, %p8286_p0 }
  0x58   : > { %8296 = shalt.err (!%p8293_p2)
}
  0x59   : > { %7863 = dma.hbm_to_vmem [thread:$0]  (!%p8531_p11), %s13037_s5, 1024, %s247_s16, [#allocation11], %s13046_s17, %s13046_s17, %s8423_s18  }
  0x5a   : > { %s45_s28 = sadd.s32 1, %s8405_s23  ;;  %s36_s12 = sadd.s32 1, %s8413_s25 }
  0x5b   : > { %p52_p2 = scmp.ne.s32.totalorder %s8405_s23, %s8401_s22  ;;  %p38_p8 = scmp.ge.s32.totalorder %s36_s12, 2 }
  0x5c   : > { %p53_p13 = scmp.eq.s32.totalorder %s8417_s26, 0  ;;  %p13138_p6 = scmp.ne.s32.totalorder %s13131_s30, 0 }
  0x5d   : > { %p7875_p3 = scmp.lt.s32.totalorder %s8417_s26, 2  ;;  %s13953_s12 = smov (%p38_p8, %s36_s12), 0 }
  0x5e   : > { %p8626_p10 = por %p13138_p6, %p52_p2  ;;  %p54_p5 = por %p53_p13, %p52_p2 }
  0x5f   : > { %s260_s8 = sand.u32 1, %s8405_s23   ;;  %s40_s19 = ssub.s32 %s8413_s25, %s13953_s12 }
  0x60   : > { %p43_p7 = scmp.eq.s32.totalorder %s40_s19, 0  ;;  %s7725_s16 = smul.u32 216, %s260_s8 }
  0x61   : > { %s7726_s20 = smul.u32 3456, %s8413_s25  ;;  %p8637_p11 = pnand %p7875_p3, %p54_p5 }
  0x62   : > { %s8642_s30 = scalar_select %p43_p7, %s8405_s23, %s45_s28  }
  0x63   : > { %s8647_s15 = scalar_lea.hbm %s13032_s0, %s7726_s20  ;;  %s264_s11 = scalar_lea.vmem [#allocation4], %s7725_s16 }
  0x64   : > { %s273_s14 = sshll.u32 %s264_s11, 4  ;;  %s8651_s6 = scalar_lea.sflag [#allocation5], %s260_s8  ;;  %s8649_s14 = int_to_ptr.vmem [resolvable:$true] %s273_s14 }
  0x65   : > { %s8297_s19 = scalar_lea.hbm %s8647_s15, 3456  ;;  %p8299_p12 = pneg %p8637_p11 }
  0x66   : > { %p8298_p9 = scmp.ne.s32.totalorder %s8647_s15, %s8297_s19  ;;  %s8302_s10 = scalar_lea.hbm %s13032_s0, 6912 }
  0x67   : > { %p8303_p4 = scmp.lt.u32.totalorder %s8647_s15, %s13032_s0  ;;  %p8304_p2 = scmp.lt.u32.totalorder %s8302_s10, %s8297_s19 }
  0x68   : > { %p8300_p0 = pnand %p8299_p12, %p8298_p9  ;;  %p8306_p13 = scmp.lt.u32.totalorder %s8297_s19, %s8647_s15 }
  0x69   : > { %p8305_p8 = por %p8304_p2, %p8303_p4 }
  0x6a   : > { %p8301_p1 = pneg %p8300_p0 }
  0x6b   : > { %p8307_p6 = por %p8306_p13, %p8305_p8 }
  0x6d   : > { %p8308_p3 = pnand %p8307_p6, %p8301_p1 }
  0x6f   : > { %8311 = shalt.err (!%p8308_p3)
}
  0x70   : > { %s8312_s8 = scalar_lea.vmem %s8649_s14, 3456  ;;  %s8424_s16 = smov [#allocation4]  }
  0x71   : > { %p8313_p5 = scmp.ne.s32.totalorder %s8649_s14, %s8312_s8  ;;  %s8317_s11 = sshll.u32 %s8424_s16, 4  ;;  %s8318_s11 = int_to_ptr.vmem [resolvable:$false] %s8317_s11 }
  0x72   : > { %s8319_s17 = scalar_lea.vmem %s8318_s11, 6912  ;;  %p8320_p0 = scmp.lt.s32.totalorder %s8649_s14, %s8318_s11 }
  0x73   : > { %p8315_p7 = pnand %p8313_p5, %p8299_p12  ;;  %p8321_p4 = scmp.lt.s32.totalorder %s8319_s17, %s8312_s8 }
  0x75   : > { %p8316_p9 = pneg %p8315_p7  ;;  %p8322_p2 = por %p8321_p4, %p8320_p0 }
  0x77   : > { %p8323_p8 = pnand %p8322_p2, %p8316_p9 }
  0x79   : > { %8326 = shalt.err (!%p8323_p8)
}
  0x7a   : > { %s13141_s19 = smov 64   ;;  %p13142_p12 = scmp.ne.s32.totalorder %s13135_s9, 0 }
  0x7b   : > { %7867 = dma.hbm_to_vmem [thread:$0]  (!%p8637_p11), %s8647_s15, 3456, %s8649_s14, %s8651_s6, %s13141_s19, %s13141_s19, %s8423_s18  }
  0x7c   : > { %285 = sbr.rel (%p13142_p12) target bundleno = 1279 (0x4ff), region = 44 }
  0x83   : > { %s8685_s28 = sand.u32 1, %s8401_s22   ;;  %p13143_p1 = scmp.ne.s32.totalorder %s13132_s7, 0 }
  0x84   : > { %s7727_s20 = smul.u32 216, %s8685_s28  ;;  %s288_s10 = scalar_lea.sflag [#allocation5], %s8685_s28 }
  0x86   : > { %s8689_s13 = scalar_lea.vmem [#allocation4], %s7727_s20 }
  0x87   : > { %8380 = dma.done.wait (%p13143_p1), %s288_s10, 3456  }
  0x88   : > { %8382 = vsyncadd (%p13143_p1), %s288_s10, 4294963840  ;;  %p13144_p11 = scmp.ne.s32.totalorder %s13130_s29, 0 }
  0x8a   : > { %8384 = dma.done.wait (%p13144_p11), [#allocation8], 10240  }
  0x8b   : > { %8386 = vsyncadd (%p13144_p11), [#allocation8], 4294957056 }
  0x8c   : > { %8388 = dma.done.wait (%p13144_p11), [#allocation11], 1024  }
  0x8d   : > { %8390 = vsyncadd (%p13144_p11), [#allocation11], 4294966272  ;;  %v8425_v0 = vmov 0.0   ;;  %vm8426_vm0 = vmmov 0   ;;  %v7938_v1 = vld [vmem:[#allocation7] sm:$0xff]   ;;  %v7939_v2 = vld [vmem:[#allocation7 + $0x8] sm:$0xff]   ;;  %v403_v56 = vlaneseq }
  0x8e   : > { %7345 = vmatprep.subr.bf16.mxu0 %v8425_v0  ;;  %7361 = vmatprep.mubr.msk.bf16.mxu0 %vm8426_vm0, %v8425_v0  ;;  %v7940_v3 = vld [vmem:[#allocation7 + $0x10] sm:$0xff]   ;;  %v7941_v4 = vld [vmem:[#allocation7 + $0x18] sm:$0xff]   ;;  %v7942_v5 = vld [vmem:[#allocation7 + $0x20] sm:$0xff]   ;;  %v13047_v18 = vmov 0   ;;  %s7728_s11 = smul.u32 192, %s8685_s28  ;;  %s13942_s29 = sld [smem:[#allocation44_spill]] }
  0x8f   : > { %7346 = vmatpush3.bf16.msra.mxu0 %v7938_v1  ;;  %v7943_v6 = vld [vmem:[#allocation7 + $0x28] sm:$0xff]   ;;  %v7944_v7 = vld [vmem:[#allocation7 + $0x30] sm:$0xff]   ;;  %v7945_v8 = vld [vmem:[#allocation7 + $0x38] sm:$0xff]   ;;  %3296 = vmatprep.subr.bf16.mxu1 %v13047_v18  ;;  %2169 = vst [vmem:[#allocation2 + $0xd8] sm:$0xf] %v13047_v18  ;;  %v8798_v58 = vshrl.u32 %v403_v56, 7 }
  0x90   : > { %7347 = vmatprep.subr.bf16.mxu0 %v8425_v0  ;;  %v7946_v9 = vld [vmem:[%s8689_s13] sm:$0xff]   ;;  %v7947_v10 = vld [vmem:[%s8689_s13 + $0x8] sm:$0xff]   ;;  %v7948_v11 = vld [vmem:[%s8689_s13 + $0x10] sm:$0xff]   ;;  %s12747_s17 = scalar_lea.vmem [#allocation12], %s7728_s11  ;;  %s7837_s19 = smul.u32 3072, %s8409_s24 }
  0x91   : > { %v7949_v12 = vld [vmem:[%s8689_s13 + $0x18] sm:$0xff]   ;;  %v7950_v13 = vld [vmem:[%s8689_s13 + $0x20] sm:$0xff]   ;;  %v7951_v14 = vld [vmem:[%s8689_s13 + $0x28] sm:$0xff]   ;;  %v8801_v59 = vadd.s32 8, %v8798_v58  ;;  %v8806_v60 = vadd.s32 16, %v8798_v58  ;;  %v458_v62 = vcvt.s32.f32 %v8798_v58  ;;  %v8812_v1 = vadd.s32 24, %v8798_v58 }
  0x92   : > { %v7952_v15 = vld [vmem:[%s8689_s13 + $0x30] sm:$0xff]   ;;  %v7953_v16 = vld [vmem:[%s8689_s13 + $0x38] sm:$0xff]   ;;  %v7954_v20 = vld [vmem:[%s8689_s13 + $0x40] sm:$0xff]   ;;  %v8860_v56 = vadd.s32 96, %v8798_v58  ;;  %s6346_s20 = sshll.u32 %s12747_s17, 4  ;;  %s6331_s9 = scalar_lea.sflag [#allocation6], %s8685_s28  ;;  %s12982_s20 = int_to_ptr.vmem [resolvable:$true] %s6346_s20 }
  0x93   : > { %7348 = vmatpush3.bf16.msra.mxu0 %v7939_v2  ;;  %v7970_v17 = vld [vmem:[#allocation9] sm:$0xff]   ;;  %v7972_v19 = vld [vmem:[#allocation9 + $0x8] sm:$0xff]   ;;  %v7973_v21 = vld [vmem:[#allocation9 + $0x10] sm:$0xff]   ;;  %v459_v63 = vcvt.s32.f32 %v8801_v59  ;;  %v460_v2 = vcvt.s32.f32 %v8806_v60  ;;  %s8327_s18 = scalar_lea.vmem %s12982_s20, 3072  ;;  %s8428_s24 = smov [#allocation12]  }
  0x94   : > { %7349 = vmatprep.subr.bf16.mxu0 %v8425_v0  ;;  %3297 = vmatpush1.bf16.msra.mxu1 %v7970_v17  ;;  %v7975_v22 = vld [vmem:[#allocation9 + $0x18] sm:$0xff]   ;;  %v7976_v24 = vld [vmem:[#allocation9 + $0x20] sm:$0xff]   ;;  %v7978_v25 = vld [vmem:[#allocation9 + $0x28] sm:$0xff]   ;;  %v8834_v17 = vadd.s32 64, %v8798_v58  ;;  %s12980_s7 = scalar_lea.hbm %s13942_s29, %s7837_s19  ;;  %p8328_p13 = scmp.ne.s32.totalorder %s12982_s20, %s8327_s18 }
  0x95   : > { %3298 = vmatprep.subr.bf16.mxu1 %v13047_v18  ;;  %v7955_v23 = vld [vmem:[%s8689_s13 + $0x48] sm:$0xff]   ;;  %v7956_v27 = vld [vmem:[%s8689_s13 + $0x50] sm:$0xff]   ;;  %v7957_v30 = vld [vmem:[%s8689_s13 + $0x58] sm:$0xff]   ;;  %s8331_s27 = sshll.u32 %s8428_s24, 4  ;;  %s8332_s27 = int_to_ptr.vmem [resolvable:$false] %s8331_s27 }
  0x96   : > { %v7979_v26 = vld [vmem:[#allocation9 + $0x30] sm:$0xff]   ;;  %v7980_v28 = vld [vmem:[#allocation9 + $0x38] sm:$0xff]   ;;  %v7981_v29 = vld [vmem:[#allocation9 + $0x40] sm:$0xff]   ;;  %p8329_p6 = pnand %p8328_p13, %p8626_p10  ;;  %s8333_s15 = scalar_lea.vmem %s8332_s27, 6144 }
  0x97   : > { %7350 = vmatpush3.bf16.msra.mxu0 %v7940_v3  ;;  %v7982_v31 = vld [vmem:[#allocation9 + $0x48] sm:$0xff]   ;;  %v7983_v32 = vld [vmem:[#allocation9 + $0x80] sm:$0xff]   ;;  %v7985_v34 = vld [vmem:[#allocation9 + $0x50] sm:$0xff]   ;;  %v512_v3 = vadd.f32 0.5, %v458_v62  ;;  %p8334_p5 = scmp.lt.s32.totalorder %s12982_s20, %s8332_s27  ;;  %p8335_p7 = scmp.lt.s32.totalorder %s8333_s15, %s8327_s18 }
  0x98   : > { %7351 = vmatprep.subr.bf16.mxu0 %v8425_v0  ;;  %3299 = vmatpush1.bf16.msra.mxu1 %v7972_v19  ;;  %v7958_v33 = vld [vmem:[%s8689_s13 + $0x60] sm:$0xff]   ;;  %v7987_v36 = vld [vmem:[#allocation9 + $0x58] sm:$0xff]   ;;  %v7989_v39 = vld [vmem:[#allocation9 + $0x60] sm:$0xff]   ;;  %p8330_p3 = pneg %p8329_p6 }
  0x99   : > { %3300 = vmatprep.subr.bf16.mxu1 %v13047_v18  ;;  %v7986_v35 = vld [vmem:[#allocation9 + $0x88] sm:$0xff]   ;;  %v7988_v37 = vld [vmem:[#allocation9 + $0x90] sm:$0xff]   ;;  %v7990_v40 = vld [vmem:[#allocation9 + $0x98] sm:$0xff]   ;;  %p8336_p9 = por %p8335_p7, %p8334_p5 }
  0x9a   : > { %v7959_v38 = vld [vmem:[%s8689_s13 + $0x68] sm:$0xff]   ;;  %v7991_v41 = vld [vmem:[#allocation9 + $0x68] sm:$0xff]   ;;  %v7992_v42 = vld [vmem:[#allocation9 + $0xa0] sm:$0xff]  }
  0x9b   : > { %7352 = vmatpush3.bf16.msra.mxu0 %v7941_v4  ;;  %v7960_v43 = vld [vmem:[%s8689_s13 + $0x70] sm:$0xff]   ;;  %v7993_v44 = vld [vmem:[#allocation9 + $0x70] sm:$0xff]   ;;  %v7994_v45 = vld [vmem:[#allocation9 + $0xa8] sm:$0xff]   ;;  %v513_v4 = vadd.f32 0.5, %v459_v63  ;;  %p8337_p0 = pnand %p8336_p9, %p8330_p3 }
  0x9c   : > { %7353 = vmatprep.subr.bf16.mxu0 %v8425_v0  ;;  %3301 = vmatpush1.bf16.msra.mxu1 %v7973_v21  ;;  %v7995_v46 = vld [vmem:[#allocation9 + $0x78] sm:$0xff]   ;;  %v7996_v47 = vld [vmem:[#allocation9 + $0xb0] sm:$0xff]   ;;  %v7961_v48 = vld [vmem:[%s8689_s13 + $0x78] sm:$0xff]   ;;  %v8838_v21 = vadd.s32 72, %v8798_v58 }
  0x9d   : > { %3302 = vmatprep.subr.bf16.mxu1 %v13047_v18  ;;  %v8002_v49 = vld [vmem:[#allocation9 + $0xb8] sm:$0xff]   ;;  %v7962_v50 = vld [vmem:[%s8689_s13 + $0x80] sm:$0xff]   ;;  %v8783_v52 = vld [vmem:[#allocation10] sm:$0xff]  }
  0x9e   : > { %v7963_v51 = vld [vmem:[%s8689_s13 + $0x88] sm:$0xff]   ;;  %v7964_v53 = vld [vmem:[%s8689_s13 + $0x90] sm:$0xff]   ;;  %v7965_v54 = vld [vmem:[%s8689_s13 + $0x98] sm:$0xff]  }
  0x9f   : > { %7354 = vmatpush3.bf16.msra.mxu0 %v7942_v5  ;;  %v7966_v55 = vld [vmem:[%s8689_s13 + $0xa0] sm:$0xff]   ;;  %v7967_v57 = vld [vmem:[%s8689_s13 + $0xa8] sm:$0xff]   ;;  %v7968_v61 = vld [vmem:[%s8689_s13 + $0xb0] sm:$0xff]   ;;  %v8816_v5 = vadd.s32 32, %v8798_v58 }
  0xa0   : > { %7355 = vmatprep.subr.bf16.mxu0 %v8425_v0  ;;  %3303 = vmatpush1.bf16.msra.mxu1 %v7975_v22  ;;  %v7974_v63 = vld [vmem:[%s8689_s13 + $0xc8] sm:$0xff]  }
  0xa1   : > { %3304 = vmatprep.subr.bf16.mxu1 %v13047_v18 }
  0xa3   : > { %7356 = vmatpush3.bf16.msra.mxu0 %v7943_v6  ;;  %v8819_v6 = vadd.s32 40, %v8798_v58 }
  0xa4   : > { %7357 = vmatprep.subr.bf16.mxu0 %v8425_v0  ;;  %3305 = vmatpush1.bf16.msra.mxu1 %v7976_v24 }
  0xa5   : > { %3306 = vmatprep.subr.bf16.mxu1 %v13047_v18 }
  0xa7   : > { %7358 = vmatpush3.bf16.msra.mxu0 %v7944_v7  ;;  %v461_v7 = vcvt.s32.f32 %v8812_v1 }
  0xa8   : > { %7359 = vmatprep.subr.bf16.mxu0 %v8425_v0  ;;  %3307 = vmatpush1.bf16.msra.mxu1 %v7978_v25 }
  0xa9   : > { %3308 = vmatprep.subr.bf16.mxu1 %v13047_v18 }
  0xab   : > { %7360 = vmatpush3.bf16.msra.mxu0 %v7945_v8  ;;  %v514_v8 = vadd.f32 0.5, %v460_v2 }
  0xac   : > { %3309 = vmatpush1.bf16.msra.mxu1 %v7979_v26  ;;  %7469 = vmatprep.subr.bf16.mxu0 %v7983_v32 }
  0xad   : > { %3310 = vmatprep.subr.bf16.mxu1 %v13047_v18  ;;  %v568_v19 = vmul.f32 0.041666668, %v514_v8 }
  0xae   : > { %7362 = vmatmul.mubr.bf16.vlgmr.msra.gmra.mrb[0].mxu0 %v7946_v9  ;;  %v8825_v9 = vadd.s32 48, %v8798_v58 }
  0xaf   : > { %7365 = vmatprep.mubr.msk.bf16.mxu0 %vm8426_vm0, %v8425_v0  ;;  %7470 = vmatpush3.bf16.msra.mxu0 %v7983_v32  ;;  %v7971_v32 = vld [vmem:[%s8689_s13 + $0xc0] sm:$0xff]  }
  0xb0   : > { %3311 = vmatpush1.bf16.msra.mxu1 %v7980_v28  ;;  %7471 = vmatprep.subr.bf16.mxu0 %v7986_v35  ;;  %v466_v28 = vcvt.s32.f32 %v8834_v17 }
  0xb1   : > { %3312 = vmatprep.subr.bf16.mxu1 %v13047_v18 }
  0xb3   : > { %7472 = vmatpush3.bf16.msra.mxu0 %v7986_v35 }
  0xb4   : > { %3313 = vmatpush1.bf16.msra.mxu1 %v7981_v29  ;;  %7473 = vmatprep.subr.bf16.mxu0 %v7988_v37  ;;  %v7733_v29 = vtrunc.f32 %v568_v19 }
  0xb5   : > { %3314 = vmatprep.subr.bf16.mxu1 %v13047_v18 }
  0xb6   : > { %7366 = vmatmul.mubr.bf16.gmra.mrb[4].mxu0 %v7947_v10  ;;  %v7969_v10 = vld [vmem:[%s8689_s13 + $0xb8] sm:$0xff]  }
  0xb7   : > { %7369 = vmatprep.mubr.msk.bf16.mxu0 %vm8426_vm0, %v8425_v0  ;;  %7474 = vmatpush3.bf16.msra.mxu0 %v7988_v37 }
  0xb8   : > { %3315 = vmatpush1.bf16.msra.mxu1 %v7982_v31  ;;  %7475 = vmatprep.subr.bf16.mxu0 %v7990_v40  ;;  %v467_v31 = vcvt.s32.f32 %v8838_v21 }
  0xb9   : > { %3316 = vmatprep.subr.bf16.mxu1 %v13047_v18 }
  0xbb   : > { %7476 = vmatpush3.bf16.msra.mxu0 %v7990_v40  ;;  %v520_v40 = vadd.f32 0.5, %v466_v28 }
  0xbc   : > { %3317 = vmatpush1.bf16.msra.mxu1 %v7985_v34  ;;  %7477 = vmatprep.subr.bf16.mxu0 %v7992_v42 }
  0xbd   : > { %3318 = vmatprep.subr.bf16.mxu1 %v13047_v18 }
  0xbe   : > { %7370 = vmatmul.mubr.bf16.gmra.mrb[8].mxu0 %v7948_v11  ;;  %v566_v11 = vmul.f32 0.041666668, %v512_v3 }
  0xbf   : > { %7373 = vmatprep.mubr.msk.bf16.mxu0 %vm8426_vm0, %v8425_v0  ;;  %7478 = vmatpush3.bf16.msra.mxu0 %v7992_v42 }
  0xc0   : > { %3319 = vmatpush1.bf16.msra.mxu1 %v7987_v36  ;;  %7479 = vmatprep.subr.bf16.mxu0 %v7994_v45  ;;  %v7729_v22 = vtrunc.f32 %v566_v11 }
  0xc1   : > { %3320 = vmatprep.subr.bf16.mxu1 %v13047_v18 }
  0xc3   : > { %7480 = vmatpush3.bf16.msra.mxu0 %v7994_v45 }
  0xc4   : > { %3321 = vmatpush1.bf16.msra.mxu1 %v7989_v39  ;;  %7481 = vmatprep.subr.bf16.mxu0 %v7996_v47 }
  0xc5   : > { %3322 = vmatprep.subr.bf16.mxu1 %v13047_v18 }
  0xc6   : > { %7374 = vmatmul.mubr.bf16.gmra.mrb[12].mxu0 %v7949_v12  ;;  %v567_v12 = vmul.f32 0.041666668, %v513_v4 }
  0xc7   : > { %7377 = vmatprep.mubr.msk.bf16.mxu0 %vm8426_vm0, %v8425_v0  ;;  %7482 = vmatpush3.bf16.msra.mxu0 %v7996_v47 }
  0xc8   : > { %3323 = vmatpush1.bf16.msra.mxu1 %v7991_v41  ;;  %7483 = vmatprep.subr.bf16.mxu0 %v8002_v49  ;;  %v7734_v41 = vcvt.f32.s32 %v7733_v29  ;;  %v8893_v29 = vadd.s32 120, %v8798_v58 }
  0xc9   : > { %3324 = vmatprep.subr.bf16.mxu1 %v13047_v18 }
  0xca   : > { %v8871_v8 = vadd.s32 4294967295, %v7734_v41 }
  0xcb   : > { %7484 = vmatpush3.bf16.msra.mxu0 %v8002_v49 }
  0xcc   : > { %3325 = vmatpush1.bf16.msra.mxu1 %v7993_v44  ;;  %4726 = vmatprep.subr.bf16.mxu0 %v13047_v18  ;;  %vm841_vm7 = vcmp.ge.s32.totalorder %v8871_v8, 0  ;;  %vm895_vm8 = vcmp.lt.s32.totalorder %v8871_v8, 16 }
  0xcd   : > { %3326 = vmatprep.subr.bf16.mxu1 %v13047_v18 }
  0xce   : > { %7378 = vmatmul.mubr.bf16.gmra.mrb[16].mxu0 %v7950_v13  ;;  %v462_v13 = vcvt.s32.f32 %v8816_v5 }
  0xcf   : > { %7381 = vmatprep.mubr.msk.bf16.mxu0 %vm8426_vm0, %v8425_v0 }
  0xd0   : > { %3327 = vmatpush1.bf16.msra.mxu1 %v7995_v46  ;;  %v516_v24 = vadd.f32 0.5, %v462_v13 }
  0xd1   : > { %7533 = vmatprep.subr.bf16.mxu1 %v8783_v52 }
  0xd2   : > { %v570_v35 = vmul.f32 0.041666668, %v516_v24 }
  0xd4   : > { %v7737_v46 = vtrunc.f32 %v570_v35 }
  0xd6   : > { %7382 = vmatmul.mubr.bf16.gmra.mrb[20].mxu0 %v7951_v14  ;;  %v463_v14 = vcvt.s32.f32 %v8819_v6  ;;  %v7738_v4 = vcvt.f32.s32 %v7737_v46 }
  0xd7   : > { %7385 = vmatprep.mubr.msk.bf16.mxu0 %vm8426_vm0, %v8425_v0 }
  0xd8   : > { %v517_v25 = vadd.f32 0.5, %v463_v14  ;;  %v678_v24 = vmul.u32 24, %v7738_v4 }
  0xda   : > { %v571_v36 = vmul.f32 0.041666668, %v517_v25 }
  0xdc   : > { %v7739_v47 = vtrunc.f32 %v571_v36  ;;  %v8905_v36 = vadd.s32 128, %v8798_v58 }
  0xde   : > { %7386 = vmatmul.mubr.bf16.gmra.mrb[24].mxu0 %v7952_v15  ;;  %v8831_v15 = vadd.s32 56, %v8798_v58 }
  0xdf   : > { %7389 = vmatprep.mubr.msk.bf16.mxu0 %vm8426_vm0, %v8425_v0 }
  0xe0   : > { %v465_v26 = vcvt.s32.f32 %v8831_v15 }
  0xe2   : > { %v519_v37 = vadd.f32 0.5, %v465_v26  ;;  %v8887_v26 = vadd.s32 112, %v8798_v58 }
  0xe4   : > { %v573_v49 = vmul.f32 0.041666668, %v519_v37  ;;  %v7977_v37 = vld [vmem:[%s8689_s13 + $0xd0] sm:$0xff]  }
  0xe6   : > { %7390 = vmatmul.mubr.bf16.gmra.mrb[28].mxu0 %v7953_v16  ;;  %v515_v16 = vadd.f32 0.5, %v461_v7  ;;  %v7740_v7 = vcvt.f32.s32 %v7739_v47 }
  0xe7   : > { %7393 = vmatprep.mubr.msk.bf16.mxu0 %vm8426_vm0, %v8425_v0 }
  0xe8   : > { %v679_v25 = vmul.u32 24, %v7740_v7 }
  0xee   : > { %7394 = vmatmul.mubr.bf16.gmra.mrb[32].mxu0 %v7954_v20  ;;  %v464_v20 = vcvt.s32.f32 %v8825_v9 }
  0xef   : > { %7397 = vmatprep.mubr.msk.bf16.mxu0 %vm8426_vm0, %v8425_v0 }
  0xf6   : > { %7398 = vmatmul.mubr.bf16.gmra.mrb[36].mxu0 %v7955_v23  ;;  %v7731_v23 = vtrunc.f32 %v567_v12 }
  0xf7   : > { %7401 = vmatprep.mubr.msk.bf16.mxu0 %vm8426_vm0, %v8425_v0 }
  0xf8   : > { %v7732_v34 = vcvt.f32.s32 %v7731_v23 }
  0xfa   : > { %v675_v45 = vmul.u32 24, %v7732_v34 }
  0xfc   : > { %v8867_v3 = vsub.s32 %v8801_v59, %v675_v45  ;;  %v8877_v59 = vadd.s32 104, %v8798_v58  ;;  %v473_v45 = vcvt.s32.f32 %v8893_v29 }
  0xfe   : > { %7402 = vmatmul.mubr.bf16.gmra.mrb[40].mxu0 %v7956_v27  ;;  %v569_v27 = vmul.f32 0.041666668, %v515_v16  ;;  %v470_v16 = vcvt.s32.f32 %v8860_v56  ;;  %vm1002_vm6 = vcmp.ge.s32.totalorder %v8867_v3, 1  ;;  %vm1110_vm10 = vcmp.le.s32.totalorder %v8867_v3, 16 }
  0xff   : > { %7405 = vmatprep.mubr.msk.bf16.mxu0 %vm8426_vm0, %v8425_v0 }
 0x100   : > { %v7735_v39 = vtrunc.f32 %v569_v27 }
 0x106   : > { %7406 = vmatmul.mubr.bf16.gmra.mrb[44].mxu0 %v7957_v30  ;;  %v518_v30 = vadd.f32 0.5, %v464_v20 }
 0x107   : > { %7409 = vmatprep.mubr.msk.bf16.mxu0 %vm8426_vm0, %v8425_v0 }
 0x108   : > { %v572_v42 = vmul.f32 0.041666668, %v518_v30 }
 0x10e   : > { %7410 = vmatmul.mubr.bf16.gmra.mrb[48].mxu0 %v7958_v33  ;;  %v7730_v33 = vcvt.f32.s32 %v7729_v22 }
 0x10f   : > { %7413 = vmatprep.mubr.msk.bf16.mxu0 %vm8426_vm0, %v8425_v0 }
 0x110   : > { %v674_v44 = vmul.u32 24, %v7730_v33 }
 0x112   : > { %v8864_v2 = vsub.s32 %v8798_v58, %v674_v44 }
 0x114   : > { %vm1001_vm5 = vcmp.ge.s32.totalorder %v8864_v2, 1  ;;  %vm1109_vm9 = vcmp.le.s32.totalorder %v8864_v2, 16 }
 0x116   : > { %7414 = vmatmul.mubr.bf16.gmra.mrb[52].mxu0 %v7959_v38  ;;  %v8847_v38 = vadd.s32 80, %v8798_v58 }
 0x117   : > { %7417 = vmatprep.mubr.msk.bf16.mxu0 %vm8426_vm0, %v8425_v0 }
 0x11e   : > { %7418 = vmatmul.mubr.bf16.gmra.mrb[56].mxu0 %v7960_v43  ;;  %v521_v43 = vadd.f32 0.5, %v467_v31 }
 0x11f   : > { %7421 = vmatprep.mubr.msk.bf16.mxu0 %vm8426_vm0, %v8425_v0 }
 0x120   : > { %v575_v62 = vmul.f32 0.041666668, %v521_v43 }
 0x122   : > { %v7747_v22 = vtrunc.f32 %v575_v62  ;;  %v8945_v62 = vadd.s32 144, %v8798_v58 }
 0x124   : > { %v7748_v35 = vcvt.f32.s32 %v7747_v22  ;;  %13147 = vst [vmem:[#allocation19_spill] sm:$0xff] %v8945_v62 }
 0x126   : > { %7422 = vmatmul.mubr.bf16.gmra.mrb[60].mxu0 %v7961_v48  ;;  %v8851_v48 = vadd.s32 4294967295, %v7730_v33  ;;  %v8902_v33 = vadd.s32 4294967295, %v7738_v4  ;;  %v8953_v4 = vld [vmem:[%s13034_s2] ss:$0 sm:$0xff]  ;;  %v8988_v22 = vadd.s32 4294967295, %v7748_v35 }
 0x127   : > { %7425 = vmatprep.mubr.msk.bf16.mxu0 %vm8426_vm0, %v8425_v0 }
 0x128   : > { %vm839_vm1 = vcmp.ge.s32.totalorder %v8851_v48, 0  ;;  %vm893_vm2 = vcmp.lt.s32.totalorder %v8851_v48, 16  ;;  %vm897_vm15 = vcmp.lt.s32.totalorder %v8902_v33, 16 }
 0x12e   : > { %7426 = vmatmul.mubr.bf16.gmra.mrb[64].mxu0 %v7962_v50  ;;  %v468_v50 = vcvt.s32.f32 %v8847_v38 }
 0x12f   : > { %7429 = vmatprep.mubr.msk.bf16.mxu0 %vm8426_vm0, %v8425_v0 }
 0x130   : > { %v522_v11 = vadd.f32 0.5, %v468_v50  ;;  %v683_v50 = vmul.u32 24, %v7748_v35 }
 0x132   : > { %v576_v27 = vmul.f32 0.041666668, %v522_v11 }
 0x134   : > { %v7749_v43 = vtrunc.f32 %v576_v27 }
 0x136   : > { %7430 = vmatmul.mubr.bf16.gmra.mrb[68].mxu0 %v7963_v51  ;;  %v8855_v51 = vadd.s32 88, %v8798_v58 }
 0x137   : > { %7433 = vmatprep.mubr.msk.bf16.mxu0 %vm8426_vm0, %v8425_v0 }
 0x138   : > { %v469_v12 = vcvt.s32.f32 %v8855_v51 }
 0x13a   : > { %v523_v28 = vadd.f32 0.5, %v469_v12  ;;  %v527_v12 = vadd.f32 0.5, %v473_v45 }
 0x13c   : > { %v577_v44 = vmul.f32 0.041666668, %v523_v28 }
 0x13e   : > { %7434 = vmatmul.mubr.bf16.gmra.mrb[72].mxu0 %v7964_v53  ;;  %v8857_v53 = vadd.s32 4294967295, %v7732_v34  ;;  %v7751_v11 = vtrunc.f32 %v577_v44 }
 0x13f   : > { %7437 = vmatprep.mubr.msk.bf16.mxu0 %vm8426_vm0, %v8425_v0 }
 0x140   : > { %vm840_vm3 = vcmp.ge.s32.totalorder %v8857_v53, 0  ;;  %vm894_vm4 = vcmp.lt.s32.totalorder %v8857_v53, 16 }
 0x146   : > { %7438 = vmatmul.mubr.bf16.gmra.mrb[76].mxu0 %v7965_v54  ;;  %v7736_v54 = vcvt.f32.s32 %v7735_v39  ;;  %v8910_v39 = vsub.s32 %v8816_v5, %v678_v24 }
 0x147   : > { %7441 = vmatprep.mubr.msk.bf16.mxu0 %vm8426_vm0, %v8425_v0 }
 0x148   : > { %v677_v13 = vmul.u32 24, %v7736_v54  ;;  %v8884_v23 = vadd.s32 4294967295, %v7736_v54  ;;  %v474_v54 = vcvt.s32.f32 %v8905_v36 }
 0x14a   : > { %v8898_v30 = vsub.s32 %v8812_v1, %v677_v13  ;;  %v8913_v1 = vsub.s32 %v8819_v6, %v679_v25  ;;  %vm842_vm12 = vcmp.ge.s32.totalorder %v8884_v23, 0  ;;  %vm896_vm13 = vcmp.lt.s32.totalorder %v8884_v23, 16 }
 0x14b   : > { %v528_v24 = vadd.f32 0.5, %v474_v54 }
 0x14e   : > { %7442 = vmatmul.mubr.bf16.gmra.mrb[80].mxu0 %v7966_v55  ;;  %v574_v55 = vmul.f32 0.041666668, %v520_v40  ;;  %v8915_v40 = vadd.s32 4294967295, %v7740_v7 }
 0x14f   : > { %7445 = vmatprep.mubr.msk.bf16.mxu0 %vm8426_vm0, %v8425_v0 }
 0x150   : > { %v7745_v14 = vtrunc.f32 %v574_v55  ;;  %v8931_v55 = vadd.s32 136, %v8798_v58  ;;  %vm898_vm14 = vcmp.lt.s32.totalorder %v8915_v40, 16 }
 0x152   : > { %v7746_v31 = vcvt.f32.s32 %v7745_v14  ;;  %v475_v25 = vcvt.s32.f32 %v8931_v55 }
 0x154   : > { %v682_v46 = vmul.u32 24, %v7746_v31  ;;  %v8973_v14 = vadd.s32 4294967295, %v7746_v31  ;;  %v476_v31 = vcvt.s32.f32 %v8945_v62  ;;  %v529_v54 = vadd.f32 0.5, %v475_v25 }
 0x156   : > { %7446 = vmatmul.mubr.bf16.gmra.mrb[84].mxu0 %v7967_v57  ;;  %v676_v57 = vmul.u32 24, %v7734_v41  ;;  %v472_v41 = vcvt.s32.f32 %v8887_v26  ;;  %v8971_v13 = vsub.s32 %v8834_v17, %v682_v46  ;;  %v8986_v17 = vsub.s32 %v8838_v21, %v683_v50 }
 0x157   : > { %7449 = vmatprep.mubr.msk.bf16.mxu0 %vm8426_vm0, %v8425_v0  ;;  %v582_v50 = vmul.f32 0.041666668, %v528_v24 }
 0x158   : > { %v8881_v19 = vsub.s32 %v8806_v60, %v676_v57  ;;  %v9049_v57 = vadd.s32 168, %v8798_v58 }
 0x15a   : > { %vm1003_vm11 = vcmp.ge.s32.totalorder %v8881_v19, 1  ;;  %13162 = vst [vmem:[#allocation22_spill] sm:$0xff] %v9049_v57 }
 0x15e   : > { %7450 = vmatmul.mubr.bf16.gmra.mrb[88].mxu0 %v7968_v61  ;;  %v7741_v61 = vtrunc.f32 %v572_v42 }
 0x15f   : > { %7453 = vmatprep.mubr.msk.bf16.mxu0 %vm8426_vm0, %v8425_v0 }
 0x160   : > { %v7742_v20 = vcvt.f32.s32 %v7741_v61 }
 0x162   : > { %v680_v34 = vmul.u32 24, %v7742_v20  ;;  %v8922_v5 = vadd.s32 4294967295, %v7742_v20 }
 0x166   : > { %7454 = vmatmul.mubr.bf16.gmra.mrb[92].mxu0 %v7969_v10  ;;  %v7743_v10 = vtrunc.f32 %v573_v49  ;;  %v8927_v49 = vsub.s32 %v8825_v9, %v680_v34  ;;  %v526_v9 = vadd.f32 0.5, %v472_v41  ;;  %v581_v41 = vmul.f32 0.041666668, %v527_v12 }
 0x167   : > { %7457 = vmatprep.mubr.msk.bf16.mxu0 %vm8426_vm0, %v8425_v0  ;;  %v583_v34 = vmul.f32 0.041666668, %v529_v54 }
 0x168   : > { %v7744_v60 = vcvt.f32.s32 %v7743_v10  ;;  %v8967_v10 = vcvt.f32.s32 %v7749_v43  ;;  %v580_v21 = vmul.f32 0.041666668, %v526_v9 }
 0x169   : > { %v7763_v18 = vtrunc.f32 %v583_v34 }
 0x16a   : > { %v681_v42 = vmul.u32 24, %v7744_v60  ;;  %v8942_v61 = vadd.s32 4294967295, %v7744_v60  ;;  %v7757_v48 = vtrunc.f32 %v580_v21 }
 0x16c   : > { %v8965_v7 = vsub.s32 %v8831_v15, %v681_v42  ;;  %v9018_v42 = vadd.s32 160, %v8798_v58  ;;  %v9117_v9 = vcvt.f32.s32 %v7757_v48  ;;  %v9133_v48 = vadd.s32 176, %v8798_v58 }
 0x16e   : > { %7458 = vmatmul.mubr.bf16.gmra.mrb[96].mxu0 %v7971_v32  ;;  %v524_v32 = vadd.f32 0.5, %v470_v16  ;;  %13157 = vst [vmem:[#allocation21_spill] sm:$0xff] %v9018_v42  ;;  %v478_v24 = vcvt.s32.f32 %v9018_v42  ;;  %13178 = vst [vmem:[#allocation23_spill] sm:$0xff] %v9133_v48  ;;  %v9187_v34 = vadd.s32 4294967295, %v9117_v9  ;;  %v480_v28 = vcvt.s32.f32 %v9133_v48 }
 0x16f   : > { %7461 = vmatprep.mubr.msk.bf16.mxu0 %vm8426_vm0, %v8425_v0 }
 0x170   : > { %v578_v6 = vmul.f32 0.041666668, %v524_v32 }
 0x172   : > { %v7753_v53 = vtrunc.f32 %v578_v6 }
 0x174   : > { %v9033_v46 = vcvt.f32.s32 %v7753_v53 }
 0x176   : > { %7462 = vmatmul.mubr.bf16.gmra.mrb[100].mxu0 %v7974_v63  ;;  %v8948_v63 = vadd.s32 152, %v8798_v58  ;;  %v9128_v53 = vadd.s32 4294967295, %v9033_v46 }
 0x177   : > { %7465 = vmatprep.mubr.msk.bf16.mxu0 %vm8426_vm0, %v8425_v0  ;;  %v471_v0 = vcvt.s32.f32 %v8877_v59  ;;  %vm8937_vm0 = vmand %vm839_vm1, %vm893_vm2  ;;  %vm1004_vm2 = vcmp.ge.s32.totalorder %v8898_v30, 1 }
 0x178   : > { %13148 = vst [vmem:[#allocation20_spill] sm:$0xff] %v8948_v63  ;;  %vm8959_vm1 = vmand %vm840_vm3, %vm894_vm4  ;;  %v477_v32 = vcvt.s32.f32 %v8948_v63  ;;  %v13225_v63 = vmul.u32 24, %v9033_v46 }
 0x179   : > { %v525_v47 = vadd.f32 0.5, %v471_v0  ;;  %vm8979_vm3 = vmand %vm8937_vm0, %vm1001_vm5  ;;  %vm1112_vm0 = vcmp.le.s32.totalorder %v8898_v30, 16 }
 0x17a   : > { %vm8998_vm5 = vmand %vm8959_vm1, %vm1002_vm6  ;;  %vm1113_vm6 = vcmp.le.s32.totalorder %v8910_v39, 16  ;;  %v531_v12 = vadd.f32 0.5, %v477_v32 }
 0x17b   : > { %v579_v16 = vmul.f32 0.041666668, %v525_v47  ;;  %vm9009_vm4 = vmand %vm841_vm7, %vm895_vm8  ;;  %vm1006_vm7 = vcmp.ge.s32.totalorder %v8913_v1, 1  ;;  %v9046_v47 = vadd.s32 4294967295, %v8967_v10 }
 0x17c   : > { %vm9024_vm1 = vmand %vm8979_vm3, %vm1109_vm9  ;;  %vm900_vm9 = vcmp.lt.s32.totalorder %v8942_v61, 16  ;;  %v585_v54 = vmul.f32 0.041666668, %v531_v12 }
 0x17d   : > { %v7755_v6 = vtrunc.f32 %v579_v16  ;;  %vm9039_vm8 = vmand %vm8998_vm5, %vm1110_vm10  ;;  %v9221_v16 = vcvt.f32.s32 %v7763_v18 }
 0x17e   : > { %7466 = vmatmul.mubr.bf16.gmra.mrb[104].mxu0 %v7977_v37  ;;  %v9015_v37 = vcvt.f32.s32 %v7751_v11  ;;  %vm9056_vm10 = vmand %vm9009_vm4, %vm1003_vm11  ;;  %v530_v11 = vadd.f32 0.5, %v476_v31  ;;  %vm13167_vm11 = vcmp.ge.s32.totalorder %v8902_v33, 0  ;;  %vm13170_vm4 = vcmp.le.s32.totalorder %v8881_v19, 16 }
 0x17f   : > { %vm9066_vm3 = vmand %vm842_vm12, %vm896_vm13  ;;  %vm1114_vm13 = vcmp.le.s32.totalorder %v8913_v1, 16  ;;  %v9093_v21 = vcvt.f32.s32 %v7755_v6 }
 0x180   : > { %v9072_v15 = vadd.s32 4294967295, %v9015_v37  ;;  %vm9087_vm12 = vmand %vm13167_vm11, %vm897_vm15 }
 0x181   : > { %v1468_v20 = vpop.f32.mrb[0].mxu0  ;;  %vm9099_vm5 = vmand %vm9056_vm10, %vm13170_vm4  ;;  %vm1008_vm10 = vcmp.ge.s32.totalorder %v8965_v7, 1  ;;  %vm13175_vm4 = vcmp.ge.s32.totalorder %v8910_v39, 1 }
 0x182   : > { %v8992_v60 = vadd.f32 %v8953_v4, %v1468_v20  ;;  %v7363_v27 = vpop.f32.mrb[1].mxu0  ;;  %v7759_v20 = vtrunc.f32 %v581_v41  ;;  %v479_v41 = vcvt.s32.f32 %v9049_v57  ;;  %vm9112_vm11 = vmand %vm9066_vm3, %vm1004_vm2  ;;  %vm13179_vm2 = vcmp.ge.s32.totalorder %v8915_v40, 0 }
 0x183   : > { %v1471_v0 = vpop.f32.mrb[2].mxu0  ;;  %vm9123_vm15 = vmand %vm9087_vm12, %vm13175_vm4  ;;  %vm1115_vm12 = vcmp.le.s32.totalorder %v8927_v49, 16  ;;  %v9162_v40 = vadd.s32 4294967295, %v9093_v21 }
 0x184   : > { %v13050_v43 = vmax.f32 %v8992_v60, 0.0  ;;  %v9030_v44 = vadd.f32 %v8953_v4, %v1471_v0  ;;  %v7364_v45 = vpop.f32.mrb[3].mxu0  ;;  %v7761_v0 = vtrunc.f32 %v582_v50  ;;  %v584_v50 = vmul.f32 0.041666668, %v530_v11  ;;  %vm9143_vm3 = vmand %vm13179_vm2, %vm898_vm14 }
 0x185   : > { %vm9156_vm4 = vmand %vm9112_vm11, %vm1112_vm0 }
 0x186   : > { %v13049_v3 = vmax.f32 %v9030_v44, 0.0  ;;  %v1845_v25 = vsel %vm9024_vm1, %v13050_v43, 0.0  ;;  %vm9171_vm2 = vmand %vm9123_vm15, %vm1113_vm6  ;;  %vm13189_vm6 = vcmp.lt.s32.totalorder %v8922_v5, 16 }
 0x187   : > { %vm9182_vm14 = vmand %vm9143_vm3, %vm1006_vm7  ;;  %vm13190_vm7 = vcmp.ge.s32.totalorder %v8922_v5, 0  ;;  %vm13193_vm3 = vcmp.ge.s32.totalorder %v8942_v61, 0  ;;  %v13197_v61 = vmul.u32 24, %v8967_v10 }
 0x188   : > { %v1846_v23 = vsel %vm9039_vm8, %v13049_v3, 0.0  ;;  %v533_v3 = vadd.f32 0.5, %v479_v41  ;;  %vm9203_vm15 = vmand %vm13190_vm7, %vm13189_vm6  ;;  %vm1009_vm6 = vcmp.ge.s32.totalorder %v8971_v13, 1 }
 0x189   : > { %v1899_v31 = vpack.c.bf16 %v1846_v23, %v1845_v25  ;;  %v1476_v33 = vpop.f32.mrb[4].mxu0  ;;  %vm9215_vm0 = vmand %vm13193_vm3, %vm900_vm9 }
 0x18a   : > { %v9106_v45 = vadd.f32 %v8953_v4, %v1476_v33  ;;  %v7367_v6 = vpop.f32.mrb[5].mxu0  ;;  %v9130_v33 = vcvt.f32.s32 %v7759_v20  ;;  %v7767_v20 = vtrunc.f32 %v585_v54  ;;  %v9223_v35 = vmul.f32 0.041666668, %v533_v3  ;;  %vm9245_vm9 = vmand %vm9182_vm14, %vm1114_vm13 }
 0x18b   : > { %6882 = vst [vmem:[#allocation2] sm:$0xff] %v1899_v31   ;;  %v1479_v25 = vpop.f32.mrb[6].mxu0  ;;  %v532_v6 = vadd.f32 0.5, %v478_v24  ;;  %v9150_v24 = vadd.s32 184, %v8798_v58  ;;  %v13200_v3 = vmov 0  ;;  %vm13204_vm13 = vcmp.ge.s32.totalorder %v8927_v49, 1  ;;  %vm9276_vm11 = vmand %vm9215_vm0, %vm1008_vm10 }
 0x18c   : > { %v13051_v11 = vmax.f32 %v9106_v45, 0.0  ;;  %v9137_v12 = vadd.f32 %v8953_v4, %v1479_v25  ;;  %v7368_v31 = vpop.f32.mrb[7].mxu0  ;;  %v9239_v18 = vcvt.f32.s32 %v7767_v20  ;;  %v13201_v3 = vsel %vm9245_vm9, 4294967295, %v13200_v3  ;;  %vm9264_vm14 = vmand %vm9203_vm15, %vm13204_vm13 }
 0x18d   : > { %13182 = vst [vmem:[#allocation24_spill] sm:$0xff] %v9150_v24  ;;  %v9164_v31 = vcvt.f32.s32 %v7761_v0  ;;  %v7765_v0 = vtrunc.f32 %v584_v50  ;;  %v586_v23 = vmul.f32 0.041666668, %v532_v6  ;;  %v9208_v6 = vadd.s32 4294967295, %v9130_v33  ;;  %vm9300_vm0 = vmand %vm9264_vm14, %vm1115_vm12 }
 0x18e   : > { %v13052_v43 = vmax.f32 %v9137_v12, 0.0  ;;  %v1847_v50 = vsel %vm9099_vm5, %v13051_v11, 0.0  ;;  %v481_v41 = vcvt.s32.f32 %v9150_v24  ;;  %13199 = vst [vmem:[#allocation27_spill] sm:$0xff] %v9239_v18  ;;  %vm13216_vm12 = vcmp.le.s32.totalorder %v8965_v7, 16 }
 0x18f   : > { %v9237_v5 = vcvt.f32.s32 %v7765_v0  ;;  %v7769_v20 = vtrunc.f32 %v586_v23  ;;  %v9283_v27 = vadd.s32 4294967295, %v9164_v31  ;;  %vm9322_vm13 = vmand %vm9276_vm11, %vm13216_vm12  ;;  %vm13219_vm14 = vcmp.lt.s32.totalorder %v8973_v14, 16 }
 0x190   : > { %v1848_v54 = vsel %vm9156_vm4, %v13052_v43, 0.0  ;;  %v7771_v43 = vtrunc.f32 %v9223_v35  ;;  %vm13220_vm10 = vcmp.ge.s32.totalorder %v8973_v14, 0  ;;  %vm13229_vm11 = vcmp.lt.s32.totalorder %v8988_v22, 16 }
 0x191   : > { %v1900_v19 = vpack.c.bf16 %v1848_v54, %v1847_v50  ;;  %v1484_v11 = vpop.f32.mrb[8].mxu0  ;;  %v9233_v54 = vsub.s32 %v8847_v38, %v13197_v61  ;;  %13198 = vst [vmem:[#allocation26_spill] sm:$0xff] %v9237_v5  ;;  %v13202_v38 = vmul.u32 24, %v9015_v37  ;;  %v9270_v37 = vadd.s32 192, %v8798_v58  ;;  %vm9333_vm15 = vmand %vm13220_vm10, %vm13219_vm14 }
 0x192   : > { %v9226_v24 = vadd.f32 %v8953_v4, %v1484_v11  ;;  %v7371_v50 = vpop.f32.mrb[9].mxu0  ;;  %v9235_v48 = vld [vmem:[#allocation2] sm:$0xff]   ;;  %v9287_v61 = vadd.s32 4294967295, %v9221_v16  ;;  %v9307_v1 = vcvt.f32.s32 %v7769_v20  ;;  %v9364_v62 = vcvt.f32.s32 %v7771_v43  ;;  %vm9374_vm14 = vmand %vm9333_vm15, %vm1009_vm6 }
 0x193   : > { %7133 = vst [vmem:[#allocation2 + $0x8] sm:$0xff] %v1900_v19   ;;  %2171 = vst [vmem:[#allocation3 + $0x18] sm:$0xff] %v1900_v19  ;;  %v1487_v10 = vpop.f32.mrb[10].mxu0  ;;  %v9254_v11 = vsub.s32 %v8855_v51, %v13202_v38  ;;  %v534_v19 = vadd.f32 0.5, %v480_v28  ;;  %v535_v51 = vadd.f32 0.5, %v481_v41  ;;  %v2394_v23 = vshll.u32 %v9235_v48, 16 }
 0x194   : > { %13196 = vst [vmem:[#allocation25_spill] sm:$0xff] %v9226_v24  ;;  %v9258_v0 = vadd.f32 %v8953_v4, %v1487_v10  ;;  %v7372_v39 = vpop.f32.mrb[11].mxu0  ;;  %13207 = vst [vmem:[#allocation29_spill] sm:$0xff] %v9270_v37  ;;  %v9293_v38 = vadd.s32 4294967295, %v9237_v5  ;;  %v9305_v10 = vadd.s32 4294967295, %v9239_v18  ;;  %v13214_v42 = vmax.f32 %v9226_v24, 0.0 }
 0x195   : > { %v588_v57 = vmul.f32 0.041666668, %v534_v19  ;;  %v7997_v35 = vld [vmem:[#allocation2] sm:$0xfe]   ;;  %v9326_v19 = vmul.f32 0.041666668, %v535_v51  ;;  %v9357_v18 = vsub.s32 %v8860_v56, %v13225_v63 }
 0x196   : > { %13203 = vst [vmem:[#allocation28_spill] sm:$0xff] %v9258_v0  ;;  %13210 = vst [vmem:[#allocation30_spill] sm:$0xff] %v9293_v38  ;;  %v1849_v39 = vsel %vm9171_vm2, %v13214_v42, 0.0  ;;  %v13215_v49 = vmax.f32 %v9258_v0, 0.0  ;;  %v2396_v7 = vrot.slane %v2394_v23, 1  ;;  %v9340_v51 = vadd.s32 200, %v8798_v58 }
 0x197   : > { %13213 = vst [vmem:[#allocation31_spill] sm:$0xff] %v9305_v10  ;;  %v482_v10 = vcvt.s32.f32 %v9270_v37  ;;  %v9343_v28 = vadd.s32 208, %v8798_v58  ;;  %v7773_v5 = vtrunc.f32 %v588_v57  ;;  %v2859_v63 = vrot.slane %v7997_v35, 1 }
 0x198   : > { %v1850_v50 = vsel %vm9245_vm9, %v13215_v49, 0.0  ;;  %13223 = vst [vmem:[#allocation32_spill] sm:$0xff] %v9340_v51  ;;  %vm13230_vm12 = vcmp.ge.s32.totalorder %v8988_v22, 0  ;;  %v2392_v57 = vshrl.u32 %v9235_v48, 16  ;;  %vm13233_vm10 = vcmask 1046528  }
 0x199   : > { %v1901_v38 = vpack.c.bf16 %v1850_v50, %v1849_v39  ;;  %v1492_v42 = vpop.f32.mrb[12].mxu0  ;;  %13224 = vst [vmem:[#allocation33_spill] sm:$0xff] %v9343_v28  ;;  %vm9384_vm3 = vmand %vm13230_vm12, %vm13229_vm11  ;;  %v536_v43 = vadd.f32 0.5, %v482_v10  ;;  %vm13234_vm11 = vcmp.lt.s32.totalorder %v9046_v47, 16  ;;  %vm13235_vm12 = vcmp.ge.s32.totalorder %v9046_v47, 0 }
 0x19a   : > { %v9346_v39 = vadd.f32 %v8953_v4, %v1492_v42  ;;  %v7375_v50 = vpop.f32.mrb[13].mxu0  ;;  %v9349_v14 = vld [vmem:[#allocation2 + $0x8] sm:$0xff]   ;;  %v13226_v42 = vmul.u32 24, %v9093_v21  ;;  %vm9401_vm7 = vmand %vm13235_vm12, %vm13234_vm11  ;;  %vm906_vm15 = vcmp.lt.s32.totalorder %v9162_v40, 16  ;;  %v9408_v10 = vadd.s32 4294967295, %v9307_v1 }
 0x19b   : > { %7134 = vst [vmem:[#allocation2 + $0x10] sm:$0xff] %v1901_v38   ;;  %2172 = vst [vmem:[#allocation3 + $0x30] sm:$0xff] %v1901_v38  ;;  %v1495_v23 = vpop.f32.mrb[14].mxu0  ;;  %v9352_v37 = vld [vmem:[#allocation2 + $0x8] sm:$0xff]   ;;  %v7775_v49 = vtrunc.f32 %v9326_v19  ;;  %vm13238_vm9 = vcmp.le.s32.totalorder %v8971_v13, 16  ;;  %v2397_v47 = vor.u32 %v2396_v7, %v2392_v57  ;;  %v484_v56 = vcvt.s32.f32 %v9343_v28 }
 0x19c   : > { %v9362_v50 = vsub.s32 %v8877_v59, %v13226_v42  ;;  %v13068_v38 = vmax.f32 %v9346_v39, 0.0  ;;  %v9368_v0 = vadd.f32 %v8953_v4, %v1495_v23  ;;  %v7376_v24 = vpop.f32.mrb[15].mxu0  ;;  %v13069_v59 = vrot.slane %v9349_v14, 1 }
 0x19d   : > { %v2399_v21 = vshll.u32 %v9352_v37, 16  ;;  %v9420_v24 = vcvt.f32.s32 %v7773_v5  ;;  %v483_v5 = vcvt.s32.f32 %v9340_v51  ;;  %vm13244_vm11 = vcmp.ge.s32.totalorder %v9233_v54, 1 }
 0x19e   : > { %v13067_v35 = vmax.f32 %v9368_v0, 0.0  ;;  %v2861_v22 = vsel %vm13233_vm10, %v2859_v63, %v13069_v59  ;;  %vm9415_vm10 = vmand %vm9374_vm14, %vm13238_vm9  ;;  %v1851_v19 = vsel %vm9300_vm0, %v13068_v38, 0.0  ;;  %vm13241_vm9 = vcmp.ge.s32.totalorder %v8986_v17, 1  ;;  %v13336_v30 = vld [vmem:[#allocation31_spill] sm:$0xff] }
 0x19f   : > { %7485 = vmatprep.mubr.bf16.mxu0 %v2861_v22  ;;  %v2401_v42 = vrot.slane %v2399_v21, 1  ;;  %vm9434_vm14 = vmand %vm9384_vm3, %vm13241_vm9  ;;  %vm13247_vm6 = vsmask.f32 7424  ;;  %v9451_v38 = vadd.s32 4294967295, %v9364_v62  ;;  %v9453_v63 = vmul.f32 0.041666668, %v536_v43 }
 0x1a0   : > { %v1852_v13 = vsel %vm9322_vm13, %v13067_v35, 0.0  ;;  %vm9444_vm12 = vmand %vm9401_vm7, %vm13244_vm11  ;;  %v8008_v35 = vld [vmem:[#allocation10 + $0x8] sm:$0xff]   ;;  %v9459_v48 = vcvt.f32.s32 %v7775_v49  ;;  %v13248_v43 = vmax.f32 %v8992_v60, 0.0  ;;  %v13250_v49 = vmul.u32 24, %v9117_v9 }
 0x1a1   : > { %v1902_v57 = vpack.c.bf16 %v1852_v13, %v1851_v19  ;;  %v1500_v21 = vpop.f32.mrb[16].mxu0  ;;  %v2402_v46 = vsel %vm13247_vm6, %v2397_v47, %v2401_v42  ;;  %vm8141_vm7 = vmpackc.low %vm9039_vm8, %vm9024_vm1  ;;  %v13251_v8 = vmul.u32 24, %v9130_v33  ;;  %v13252_v60 = vmul.u32 24, %v9164_v31 }
 0x1a2   : > { %v9456_v19 = vadd.f32 %v8953_v4, %v1500_v21  ;;  %3328 = vmatprep.mubr.bf16.mxu1 %v2402_v46  ;;  %v9461_v13 = vld [vmem:[#allocation2 + $0x10] sm:$0xff]   ;;  %v7379_v47 = vpop.f32.mrb[17].mxu0  ;;  %v13249_v21 = vmax.f32 %v9030_v44, 0.0  ;;  %vm13253_vm1 = vcmp.lt.s32.totalorder %v9072_v15, 16  ;;  %vm13254_vm8 = vcmp.ge.s32.totalorder %v9072_v15, 0 }
 0x1a3   : > { %7135 = vst [vmem:[#allocation2 + $0x18] sm:$0xff] %v1902_v57   ;;  %2173 = vst [vmem:[#allocation3 + $0x48] sm:$0xff] %v1902_v57  ;;  %v9471_v46 = vld [vmem:[#allocation2 + $0x10] sm:$0xff]   ;;  %v9477_v57 = vsub.s32 %v8887_v26, %v13250_v49  ;;  %v9482_v2 = vsub.s32 %v8893_v29, %v13251_v8  ;;  %v9487_v44 = vsub.s32 %v8905_v36, %v13252_v60  ;;  %v1503_v47 = vpop.f32.mrb[18].mxu0  ;;  %v2403_v29 = vshrl.u32 %v9352_v37, 16 }
 0x1a4   : > { %v8142_v59 = vpack.c.bf16 %v13249_v21, %v13248_v43  ;;  %vm9494_vm11 = vmand %vm13254_vm8, %vm13253_vm1  ;;  %v537_v36 = vadd.f32 0.5, %v483_v5  ;;  %v538_v9 = vadd.f32 0.5, %v484_v56  ;;  %v9503_v33 = vadd.s32 216, %v8798_v58  ;;  %v7380_v5 = vpop.f32.mrb[19].mxu0  ;;  %v8015_v43 = vld [vmem:[#allocation10 + $0x10] sm:$0xff]   ;;  %v8045_v21 = vld [vmem:[#allocation9 + $0xc0] sm:$0xff]  }
 0x1a5   : > { %v13072_v31 = vrot.slane %v9461_v13, 1  ;;  %v13071_v15 = vmax.f32 %v9456_v19, 0.0  ;;  %vm13258_vm1 = vcmp.le.s32.totalorder %v8986_v17, 16  ;;  %v9516_v37 = vadd.f32 %v8953_v4, %v1503_v47 }
 0x1a6   : > { %8143 = vmatmul.mubr.msk.bf16.vlgmr.msra.gmra.mrb[0].mxu1 %vm8141_vm7, %v8142_v59  ;;  %13257 = vst [vmem:[#allocation34_spill] sm:$0xff] %v9503_v33  ;;  %vm9511_vm8 = vmand %vm9434_vm14, %vm13258_vm1  ;;  %v2407_v56 = vshll.u32 %v9471_v46, 16  ;;  %vm13261_vm6 = vcmp.le.s32.totalorder %v9233_v54, 16  ;;  %v9530_v7 = vadd.s32 4294967295, %v9420_v24  ;;  %v7777_v8 = vtrunc.f32 %v9453_v63 }
 0x1a7   : > { %7534 = vmatpush3.bf16.msra.mxu1 %v8783_v52  ;;  %vm9524_vm9 = vmand %vm9444_vm12, %vm13261_vm6  ;;  %v9535_v60 = vadd.s32 224, %v8798_v58  ;;  %v13070_v54 = vmax.f32 %v9516_v37, 0.0  ;;  %vm13265_vm1 = vcmp.ge.s32.totalorder %v9254_v11, 1  ;;  %v13268_v47 = vrot.slane %v9349_v14, 1 }
 0x1a8   : > { %7535 = vmatprep.subr.bf16.mxu1 %v8008_v35  ;;  %vm9542_vm12 = vmand %vm9494_vm11, %vm13265_vm1  ;;  %vm13269_vm6 = vcmask 1046528   ;;  %v2405_v63 = vor.u32 %v2403_v29, %v2401_v42  ;;  %v9551_v49 = vrot.slane %v2407_v56, 1  ;;  %vm13270_vm7 = vcmp.lt.s32.totalorder %v9128_v53, 16 }
 0x1a9   : > { %13264 = vst [vmem:[#allocation35_spill] sm:$0xff] %v9535_v60  ;;  %v2863_v5 = vsel %vm13269_vm6, %v13268_v47, %v13072_v31  ;;  %vm13271_vm11 = vcmp.ge.s32.totalorder %v9128_v53, 0  ;;  %v9563_v14 = vadd.s32 4294967295, %v9459_v48  ;;  %v9565_v47 = vmul.f32 0.041666668, %v537_v36  ;;  %v8049_v36 = vld [vmem:[#allocation9 + $0xd0] sm:$0xff]  }
 0x1aa   : > { %2942 = vst [vmem:[#allocation3 + $0x28] sm:$0xff] %v2863_v5  ;;  %7486 = vmatmul.mubr.bf16.vlgmr.msra.gmra.mrb[108].mxu0 %v2863_v5  ;;  %vm9558_vm1 = vmand %vm13271_vm11, %vm13270_vm7  ;;  %v9567_v42 = vmul.f32 0.041666668, %v538_v9  ;;  %v485_v29 = vcvt.s32.f32 %v9503_v33  ;;  %v1853_v56 = vsel %vm9415_vm10, %v13071_v15, 0.0  ;;  %v1854_v53 = vsel %vm9511_vm8, %v13070_v54, 0.0  ;;  %v8028_v9 = vld [vmem:[#allocation10 + $0x18] sm:$0xff]  }
 0x1ab   : > { %7536 = vmatpush3.bf16.msra.mxu1 %v8008_v35  ;;  %v1508_v35 = vpop.f32.mrb[20].mxu0  ;;  %vm13274_vm7 = vsmask.f32 7424  ;;  %vm13275_vm6 = vcmp.ge.s32.totalorder %v9162_v40, 0  ;;  %vm908_vm3 = vcmp.lt.s32.totalorder %v9208_v6, 16  ;;  %v9591_v54 = vadd.s32 232, %v8798_v58  ;;  %4727 = vmatpush1.bf16.msra.mxu0 %v8045_v21 }
 0x1ac   : > { %v2410_v5 = vsel %vm13274_vm7, %v2405_v63, %v9551_v49  ;;  %vm9584_vm11 = vmand %vm13275_vm6, %vm906_vm15  ;;  %7537 = vmatprep.subr.bf16.mxu1 %v8015_v43  ;;  %v8048_v15 = vld [vmem:[#allocation9 + $0xc8] sm:$0xff]   ;;  %v1903_v63 = vpack.c.bf16 %v1854_v53, %v1853_v56  ;;  %v9594_v59 = vadd.f32 %v8953_v4, %v1508_v35  ;;  %v7383_v40 = vpop.f32.mrb[21].mxu0  ;;  %v486_v33 = vcvt.s32.f32 %v9535_v60 }
 0x1ad   : > { %13278 = vst [vmem:[#allocation36_spill] sm:$0xff] %v9591_v54  ;;  %2639 = vst [vmem:[#allocation3 + $0x20] sm:$0xff] %v2410_v5  ;;  %3336 = vmatprep.mubr.bf16.mxu1 %v2410_v5  ;;  %v9596_v31 = vld [vmem:[#allocation2 + $0x18] sm:$0xff]   ;;  %v13279_v28 = vmov 0   ;;  %v1511_v51 = vpop.f32.mrb[22].mxu0  ;;  %v13280_v21 = vmax.f32 %v9106_v45, 0.0  ;;  %v9618_v60 = vcvt.f32.s32 %v7777_v8  ;;  %v7779_v25 = vtrunc.f32 %v9565_v47 }
 0x1ae   : > { %4728 = vmatprep.subr.bf16.mxu0 %v13279_v28  ;;  %vm8144_vm6 = vmpackc.low %vm9156_vm4, %vm9099_vm5  ;;  %v13281_v56 = vmax.f32 %v9137_v12, 0.0  ;;  %v9611_v35 = vld [vmem:[#allocation2 + $0x18] sm:$0xff]   ;;  %v13282_v5 = vmul.u32 24, %v9221_v16  ;;  %7136 = vst [vmem:[#allocation2 + $0x20] sm:$0xff] %v1903_v63   ;;  %v13078_v32 = vmax.f32 %v9594_v59, 0.0  ;;  %vm13283_vm5 = vcmp.le.s32.totalorder %v9254_v11, 16 }
 0x1af   : > { %2174 = vst [vmem:[#allocation3 + $0x60] sm:$0xff] %v1903_v63  ;;  %vm9625_vm4 = vmand %vm9542_vm12, %vm13283_vm5  ;;  %v9630_v12 = vadd.f32 %v8953_v4, %v1511_v51  ;;  %v7384_v16 = vpop.f32.mrb[23].mxu0  ;;  %7538 = vmatpush3.bf16.msra.mxu1 %v8015_v43  ;;  %vm13286_vm15 = vcmp.ge.s32.totalorder %v9357_v18, 1  ;;  %v2411_v8 = vshrl.u32 %v9471_v46, 16  ;;  %v2415_v51 = vshll.u32 %v9611_v35, 16  ;;  %v8035_v43 = vld [vmem:[#allocation10 + $0x20] sm:$0xff]   ;;  %4729 = vmatpush1.bf16.msra.mxu0 %v8048_v15 }
 0x1b0   : > { %v8145_v53 = vpack.c.bf16 %v13281_v56, %v13280_v21  ;;  %v9616_v40 = vsub.s32 %v8931_v55, %v13282_v5  ;;  %v13079_v55 = vrot.slane %v9596_v31, 1  ;;  %vm9639_vm7 = vmand %vm9558_vm1, %vm13286_vm15  ;;  %v7781_v22 = vtrunc.f32 %v9567_v42  ;;  %7539 = vmatprep.subr.bf16.mxu1 %v8028_v9  ;;  %4730 = vmatprep.subr.bf16.mxu0 %v13279_v28 }
 0x1b1   : > { %v539_v63 = vadd.f32 0.5, %v485_v29  ;;  %v13077_v47 = vmax.f32 %v9630_v12, 0.0  ;;  %vm13289_vm5 = vcmp.ge.s32.totalorder %v9362_v50, 1  ;;  %v13292_v46 = vrot.slane %v9461_v13, 1  ;;  %v13314_v13 = vld [vmem:[#allocation25_spill] sm:$0xff] }
 0x1b2   : > { %8146 = vmatmul.mubr.msk.bf16.gmra.mrb[4].mxu1 %vm8144_vm6, %v8145_v53  ;;  %vm9652_vm1 = vmand %vm9584_vm11, %vm13289_vm5  ;;  %vm13293_vm15 = vcmask 1046528   ;;  %v540_v15 = vadd.f32 0.5, %v486_v33  ;;  %v487_v29 = vcvt.s32.f32 %v9591_v54  ;;  %vm13294_vm11 = vcmp.lt.s32.totalorder %v9187_v34, 16  ;;  %v13320_v33 = vld [vmem:[#allocation19_spill] sm:$0xff] }
 0x1b3   : > { %v2865_v42 = vsel %vm13293_vm15, %v13292_v46, %v13079_v55  ;;  %vm13295_vm5 = vcmp.ge.s32.totalorder %v9187_v34, 0  ;;  %v2413_v21 = vor.u32 %v2411_v8, %v9551_v49  ;;  %v9674_v56 = vrot.slane %v2415_v51, 1  ;;  %7540 = vmatpush3.bf16.msra.mxu1 %v8028_v9  ;;  %v1516_v46 = vpop.f32.mrb[24].mxu0  ;;  %4731 = vmatpush1.bf16.msra.mxu0 %v8049_v36  ;;  %v13318_v36 = vld [vmem:[#allocation26_spill] sm:$0xff] }
 0x1b4   : > { %2943 = vst [vmem:[#allocation3 + $0x40] sm:$0xff] %v2865_v42  ;;  %7489 = vmatprep.mubr.bf16.mxu0 %v2865_v42  ;;  %vm9669_vm14 = vmand %vm13295_vm5, %vm13294_vm11  ;;  %v9678_v53 = vadd.s32 4294967295, %v9618_v60  ;;  %v1855_v5 = vsel %vm9524_vm9, %v13078_v32, 0.0  ;;  %v1856_v34 = vsel %vm9625_vm4, %v13077_v47, 0.0  ;;  %vm13298_vm15 = vcmp.le.s32.totalorder %v9357_v18, 16  ;;  %7541 = vmatprep.subr.bf16.mxu1 %v8035_v43  ;;  %v8042_v42 = vld [vmem:[#allocation10 + $0x28] sm:$0xff]  }
 0x1b5   : > { %vm9692_vm11 = vmand %vm9639_vm7, %vm13298_vm15  ;;  %v13299_v49 = vmov 0  ;;  %v9696_v16 = vcvt.f32.s32 %v7779_v25  ;;  %v9699_v8 = vadd.s32 240, %v8798_v58  ;;  %v1904_v51 = vpack.c.bf16 %v1856_v34, %v1855_v5  ;;  %v8052_v34 = vld [vmem:[#allocation9 + $0xd8] sm:$0xff]   ;;  %4732 = vmatprep.subr.bf16.mxu0 %v13279_v28 }
 0x1b6   : > { %v13300_v49 = vsel %vm9692_vm11, 4294967295, %v13299_v49  ;;  %vm13303_vm5 = vcmp.le.s32.totalorder %v9362_v50, 16  ;;  %v13304_v18 = vmov 0  ;;  %vm13307_vm7 = vsmask.f32 7424  ;;  %v7387_v50 = vpop.f32.mrb[25].mxu0 }
 0x1b7   : > { %13301 = vst [vmem:[#allocation37_spill] sm:$0xff] %v13300_v49  ;;  %13302 = vst [vmem:[#allocation38_spill] sm:$0xff] %v9699_v8  ;;  %v2418_v11 = vsel %vm13307_vm7, %v2413_v21, %v9674_v56  ;;  %v9712_v25 = vcvt.f32.s32 %v7781_v22  ;;  %v9714_v9 = vmul.f32 0.041666668, %v539_v63  ;;  %v9717_v5 = vadd.f32 %v8953_v4, %v1516_v46  ;;  %v1519_v46 = vpop.f32.mrb[26].mxu0  ;;  %v13316_v50 = vld [vmem:[#allocation28_spill] sm:$0xff]  ;;  %7542 = vmatpush3.bf16.msra.mxu1 %v8035_v43 }
 0x1b8   : > { %vm9705_vm12 = vmand %vm9652_vm1, %vm13303_vm5  ;;  %vm13309_vm1 = vcmp.ge.s32.totalorder %v9477_v57, 1  ;;  %2640 = vst [vmem:[#allocation3 + $0x38] sm:$0xff] %v2418_v11  ;;  %3344 = vmatprep.mubr.bf16.mxu1 %v2418_v11  ;;  %v9728_v22 = vmul.f32 0.041666668, %v540_v15  ;;  %v541_v63 = vadd.f32 0.5, %v487_v29  ;;  %v9731_v21 = vadd.s32 248, %v8798_v58  ;;  %7543 = vmatprep.subr.bf16.mxu1 %v8042_v42 }
 0x1b9   : > { %v13305_v18 = vsel %vm9705_vm12, 4294967295, %v13304_v18  ;;  %13308 = vst [vmem:[#allocation40_spill] sm:$0xff] %v9717_v5  ;;  %vm9723_vm5 = vmand %vm9669_vm14, %vm13309_vm1  ;;  %vm13313_vm14 = vnez %v13201_v3  ;;  %v13315_v11 = vmax.f32 %v13314_v13, 0.0  ;;  %v13317_v47 = vmax.f32 %v13316_v50, 0.0  ;;  %v9741_v29 = vld [vmem:[#allocation2 + $0x20] sm:$0xff]   ;;  %v7388_v13 = vpop.f32.mrb[27].mxu0  ;;  %4733 = vmatpush1.bf16.msra.mxu0 %v8052_v34 }
 0x1ba   : > { %13306 = vst [vmem:[#allocation39_spill] sm:$0xff] %v13305_v18  ;;  %13312 = vst [vmem:[#allocation41_spill] sm:$0xff] %v9731_v21  ;;  %v13319_v32 = vmul.u32 24, %v13318_v36  ;;  %v9752_v3 = vadd.f32 %v8953_v4, %v1519_v46  ;;  %v13083_v46 = vrot.slane %v9741_v29, 1  ;;  %vm13328_vm7 = vcmp.lt.s32.totalorder %v9283_v27, 16  ;;  %v9778_v36 = vld [vmem:[#allocation2 + $0x20] sm:$0xff]   ;;  %4734 = vmatprep.subr.bf16.mxu0 %v13279_v28 }
 0x1bb   : > { %7137 = vst [vmem:[#allocation2 + $0x28] sm:$0xff] %v1904_v51   ;;  %2175 = vst [vmem:[#allocation3 + $0x78] sm:$0xff] %v1904_v51  ;;  %v8148_v15 = vpack.c.bf16 %v13317_v47, %v13315_v11  ;;  %v13327_v11 = vld [vmem:[#allocation20_spill] sm:$0xff]  ;;  %vm13329_vm15 = vcmp.ge.s32.totalorder %v9283_v27, 0  ;;  %v13332_v13 = vld [vmem:[#allocation30_spill] sm:$0xff]  ;;  %v9784_v43 = vadd.s32 4294967295, %v9696_v16  ;;  %v7785_v34 = vtrunc.f32 %v9728_v22  ;;  %7544 = vmatpush3.bf16.msra.mxu1 %v8042_v42 }
 0x1bc   : > { %vm8147_vm1 = vmpackc.low %vm13313_vm14, %vm9171_vm2  ;;  %v9747_v51 = vsub.s32 %v13320_v33, %v13319_v32  ;;  %13321 = vst [vmem:[#allocation25_spill] sm:$0xff] %v9752_v3  ;;  %vm13322_vm2 = vcmp.ge.s32.totalorder %v9208_v6, 0  ;;  %v13325_v32 = vld [vmem:[#allocation27_spill] sm:$0xff]  ;;  %v9800_v55 = vadd.s32 4294967295, %v9712_v25  ;;  %vm13338_vm6 = vcmp.ge.s32.totalorder %v9482_v2, 1  ;;  %v8057_v6 = vld [vmem:[#allocation9 + $0xe8] sm:$0xff]  }
 0x1bd   : > { %8149 = vmatmul.mubr.msk.bf16.gmra.mrb[8].mxu1 %vm8147_vm1, %v8148_v15  ;;  %vm9758_vm14 = vmand %vm13322_vm2, %vm908_vm3  ;;  %v13326_v33 = vmul.u32 24, %v13325_v32  ;;  %v488_v15 = vcvt.s32.f32 %v9699_v8  ;;  %v8053_v27 = vld [vmem:[#allocation9 + $0xe0] sm:$0xff]   ;;  %v13341_v26 = vrot.slane %v9596_v31, 1  ;;  %v2419_v8 = vshrl.u32 %v9611_v35, 16 }
 0x1be   : > { %vm9774_vm3 = vmand %vm13329_vm15, %vm13328_vm7  ;;  %vm13333_vm15 = vcmp.le.s32.totalorder %v9477_v57, 16  ;;  %13337 = vst [vmem:[#allocation28_spill] sm:$0xff] %v9800_v55  ;;  %v13343_v47 = vmax.f32 %v9717_v5, 0.0  ;;  %v13344_v55 = vmax.f32 %v9752_v3, 0.0  ;;  %vm13349_vm2 = vcmp.ge.s32.totalorder %v9287_v61, 0  ;;  %4735 = vmatpush1.bf16.msra.mxu0 %v8053_v27 }
 0x1bf   : > { %v9766_v50 = vsub.s32 %v13327_v11, %v13326_v33  ;;  %v7783_v33 = vtrunc.f32 %v9714_v9  ;;  %vm9792_vm7 = vmand %vm9723_vm5, %vm13333_vm15  ;;  %v9802_v9 = vmul.f32 0.041666668, %v541_v63  ;;  %vm13342_vm15 = vcmask 1046528   ;;  %4736 = vmatprep.subr.bf16.mxu0 %v13279_v28 }
 0x1c0   : > { %vm9808_vm5 = vmand %vm9758_vm14, %vm13338_vm6  ;;  %v2867_v32 = vsel %vm13342_vm15, %v13341_v26, %v13083_v46  ;;  %v2423_v63 = vshll.u32 %v9778_v36, 16  ;;  %v1857_v54 = vsel %vm9692_vm11, %v13343_v47, 0.0  ;;  %v1858_v31 = vsel %vm9705_vm12, %v13344_v55, 0.0  ;;  %v1524_v46 = vpop.f32.mrb[28].mxu0 }
 0x1c1   : > { %2944 = vst [vmem:[#allocation3 + $0x58] sm:$0xff] %v2867_v32  ;;  %7490 = vmatmul.mubr.bf16.gmra.mrb[112].mxu0 %v2867_v32  ;;  %vm13345_vm6 = vcmp.ge.s32.totalorder %v9487_v44, 1  ;;  %v542_v22 = vadd.f32 0.5, %v488_v15  ;;  %v489_v26 = vcvt.s32.f32 %v9731_v21  ;;  %v1905_v47 = vpack.c.bf16 %v1858_v31, %v1857_v54  ;;  %v7391_v42 = vpop.f32.mrb[29].mxu0 }
 0x1c2   : > { %vm9833_vm14 = vmand %vm9774_vm3, %vm13345_vm6  ;;  %v2421_v3 = vor.u32 %v2419_v8, %v9674_v56  ;;  %v2425_v5 = vrot.slane %v2423_v63, 1  ;;  %vm13348_vm15 = vcmp.lt.s32.totalorder %v9287_v61, 16  ;;  %v9849_v15 = vadd.s32 256, %v8798_v58  ;;  %v9854_v56 = vld [vmem:[#allocation2 + $0x28] sm:$0xff]   ;;  %v1527_v31 = vpop.f32.mrb[30].mxu0  ;;  %4737 = vmatpush1.bf16.msra.mxu0 %v8057_v6 }
 0x1c3   : > { %vm9843_vm1 = vmand %vm13349_vm2, %vm13348_vm15  ;;  %v9852_v54 = vadd.f32 %v8953_v4, %v1524_v46  ;;  %v13352_v61 = vmul.u32 24, %v9307_v1  ;;  %v13353_v8 = vld [vmem:[#allocation21_spill] sm:$0xff]  ;;  %v9862_v63 = vcvt.f32.s32 %v7783_v33  ;;  %7138 = vst [vmem:[#allocation2 + $0x30] sm:$0xff] %v1905_v47   ;;  %vm13354_vm2 = vsmask.f32 7424  ;;  %v13356_v1 = vld [vmem:[#allocation22_spill] sm:$0xff]  ;;  %4738 = vmatprep.subr.bf16.mxu0 %v13279_v28 }
 0x1c4   : > { %2176 = vst [vmem:[#allocation3 + $0x90] sm:$0xff] %v1905_v47  ;;  %v2426_v21 = vsel %vm13354_vm2, %v2421_v3, %v2425_v5  ;;  %v9865_v46 = vld [vmem:[#allocation2 + $0x28] sm:$0xff]   ;;  %v13355_v42 = vmul.u32 24, %v9364_v62  ;;  %v13357_v33 = vmul.u32 24, %v9420_v24  ;;  %v9879_v47 = vcvt.f32.s32 %v7785_v34  ;;  %v7392_v49 = vpop.f32.mrb[31].mxu0 }
 0x1c5   : > { %v9860_v32 = vsub.s32 %v13353_v8, %v13352_v61  ;;  %v13358_v61 = vld [vmem:[#allocation23_spill] sm:$0xff]  ;;  %v13091_v3 = vmax.f32 %v9852_v54, 0.0  ;;  %v9884_v8 = vadd.f32 %v8953_v4, %v1527_v31  ;;  %2641 = vst [vmem:[#allocation3 + $0x50] sm:$0xff] %v2426_v21  ;;  %3352 = vmatprep.mubr.bf16.mxu1 %v2426_v21  ;;  %vm13359_vm2 = vcmp.ge.s32.totalorder %v9616_v40, 1 }
 0x1c6   : > { %v9872_v18 = vsub.s32 %v13356_v1, %v13355_v42  ;;  %v9877_v27 = vsub.s32 %v13358_v61, %v13357_v33  ;;  %vm9890_vm15 = vmand %vm9843_vm1, %vm13359_vm2  ;;  %v2868_v24 = vrot.slane %v9854_v56, 1  ;;  %v543_v34 = vadd.f32 0.5, %v489_v26  ;;  %v8062_v56 = vld [vmem:[#allocation9 + $0x100] sm:$0xff]  }
 0x1c7   : > { %vm13362_vm6 = vcmp.le.s32.totalorder %v9482_v2, 16  ;;  %vm8150_vm1 = vmpackc.low %vm9322_vm13, %vm9300_vm0  ;;  %v13365_v49 = vmax.f32 %v9346_v39, 0.0  ;;  %v13366_v21 = vmax.f32 %v9368_v0, 0.0  ;;  %v2427_v26 = vshrl.u32 %v9778_v36, 16 }
 0x1c8   : > { %vm9900_vm12 = vmand %vm9808_vm5, %vm13362_vm6  ;;  %v2431_v2 = vshll.u32 %v9865_v46, 16  ;;  %v490_v57 = vcvt.s32.f32 %v9849_v15  ;;  %v9917_v31 = vadd.s32 264, %v8798_v58  ;;  %v13090_v41 = vmax.f32 %v9884_v8, 0.0 }
 0x1c9   : > { %v8151_v55 = vpack.c.bf16 %v13366_v21, %v13365_v49  ;;  %vm13367_vm0 = vcmp.le.s32.totalorder %v9487_v44, 16  ;;  %v13370_v20 = vrot.slane %v9741_v29, 1  ;;  %vm13371_vm6 = vcmask 1046528   ;;  %v8058_v44 = vld [vmem:[#allocation9 + $0xf0] sm:$0xff]   ;;  %v1532_v49 = vpop.f32.mrb[32].mxu0 }
 0x1ca   : > { %vm9924_vm13 = vmand %vm9833_vm14, %vm13367_vm0  ;;  %v7787_v42 = vtrunc.f32 %v9802_v9  ;;  %v2429_v29 = vor.u32 %v2427_v26, %v2425_v5  ;;  %v9944_v1 = vrot.slane %v2431_v2, 1  ;;  %v9947_v33 = vadd.s32 4294967295, %v9862_v63  ;;  %v8061_v26 = vld [vmem:[#allocation9 + $0xf8] sm:$0xff]   ;;  %v9987_v2 = vld [vmem:[%s13034_s2] ss:$0 sm:$0xff]  ;;  %4739 = vmatpush1.bf16.msra.mxu0 %v8058_v44 }
 0x1cb   : > { %8152 = vmatmul.mubr.msk.bf16.gmra.mrb[12].mxu1 %vm8150_vm1, %v8151_v55  ;;  %v2869_v39 = vsel %vm13371_vm6, %v13370_v20, %v2868_v24  ;;  %vm13372_vm1 = vcmp.le.s32.totalorder %v9616_v40, 16  ;;  %v9949_v61 = vmul.f32 0.041666668, %v542_v22  ;;  %v1859_v40 = vsel %vm9792_vm7, %v13091_v3, 0.0  ;;  %4740 = vmatprep.subr.bf16.mxu0 %v13279_v28 }
 0x1cc   : > { %vm9940_vm14 = vmand %vm9890_vm15, %vm13372_vm1  ;;  %2945 = vst [vmem:[#allocation3 + $0x70] sm:$0xff] %v2869_v39  ;;  %7493 = vmatprep.mubr.bf16.mxu0 %v2869_v39  ;;  %v1860_v9 = vsel %vm9900_vm12, %v13090_v41, 0.0  ;;  %vm13375_vm15 = vcmp.lt.s32.totalorder %v13332_v13, 16  ;;  %vm13376_vm0 = vcmp.ge.s32.totalorder %v13332_v13, 0  ;;  %v9969_v6 = vmul.f32 0.041666668, %v543_v34 }
 0x1cd   : > { %vm9964_vm6 = vmand %vm13376_vm0, %vm13375_vm15  ;;  %v1906_v62 = vpack.c.bf16 %v1860_v9, %v1859_v40  ;;  %vm13379_vm1 = vsmask.f32 7424  ;;  %vm13380_vm2 = vcmp.lt.s32.totalorder %v13336_v30, 16  ;;  %vm13381_vm5 = vcmp.ge.s32.totalorder %v13336_v30, 0  ;;  %v7395_v30 = vpop.f32.mrb[33].mxu0  ;;  %v9992_v39 = vld [vmem:[#allocation2 + $0x30] sm:$0xff]  }
 0x1ce   : > { %v2434_v21 = vsel %vm13379_vm1, %v2429_v29, %v9944_v1  ;;  %vm9977_vm3 = vmand %vm13381_vm5, %vm13380_vm2  ;;  %v544_v13 = vadd.f32 0.5, %v490_v57  ;;  %v491_v34 = vcvt.s32.f32 %v9917_v31  ;;  %v9990_v20 = vadd.f32 %v9987_v2, %v1532_v49  ;;  %v1535_v29 = vpop.f32.mrb[34].mxu0  ;;  %v9999_v40 = vld [vmem:[#allocation2 + $0x30] sm:$0xff]   ;;  %v13385_v49 = vld [vmem:[#allocation24_spill] sm:$0xff]  ;;  %4741 = vmatpush1.bf16.msra.mxu0 %v8061_v26 }
 0x1cf   : > { %2642 = vst [vmem:[#allocation3 + $0x68] sm:$0xff] %v2434_v21  ;;  %3360 = vmatprep.mubr.bf16.mxu1 %v2434_v21  ;;  %v9996_v57 = vcvt.f32.s32 %v7787_v42  ;;  %7139 = vst [vmem:[#allocation2 + $0x38] sm:$0xff] %v1906_v62   ;;  %v13384_v9 = vmul.u32 24, %v9459_v48  ;;  %v7789_v30 = vtrunc.f32 %v9949_v61  ;;  %v10010_v44 = vadd.f32 %v9987_v2, %v1535_v29  ;;  %4742 = vmatprep.subr.bf16.mxu0 %v13279_v28 }
 0x1d0   : > { %2177 = vst [vmem:[#allocation3 + $0xa8] sm:$0xff] %v1906_v62  ;;  %v13093_v42 = vmax.f32 %v9990_v20, 0.0  ;;  %v7396_v62 = vpop.f32.mrb[35].mxu0  ;;  %vm13386_vm5 = vcmp.ge.s32.totalorder %v9747_v51, 1  ;;  %v2870_v48 = vrot.slane %v9992_v39, 1  ;;  %v10023_v61 = vadd.s32 272, %v8798_v58 }
 0x1d1   : > { %v10004_v21 = vsub.s32 %v13385_v49, %v13384_v9  ;;  %vm10016_vm1 = vmand %vm9964_vm6, %vm13386_vm5  ;;  %v8054_v9 = vld [vmem:[#allocation10 + $0x30] sm:$0xff]   ;;  %vm13389_vm15 = vcmp.ge.s32.totalorder %v9766_v50, 1  ;;  %v13392_v5 = vmax.f32 %v9456_v19, 0.0  ;;  %v13393_v49 = vmax.f32 %v9516_v37, 0.0 }
 0x1d2   : > { %vm10029_vm0 = vmand %vm9977_vm3, %vm13389_vm15  ;;  %v2435_v3 = vshrl.u32 %v9865_v46, 16  ;;  %v2439_v22 = vshll.u32 %v9999_v40, 16  ;;  %v10045_v55 = vadd.s32 4294967295, %v9879_v47  ;;  %v545_v36 = vadd.f32 0.5, %v491_v34  ;;  %7545 = vmatprep.subr.bf16.mxu1 %v8054_v9  ;;  %4743 = vmatpush1.bf16.msra.mxu0 %v8062_v56 }
 0x1d3   : > { %vm8153_vm6 = vmpackc.low %vm9511_vm8, %vm9415_vm10  ;;  %v8154_v62 = vpack.c.bf16 %v13393_v49, %v13392_v5  ;;  %v13092_v23 = vmax.f32 %v10010_v44, 0.0  ;;  %vm13394_vm10 = vcmask 1046528   ;;  %vm13395_vm8 = vcmp.lt.s32.totalorder %v9408_v10, 16  ;;  %7546 = vmatpush3.bf16.msra.mxu1 %v8054_v9  ;;  %v8065_v49 = vld [vmem:[#allocation9 + $0x108] sm:$0xff]   ;;  %4744 = vmatprep.subr.bf16.mxu0 %v13279_v28 }
 0x1d4   : > { %v2871_v19 = vsel %vm13394_vm10, %v2868_v24, %v2870_v48  ;;  %vm13396_vm15 = vcmp.ge.s32.totalorder %v9408_v10, 0  ;;  %v7791_v46 = vtrunc.f32 %v9969_v6  ;;  %vm13399_vm10 = vcmp.le.s32.totalorder %v9747_v51, 16 }
 0x1d5   : > { %8155 = vmatmul.mubr.msk.bf16.gmra.mrb[16].mxu1 %vm8153_vm6, %v8154_v62  ;;  %vm10057_vm5 = vmand %vm13396_vm15, %vm13395_vm8  ;;  %2946 = vst [vmem:[#allocation3 + $0x88] sm:$0xff] %v2871_v19  ;;  %7494 = vmatmul.mubr.bf16.gmra.mrb[116].mxu0 %v2871_v19  ;;  %v2437_v24 = vor.u32 %v2435_v3, %v9944_v1  ;;  %v10074_v34 = vrot.slane %v2439_v22, 1  ;;  %v10077_v5 = vadd.s32 4294967295, %v9996_v57  ;;  %v10079_v6 = vcvt.f32.s32 %v7789_v30  ;;  %v1540_v30 = vpop.f32.mrb[36].mxu0 }
 0x1d6   : > { %vm10069_vm2 = vmand %vm10016_vm1, %vm13399_vm10  ;;  %v1861_v51 = vsel %vm9924_vm13, %v13093_v42, 0.0  ;;  %v1862_v41 = vsel %vm9940_vm14, %v13092_v23, 0.0  ;;  %vm13402_vm1 = vcmp.le.s32.totalorder %v9766_v50, 16  ;;  %v10097_v1 = vmul.f32 0.041666668, %v544_v13  ;;  %v7399_v19 = vpop.f32.mrb[37].mxu0  ;;  %4745 = vmatpush1.bf16.msra.mxu0 %v8065_v49 }
 0x1d7   : > { %vm10093_vm8 = vmand %vm10029_vm0, %vm13402_vm1  ;;  %v492_v22 = vcvt.s32.f32 %v10023_v61  ;;  %v1907_v26 = vpack.c.bf16 %v1862_v41, %v1861_v51  ;;  %vm13405_vm15 = vcmp.ge.s32.totalorder %v9860_v32, 1  ;;  %vm13408_vm0 = vsmask.f32 7424  ;;  %v10121_v52 = vld [vmem:[#allocation2 + $0x38] sm:$0xff]   ;;  %v8066_v50 = vld [vmem:[#allocation9 + $0x110] sm:$0xff]   ;;  %4746 = vmatprep.subr.bf16.mxu0 %v13279_v28 }
 0x1d8   : > { %vm10105_vm10 = vmand %vm10057_vm5, %vm13405_vm15  ;;  %v2442_v9 = vsel %vm13408_vm0, %v2437_v24, %v10074_v34  ;;  %v10112_v13 = vmul.f32 0.041666668, %v545_v36  ;;  %v10115_v29 = vadd.s32 280, %v8798_v58  ;;  %v10118_v62 = vadd.f32 %v9987_v2, %v1540_v30  ;;  %v1543_v36 = vpop.f32.mrb[38].mxu0  ;;  %v10126_v24 = vld [vmem:[#allocation2 + $0x38] sm:$0xff]   ;;  %v13411_v30 = vld [vmem:[#allocation29_spill] sm:$0xff] }
 0x1d9   : > { %2643 = vst [vmem:[#allocation3 + $0x80] sm:$0xff] %v2442_v9  ;;  %3368 = vmatprep.mubr.bf16.mxu1 %v2442_v9  ;;  %v10123_v51 = vcvt.f32.s32 %v7791_v46  ;;  %7140 = vst [vmem:[#allocation2 + $0x40] sm:$0xff] %v1907_v26   ;;  %v13410_v41 = vmul.u32 24, %v9618_v60  ;;  %v13412_v9 = vmul.u32 24, %v9696_v16  ;;  %v13413_v23 = vld [vmem:[#allocation32_spill] sm:$0xff]  ;;  %v10141_v56 = vadd.f32 %v9987_v2, %v1543_v36 }
 0x1da   : > { %13409 = vst [vmem:[#allocation26_spill] sm:$0xff] %v10115_v29  ;;  %2178 = vst [vmem:[#allocation3 + $0xc0] sm:$0xff] %v1907_v26  ;;  %v13095_v46 = vmax.f32 %v10118_v62, 0.0  ;;  %v7400_v26 = vpop.f32.mrb[39].mxu0  ;;  %vm13415_vm0 = vcmp.lt.s32.totalorder %v9451_v38, 16  ;;  %vm13416_vm15 = vcmp.ge.s32.totalorder %v9451_v38, 0  ;;  %4747 = vmatpush1.bf16.msra.mxu0 %v8066_v50 }
 0x1db   : > { %v10131_v19 = vsub.s32 %v13411_v30, %v13410_v41  ;;  %v10136_v42 = vsub.s32 %v13413_v23, %v13412_v9  ;;  %13414 = vst [vmem:[#allocation19_spill] sm:$0xff] %v10141_v56  ;;  %vm10147_vm5 = vmand %vm13416_vm15, %vm13415_vm0  ;;  %v13096_v16 = vrot.slane %v10121_v52, 1  ;;  %v546_v23 = vadd.f32 0.5, %v492_v22  ;;  %4748 = vmatprep.subr.bf16.mxu0 %v13279_v28 }
 0x1dc   : > { %vm8156_vm6 = vmpackc.low %vm9625_vm4, %vm9524_vm9  ;;  %v13419_v36 = vmax.f32 %v9594_v59, 0.0  ;;  %v13420_v41 = vmax.f32 %v9630_v12, 0.0  ;;  %vm13421_vm15 = vcmp.lt.s32.totalorder %v9530_v7, 16  ;;  %vm13422_vm0 = vcmp.ge.s32.totalorder %v9530_v7, 0 }
 0x1dd   : > { %vm10165_vm3 = vmand %vm13422_vm0, %vm13421_vm15  ;;  %v2443_v22 = vshrl.u32 %v9999_v40, 16  ;;  %v2447_v17 = vshll.u32 %v10126_v24, 16  ;;  %v10175_v45 = vadd.s32 4294967295, %v10079_v6  ;;  %v13094_v12 = vmax.f32 %v10141_v56, 0.0 }
 0x1de   : > { %v8157_v30 = vpack.c.bf16 %v13420_v41, %v13419_v36  ;;  %vm13428_vm0 = vcmask 1046528   ;;  %v10205_v36 = vadd.s32 4294967295, %v10123_v51  ;;  %v1863_v49 = vsel %vm10069_vm2, %v13095_v46, 0.0  ;;  %v13443_v46 = vld [vmem:[#allocation33_spill] sm:$0xff] }
 0x1df   : > { %v2873_v40 = vsel %vm13428_vm0, %v2870_v48, %v13096_v16  ;;  %v2445_v39 = vor.u32 %v2443_v22, %v10074_v34  ;;  %v2449_v48 = vrot.slane %v2447_v17, 1  ;;  %v1864_v60 = vsel %vm10093_vm8, %v13094_v12, 0.0  ;;  %v1548_v22 = vpop.f32.mrb[40].mxu0  ;;  %v13446_v16 = vld [vmem:[#allocation34_spill] sm:$0xff] }
 0x1e0   : > { %8158 = vmatmul.mubr.msk.bf16.gmra.mrb[20].mxu1 %vm8156_vm6, %v8157_v30  ;;  %vm13425_vm6 = vcmp.le.s32.totalorder %v9860_v32, 16  ;;  %v7793_v32 = vtrunc.f32 %v10097_v1  ;;  %2947 = vst [vmem:[#allocation3 + $0xa0] sm:$0xff] %v2873_v40  ;;  %7497 = vmatprep.mubr.bf16.mxu0 %v2873_v40  ;;  %v7795_v1 = vtrunc.f32 %v10112_v13  ;;  %v10225_v13 = vmul.f32 0.041666668, %v546_v23  ;;  %v13456_v40 = vld [vmem:[#allocation40_spill] sm:$0xff] }
 0x1e1   : > { %vm10182_vm15 = vmand %vm10105_vm10, %vm13425_vm6  ;;  %vm13429_vm10 = vcmp.ge.s32.totalorder %v9872_v18, 1  ;;  %v493_v41 = vcvt.s32.f32 %v10115_v29  ;;  %v1908_v30 = vpack.c.bf16 %v1864_v60, %v1863_v49  ;;  %vm13436_vm9 = vcmp.lt.s32.totalorder %v9563_v14, 16  ;;  %v8071_v49 = vld [vmem:[#allocation9 + $0x118] sm:$0xff]  }
 0x1e2   : > { %vm10199_vm6 = vmand %vm10147_vm5, %vm13429_vm10  ;;  %vm13432_vm5 = vcmp.ge.s32.totalorder %v9877_v27, 1  ;;  %vm13435_vm10 = vsmask.f32 7424  ;;  %vm13437_vm4 = vcmp.ge.s32.totalorder %v9563_v14, 0  ;;  %v10239_v38 = vadd.s32 288, %v8798_v58  ;;  %v10247_v14 = vld [vmem:[#allocation2 + $0x40] sm:$0xff]   ;;  %4749 = vmatpush1.bf16.msra.mxu0 %v8071_v49 }
 0x1e3   : > { %vm10221_vm0 = vmand %vm10165_vm3, %vm13432_vm5  ;;  %v2450_v17 = vsel %vm13435_vm10, %v2445_v39, %v2449_v48  ;;  %v10242_v23 = vadd.s32 296, %v8798_v58  ;;  %v10245_v60 = vadd.f32 %v9987_v2, %v1548_v22  ;;  %v7403_v39 = vpop.f32.mrb[41].mxu0  ;;  %v13442_v12 = vmul.u32 24, %v9712_v25  ;;  %7141 = vst [vmem:[#allocation2 + $0x48] sm:$0xff] %v1908_v30   ;;  %v10257_v22 = vld [vmem:[#allocation2 + $0x40] sm:$0xff]   ;;  %4750 = vmatprep.subr.bf16.mxu0 %v13279_v28 }
 0x1e4   : > { %vm10233_vm1 = vmand %vm13437_vm4, %vm13436_vm9  ;;  %13440 = vst [vmem:[#allocation27_spill] sm:$0xff] %v10239_v38  ;;  %3376 = vmatprep.mubr.bf16.mxu1 %v2450_v17  ;;  %v10255_v59 = vcvt.f32.s32 %v7793_v32  ;;  %v1551_v37 = vpop.f32.mrb[42].mxu0  ;;  %v13444_v39 = vld [vmem:[#allocation28_spill] sm:$0xff]  ;;  %v10266_v25 = vcvt.f32.s32 %v7795_v1  ;;  %vm13447_vm10 = vcmp.ge.s32.totalorder %v10004_v21, 1  ;;  %vm13450_vm9 = vcmp.le.s32.totalorder %v9872_v18, 16 }
 0x1e5   : > { %13441 = vst [vmem:[#allocation20_spill] sm:$0xff] %v10242_v23  ;;  %2644 = vst [vmem:[#allocation3 + $0x98] sm:$0xff] %v2450_v17  ;;  %v10253_v9 = vsub.s32 %v13443_v46, %v13442_v12  ;;  %v13445_v17 = vmul.u32 24, %v9862_v63  ;;  %v10271_v12 = vadd.f32 %v9987_v2, %v1551_v37  ;;  %v7404_v32 = vpop.f32.mrb[43].mxu0  ;;  %v13451_v37 = vmov 0 }
 0x1e6   : > { %2179 = vst [vmem:[#allocation3 + $0xd8] sm:$0xff] %v1908_v30  ;;  %vm10277_vm4 = vmand %vm10233_vm1, %vm13447_vm10  ;;  %v13454_v30 = vld [vmem:[#allocation39_spill] sm:$0xff]  ;;  %v13458_v32 = vld [vmem:[#allocation25_spill] sm:$0xff]  ;;  %v2455_v18 = vshll.u32 %v10257_v22, 16  ;;  %v494_v26 = vcvt.s32.f32 %v10239_v38  ;;  %v495_v56 = vcvt.s32.f32 %v10242_v23  ;;  %v10351_v50 = vadd.s32 4294967295, %v10266_v25 }
 0x1e7   : > { %v10264_v29 = vsub.s32 %v13446_v16, %v13445_v17  ;;  %v547_v16 = vadd.f32 0.5, %v493_v41  ;;  %vm10287_vm3 = vmand %vm10199_vm6, %vm13450_vm9  ;;  %vm13455_vm1 = vnez %v13454_v30  ;;  %v13457_v17 = vmax.f32 %v13456_v40, 0.0  ;;  %v13481_v40 = vld [vmem:[#allocation35_spill] sm:$0xff] }
 0x1e8   : > { %v13452_v37 = vsel %vm10287_vm3, 4294967295, %v13451_v37  ;;  %vm8159_vm10 = vmpackc.low %vm13455_vm1, %vm9692_vm11  ;;  %v13459_v46 = vmax.f32 %v13458_v32, 0.0  ;;  %v2451_v41 = vshrl.u32 %v10126_v24, 16  ;;  %v13100_v1 = vmax.f32 %v10271_v12, 0.0 }
 0x1e9   : > { %vm13460_vm11 = vcmp.le.s32.totalorder %v9877_v27, 16  ;;  %v13463_v24 = vrot.slane %v10247_v14, 1  ;;  %vm13465_vm1 = vcmask 1046528   ;;  %v8072_v27 = vld [vmem:[#allocation9 + $0x120] sm:$0xff]   ;;  %vm13466_vm6 = vcmp.le.s32.totalorder %v10004_v21, 16 }
 0x1ea   : > { %v8160_v63 = vpack.c.bf16 %v13459_v46, %v13457_v17  ;;  %vm10309_vm9 = vmand %vm10221_vm0, %vm13460_vm11  ;;  %v13464_v46 = vrot.slane %v10121_v52, 1  ;;  %v7797_v17 = vtrunc.f32 %v10225_v13  ;;  %v2453_v52 = vor.u32 %v2451_v41, %v2449_v48  ;;  %4751 = vmatpush1.bf16.msra.mxu0 %v8072_v27 }
 0x1eb   : > { %vm10325_vm0 = vmand %vm10277_vm4, %vm13466_vm6  ;;  %v2457_v32 = vrot.slane %v2455_v18, 1  ;;  %v13469_v13 = vmax.f32 %v10245_v60, 0.0  ;;  %v1866_v49 = vsel %vm10287_vm3, %v13100_v1, 0.0  ;;  %vm13470_vm4 = vcmp.lt.s32.totalorder %v9678_v53, 16  ;;  %4752 = vmatprep.subr.bf16.mxu0 %v13279_v28 }
 0x1ec   : > { %8161 = vmatmul.mubr.msk.bf16.gmra.mrb[24].mxu1 %vm8159_vm10, %v8160_v63  ;;  %v2875_v63 = vsel %vm13465_vm1, %v13464_v46, %v13463_v24  ;;  %v10330_v24 = vadd.s32 4294967295, %v10255_v59  ;;  %vm13471_vm6 = vcmp.ge.s32.totalorder %v9678_v53, 0  ;;  %v10353_v41 = vmul.f32 0.041666668, %v547_v16  ;;  %v8073_v16 = vld [vmem:[#allocation9 + $0x128] sm:$0xff]  }
 0x1ed   : > { %2948 = vst [vmem:[#allocation3 + $0xb8] sm:$0xff] %v2875_v63  ;;  %7498 = vmatmul.mubr.bf16.gmra.mrb[120].mxu0 %v2875_v63  ;;  %v1865_v21 = vsel %vm10182_vm15, %v13469_v13, 0.0  ;;  %vm10346_vm11 = vmand %vm13471_vm6, %vm13470_vm4  ;;  %v1556_v63 = vpop.f32.mrb[44].mxu0  ;;  %vm13474_vm1 = vsmask.f32 7424  ;;  %vm13475_vm10 = vcmp.lt.s32.totalorder %v9784_v43, 16  ;;  %v10377_v38 = vcvt.f32.s32 %v7797_v17 }
 0x1ee   : > { %v1909_v18 = vpack.c.bf16 %v1866_v49, %v1865_v21  ;;  %v2458_v13 = vsel %vm13474_vm1, %v2453_v52, %v2457_v32  ;;  %vm13476_vm5 = vcmp.ge.s32.totalorder %v9784_v43, 0  ;;  %v548_v53 = vadd.f32 0.5, %v494_v26  ;;  %v7407_v49 = vpop.f32.mrb[45].mxu0  ;;  %v10369_v52 = vld [vmem:[#allocation2 + $0x48] sm:$0xff]   ;;  %4753 = vmatpush1.bf16.msra.mxu0 %v8073_v16 }
 0x1ef   : > { %vm10360_vm3 = vmand %vm13476_vm5, %vm13475_vm10  ;;  %v549_v46 = vadd.f32 0.5, %v495_v56  ;;  %v10367_v21 = vadd.f32 %v9987_v2, %v1556_v63  ;;  %2645 = vst [vmem:[#allocation3 + $0xb0] sm:$0xff] %v2458_v13  ;;  %3384 = vmatprep.mubr.bf16.mxu1 %v2458_v13  ;;  %v13480_v43 = vmul.u32 24, %v9879_v47  ;;  %v1559_v56 = vpop.f32.mrb[46].mxu0  ;;  %v10379_v26 = vld [vmem:[#allocation2 + $0x48] sm:$0xff]   ;;  %v13482_v63 = vmul.u32 24, %v9996_v57  ;;  %4754 = vmatprep.subr.bf16.mxu0 %v13279_v28 }
 0x1f0   : > { %7142 = vst [vmem:[#allocation2 + $0x50] sm:$0xff] %v1909_v18   ;;  %2180 = vst [vmem:[#allocation3 + $0xf0] sm:$0xff] %v1909_v18  ;;  %v13483_v13 = vld [vmem:[#allocation36_spill] sm:$0xff]  ;;  %v7408_v17 = vpop.f32.mrb[47].mxu0  ;;  %vm13485_vm5 = vcmp.ge.s32.totalorder %v10131_v19, 1  ;;  %v13105_v57 = vrot.slane %v10369_v52, 1  ;;  %v7799_v1 = vtrunc.f32 %v10353_v41 }
 0x1f1   : > { %13479 = vst [vmem:[#allocation30_spill] sm:$0xff] %v10367_v21  ;;  %v10375_v23 = vsub.s32 %v13481_v40, %v13480_v43  ;;  %v10386_v49 = vsub.s32 %v13483_v13, %v13482_v63  ;;  %v13104_v47 = vmax.f32 %v10367_v21, 0.0  ;;  %v10391_v40 = vadd.f32 %v9987_v2, %v1559_v56  ;;  %vm10397_vm10 = vmand %vm10346_vm11, %vm13485_vm5 }
 0x1f2   : > { %v10404_v18 = vadd.s32 304, %v8798_v58  ;;  %vm13489_vm4 = vcmp.ge.s32.totalorder %v10136_v42, 1  ;;  %vm8162_vm11 = vmpackc.low %vm9900_vm12, %vm9792_vm7  ;;  %v13492_v48 = vmax.f32 %v9852_v54, 0.0  ;;  %v13493_v56 = vmax.f32 %v9884_v8, 0.0 }
 0x1f3   : > { %13484 = vst [vmem:[#allocation31_spill] sm:$0xff] %v10391_v40  ;;  %vm10410_vm6 = vmand %vm10360_vm3, %vm13489_vm4  ;;  %v2459_v13 = vshrl.u32 %v10257_v22, 16  ;;  %v2463_v17 = vshll.u32 %v10379_v26, 16  ;;  %v10428_v11 = vadd.s32 312, %v8798_v58  ;;  %v13103_v4 = vmax.f32 %v10391_v40, 0.0 }
 0x1f4   : > { %13488 = vst [vmem:[#allocation21_spill] sm:$0xff] %v10404_v18  ;;  %v8163_v63 = vpack.c.bf16 %v13493_v56, %v13492_v48  ;;  %v13495_v54 = vrot.slane %v10247_v14, 1  ;;  %vm13496_vm12 = vcmask 1046528   ;;  %vm13497_vm7 = vcmp.lt.s32.totalorder %v13444_v39, 16 }
 0x1f5   : > { %13494 = vst [vmem:[#allocation22_spill] sm:$0xff] %v10428_v11  ;;  %vm13498_vm5 = vcmp.ge.s32.totalorder %v13444_v39, 0  ;;  %v10446_v48 = vmul.f32 0.041666668, %v548_v53  ;;  %vm13501_vm4 = vcmp.le.s32.totalorder %v10131_v19, 16  ;;  %v2461_v39 = vor.u32 %v2459_v13, %v2457_v32  ;;  %v8067_v53 = vld [vmem:[#allocation10 + $0x38] sm:$0xff]  }
 0x1f6   : > { %8164 = vmatmul.mubr.msk.bf16.gmra.mrb[28].mxu1 %vm8162_vm11, %v8163_v63  ;;  %v2877_v8 = vsel %vm13496_vm12, %v13495_v54, %v13105_v57  ;;  %vm10440_vm11 = vmand %vm13498_vm5, %vm13497_vm7  ;;  %v10456_v56 = vrot.slane %v2463_v17, 1  ;;  %v10459_v63 = vadd.s32 4294967295, %v10377_v38  ;;  %v10461_v54 = vmul.f32 0.041666668, %v549_v46  ;;  %v8074_v19 = vld [vmem:[#allocation9 + $0x130] sm:$0xff]   ;;  %7547 = vmatprep.subr.bf16.mxu1 %v8067_v53 }
 0x1f7   : > { %vm10452_vm12 = vmand %vm10397_vm10, %vm13501_vm4  ;;  %2949 = vst [vmem:[#allocation3 + $0xd0] sm:$0xff] %v2877_v8  ;;  %7501 = vmatprep.mubr.bf16.mxu0 %v2877_v8  ;;  %v1867_v16 = vsel %vm10309_vm9, %v13104_v47, 0.0  ;;  %v1868_v32 = vsel %vm10325_vm0, %v13103_v4, 0.0  ;;  %vm13504_vm10 = vcmp.le.s32.totalorder %v10136_v42, 16  ;;  %v496_v27 = vcvt.s32.f32 %v10404_v18  ;;  %v1564_v8 = vpop.f32.mrb[48].mxu0  ;;  %v10503_v22 = vld [vmem:[#allocation2 + $0x50] sm:$0xff]   ;;  %7548 = vmatpush3.bf16.msra.mxu1 %v8067_v53 }
 0x1f8   : > { %vm10476_vm4 = vmand %vm10410_vm6, %vm13504_vm10  ;;  %v10482_v13 = vadd.s32 320, %v8798_v58  ;;  %v1910_v17 = vpack.c.bf16 %v1868_v32, %v1867_v16  ;;  %vm13507_vm7 = vcmp.ge.s32.totalorder %v10253_v9, 1  ;;  %v497_v43 = vcvt.s32.f32 %v10428_v11  ;;  %v7411_v32 = vpop.f32.mrb[49].mxu0  ;;  %v10508_v57 = vld [vmem:[#allocation2 + $0x50] sm:$0xff]   ;;  %v13514_v18 = vld [vmem:[#allocation41_spill] sm:$0xff]  ;;  %4755 = vmatpush1.bf16.msra.mxu0 %v8074_v19 }
 0x1f9   : > { %vm10488_vm5 = vmand %vm10440_vm11, %vm13507_vm7  ;;  %v10497_v47 = vadd.s32 328, %v8798_v58  ;;  %v10500_v16 = vadd.f32 %v9987_v2, %v1564_v8  ;;  %v10505_v41 = vcvt.f32.s32 %v7799_v1  ;;  %v13511_v8 = vmul.u32 24, %v10079_v6  ;;  %v13512_v11 = vld [vmem:[#allocation38_spill] sm:$0xff]  ;;  %4756 = vmatprep.subr.bf16.mxu0 %v13279_v28 }
 0x1fa   : > { %vm13510_vm6 = vmmov %vm13474_vm1  ;;  %7143 = vst [vmem:[#allocation2 + $0x58] sm:$0xff] %v1910_v17   ;;  %v7801_v1 = vtrunc.f32 %v10446_v48  ;;  %vm13516_vm7 = vcmp.ge.s32.totalorder %v9947_v33, 0  ;;  %vm13519_vm3 = vcmp.le.s32.totalorder %v10253_v9, 16  ;;  %v2467_v19 = vshrl.u32 %v10379_v26, 16 }
 0x1fb   : > { %v2466_v42 = vsel %vm13510_vm6, %v2461_v39, %v10456_v56  ;;  %2181 = vst [vmem:[#allocation3 + $0x108] sm:$0xff] %v1910_v17  ;;  %v1567_v39 = vpop.f32.mrb[50].mxu0  ;;  %v10513_v32 = vsub.s32 %v13512_v11, %v13511_v8  ;;  %v13116_v53 = vmax.f32 %v10500_v16, 0.0  ;;  %vm13515_vm6 = vcmp.lt.s32.totalorder %v9947_v33, 16  ;;  %vm10540_vm1 = vmand %vm10488_vm5, %vm13519_vm3 }
 0x1fc   : > { %2646 = vst [vmem:[#allocation3 + $0xc8] sm:$0xff] %v2466_v42  ;;  %3392 = vmatprep.mubr.bf16.mxu1 %v2466_v42  ;;  %v13513_v42 = vmul.u32 24, %v10123_v51  ;;  %v10523_v17 = vadd.f32 %v9987_v2, %v1567_v39  ;;  %v7412_v21 = vpop.f32.mrb[51].mxu0  ;;  %vm10529_vm11 = vmand %vm13516_vm7, %vm13515_vm6  ;;  %v2878_v51 = vrot.slane %v10503_v22, 1  ;;  %v13522_v33 = vmax.f32 %v9990_v20, 0.0 }
 0x1fd   : > { %vm8165_vm7 = vmpackc.low %vm9940_vm14, %vm9924_vm13  ;;  %v13523_v11 = vmax.f32 %v10010_v44, 0.0  ;;  %v2471_v9 = vshll.u32 %v10508_v57, 16  ;;  %v551_v4 = vadd.f32 0.5, %v497_v43  ;;  %v498_v0 = vcvt.s32.f32 %v10482_v13 }
 0x1fe   : > { %v10518_v40 = vsub.s32 %v13514_v18, %v13513_v42  ;;  %v550_v18 = vadd.f32 0.5, %v496_v27  ;;  %v13110_v35 = vmax.f32 %v10523_v17, 0.0  ;;  %v13524_v20 = vrot.slane %v10369_v52, 1 }
 0x1ff   : > { %v8166_v48 = vpack.c.bf16 %v13523_v11, %v13522_v33  ;;  %vm13525_vm13 = vcmask 1046528   ;;  %vm13526_vm14 = vcmp.lt.s32.totalorder %v10045_v55, 16  ;;  %vm13527_vm6 = vcmp.ge.s32.totalorder %v10045_v55, 0  ;;  %v8075_v11 = vld [vmem:[#allocation9 + $0x138] sm:$0xff]  }
 0x200   : > { %v2879_v44 = vsel %vm13525_vm13, %v13524_v20, %v2878_v51  ;;  %v709_v27 = vmul.u32 24, %v10505_v41  ;;  %v10575_v43 = vadd.s32 4294967295, %v10505_v41  ;;  %vm13530_vm10 = vcmp.ge.s32.totalorder %v10264_v29, 1  ;;  %4757 = vmatpush1.bf16.msra.mxu0 %v8075_v11 }
 0x201   : > { %8167 = vmatmul.mubr.msk.bf16.gmra.mrb[32].mxu1 %vm8165_vm7, %v8166_v48  ;;  %vm10567_vm7 = vmand %vm13527_vm6, %vm13526_vm14  ;;  %2950 = vst [vmem:[#allocation3 + $0xe8] sm:$0xff] %v2879_v44  ;;  %7502 = vmatmul.mubr.bf16.gmra.mrb[124].mxu0 %v2879_v44  ;;  %v2469_v55 = vor.u32 %v2467_v19, %v10456_v56  ;;  %v2473_v39 = vrot.slane %v2471_v9, 1  ;;  %v10586_v8 = vcvt.f32.s32 %v7801_v1  ;;  %v7803_v42 = vtrunc.f32 %v10461_v54  ;;  %v1572_v19 = vpop.f32.mrb[52].mxu0  ;;  %v8077_v44 = vld [vmem:[#allocation9 + $0x140] sm:$0xff]  }
 0x202   : > { %vm10581_vm13 = vmand %vm10529_vm11, %vm13530_vm10  ;;  %v1869_v33 = vsel %vm10452_vm12, %v13116_v53, 0.0  ;;  %v1870_v6 = vsel %vm10476_vm4, %v13110_v35, 0.0  ;;  %vm13533_vm10 = vcmp.lt.s32.totalorder %v10077_v5, 16  ;;  %vm13534_vm11 = vcmp.ge.s32.totalorder %v10077_v5, 0  ;;  %v10620_v35 = vld [vmem:[#allocation2 + $0x58] sm:$0xff]   ;;  %7597 = vmatprep.subr.bf16.mxu1 %v8077_v44 }
 0x203   : > { %vm10601_vm14 = vmand %vm13534_vm11, %vm13533_vm10  ;;  %v10605_v1 = vmul.f32 0.041666668, %v550_v18  ;;  %v499_v54 = vcvt.s32.f32 %v10497_v47  ;;  %v1911_v48 = vpack.c.bf16 %v1870_v6, %v1869_v33  ;;  %vm13537_vm6 = vcmp.ge.s32.totalorder %v10375_v23, 1  ;;  %v7415_v6 = vpop.f32.mrb[53].mxu0  ;;  %v13551_v56 = vld [vmem:[#allocation19_spill] sm:$0xff] }
 0x204   : > { %vm10612_vm3 = vmand %vm10567_vm7, %vm13537_vm6  ;;  %vm13540_vm5 = vsmask.f32 7424  ;;  %v10618_v20 = vmul.f32 0.041666668, %v551_v4  ;;  %v552_v18 = vadd.f32 0.5, %v498_v0  ;;  %v10623_v33 = vadd.f32 %v9987_v2, %v1572_v19  ;;  %v10631_v4 = vld [vmem:[#allocation2 + $0x58] sm:$0xff]  }
 0x205   : > { %v2474_v5 = vsel %vm13540_vm5, %v2469_v55, %v2473_v39  ;;  %v13541_v26 = vmul.u32 24, %v10255_v59  ;;  %7144 = vst [vmem:[#allocation2 + $0x60] sm:$0xff] %v1911_v48   ;;  %2182 = vst [vmem:[#allocation3 + $0x120] sm:$0xff] %v1911_v48  ;;  %v1575_v0 = vpop.f32.mrb[54].mxu0  ;;  %v13542_v19 = vmul.u32 24, %v10266_v25  ;;  %v10645_v11 = vcvt.f32.s32 %v7803_v42 }
 0x206   : > { %2647 = vst [vmem:[#allocation3 + $0xe0] sm:$0xff] %v2474_v5  ;;  %3400 = vmatprep.mubr.bf16.mxu1 %v2474_v5  ;;  %v13543_v59 = vmul.u32 24, %v10377_v38  ;;  %v13115_v48 = vmax.f32 %v10623_v33, 0.0  ;;  %v10649_v6 = vadd.f32 %v9987_v2, %v1575_v0  ;;  %vm13544_vm6 = vcmp.ge.s32.totalorder %v10386_v49, 1 }
 0x207   : > { %v10629_v55 = vsub.s32 %v9849_v15, %v13541_v26  ;;  %v10638_v5 = vsub.s32 %v9917_v31, %v13542_v19  ;;  %v7416_v26 = vpop.f32.mrb[55].mxu0  ;;  %vm10655_vm5 = vmand %vm10601_vm14, %vm13544_vm6  ;;  %v2479_v38 = vshll.u32 %v10620_v35, 16  ;;  %vm13547_vm7 = vcmp.le.s32.totalorder %v10264_v29, 16 }
 0x208   : > { %v10643_v15 = vsub.s32 %v10023_v61, %v13543_v59  ;;  %v2475_v61 = vshrl.u32 %v10508_v57, 16  ;;  %vm10666_vm10 = vmand %vm10581_vm13, %vm13547_vm7  ;;  %v13548_v25 = vmov 0  ;;  %v13550_v42 = vmax.f32 %v10118_v62, 0.0 }
 0x209   : > { %v13549_v25 = vsel %vm10666_vm10, 4294967295, %v13548_v25  ;;  %vm8168_vm14 = vmpackc.low %vm10093_vm8, %vm10069_vm2  ;;  %v13552_v44 = vmax.f32 %v13551_v56, 0.0  ;;  %v2880_v0 = vrot.slane %v10631_v4, 1  ;;  %v710_v29 = vmul.u32 24, %v10586_v8 }
 0x20a   : > { %v553_v52 = vadd.f32 0.5, %v499_v54  ;;  %v10682_v19 = vadd.s32 336, %v8798_v58  ;;  %v13111_v10 = vmax.f32 %v10649_v6, 0.0  ;;  %vm13553_vm2 = vcmp.le.s32.totalorder %v10375_v23, 16 }
 0x20b   : > { %v8169_v57 = vpack.c.bf16 %v13552_v44, %v13550_v42  ;;  %vm10689_vm8 = vmand %vm10612_vm3, %vm13553_vm2  ;;  %v2477_v62 = vor.u32 %v2475_v61, %v2473_v39  ;;  %v2481_v59 = vrot.slane %v2479_v38, 1  ;;  %v7805_v26 = vtrunc.f32 %v10605_v1  ;;  %v1580_v61 = vpop.f32.mrb[56].mxu0 }
 0x20c   : > { %vm13556_vm7 = vcmp.le.s32.totalorder %v10386_v49, 16  ;;  %vm13559_vm3 = vcmask 1046528   ;;  %v10709_v39 = vadd.s32 4294967295, %v10586_v8  ;;  %v7807_v9 = vtrunc.f32 %v10618_v20  ;;  %v10748_v44 = vld [vmem:[#allocation2 + $0x60] sm:$0xff]  }
 0x20d   : > { %8170 = vmatmul.mubr.msk.bf16.gmra.mrb[36].mxu1 %vm8168_vm14, %v8169_v57  ;;  %vm10699_vm14 = vmand %vm10655_vm5, %vm13556_vm7  ;;  %v2881_v23 = vsel %vm13559_vm3, %v2878_v51, %v2880_v0  ;;  %v10712_v1 = vmul.f32 0.041666668, %v552_v18  ;;  %v1871_v49 = vsel %vm10540_vm1, %v13115_v48, 0.0  ;;  %v1872_v31 = vsel %vm10666_vm10, %v13111_v10, 0.0 }
 0x20e   : > { %2951 = vst [vmem:[#allocation3 + $0x100] sm:$0xff] %v2881_v23  ;;  %7505 = vmatprep.mubr.bf16.mxu0 %v2881_v23  ;;  %vm13560_vm5 = vcmp.lt.s32.totalorder %v10175_v45, 16  ;;  %vm13561_vm2 = vcmp.ge.s32.totalorder %v10175_v45, 0  ;;  %vm13564_vm3 = vsmask.f32 7424  ;;  %v711_v20 = vmul.u32 24, %v10645_v11 }
 0x20f   : > { %vm10726_vm7 = vmand %vm13561_vm2, %vm13560_vm5  ;;  %v2482_v51 = vsel %vm13564_vm3, %v2477_v62, %v2481_v59  ;;  %v1912_v18 = vpack.c.bf16 %v1872_v31, %v1871_v49  ;;  %vm13565_vm13 = vcmp.lt.s32.totalorder %v10205_v36, 16  ;;  %vm13566_vm6 = vcmp.ge.s32.totalorder %v10205_v36, 0  ;;  %v7419_v36 = vpop.f32.mrb[57].mxu0  ;;  %v10757_v23 = vld [vmem:[#allocation2 + $0x60] sm:$0xff]   ;;  %v13569_v49 = vld [vmem:[#allocation26_spill] sm:$0xff] }
 0x210   : > { %2648 = vst [vmem:[#allocation3 + $0xf8] sm:$0xff] %v2482_v51  ;;  %3408 = vmatprep.mubr.bf16.mxu1 %v2482_v51  ;;  %vm10736_vm11 = vmand %vm13566_vm6, %vm13565_vm13  ;;  %v10743_v45 = vadd.s32 4294967295, %v10645_v11  ;;  %v10745_v42 = vmul.f32 0.041666668, %v553_v52  ;;  %v500_v56 = vcvt.s32.f32 %v10682_v19  ;;  %v10751_v57 = vadd.f32 %v9987_v2, %v1580_v61  ;;  %v1583_v52 = vpop.f32.mrb[58].mxu0 }
 0x211   : > { %v10755_v62 = vcvt.f32.s32 %v7805_v26  ;;  %7145 = vst [vmem:[#allocation2 + $0x68] sm:$0xff] %v1912_v18   ;;  %2183 = vst [vmem:[#allocation3 + $0x138] sm:$0xff] %v1912_v18  ;;  %v10763_v31 = vsub.s32 %v13569_v49, %v709_v27  ;;  %v10765_v51 = vcvt.f32.s32 %v7807_v9  ;;  %v7809_v61 = vtrunc.f32 %v10712_v1  ;;  %v7420_v18 = vpop.f32.mrb[59].mxu0 }
 0x212   : > { %v2483_v36 = vshrl.u32 %v10620_v35, 16  ;;  %v13114_v26 = vmax.f32 %v10751_v57, 0.0  ;;  %v10771_v10 = vadd.f32 %v9987_v2, %v1583_v52  ;;  %vm13570_vm6 = vcmp.ge.s32.totalorder %v10513_v32, 1 }
 0x213   : > { %vm10777_vm3 = vmand %vm10726_vm7, %vm13570_vm6  ;;  %v2487_v27 = vshll.u32 %v10748_v44, 16  ;;  %vm13573_vm5 = vcmp.ge.s32.totalorder %v10518_v40, 1  ;;  %vm13576_vm10 = vnez %v13452_v37  ;;  %v13577_v9 = vmax.f32 %v10245_v60, 0.0 }
 0x214   : > { %vm10787_vm2 = vmand %vm10736_vm11, %vm13573_vm5  ;;  %v13578_v1 = vmax.f32 %v10271_v12, 0.0  ;;  %v2882_v52 = vrot.slane %v10757_v23, 1  ;;  %v7811_v38 = vtrunc.f32 %v10745_v42  ;;  %v554_v49 = vadd.f32 0.5, %v500_v56 }
 0x215   : > { %vm8171_vm7 = vmpackc.low %vm13576_vm10, %vm10182_vm15  ;;  %v10803_v18 = vadd.s32 344, %v8798_v58  ;;  %v13113_v7 = vmax.f32 %v10771_v10, 0.0  ;;  %vm13579_vm15 = vcmp.lt.s32.totalorder %v10330_v24, 16  ;;  %vm13580_vm10 = vcmp.ge.s32.totalorder %v10330_v24, 0 }
 0x216   : > { %v8172_v22 = vpack.c.bf16 %v13578_v1, %v13577_v9  ;;  %vm10810_vm11 = vmand %vm13580_vm10, %vm13579_vm15  ;;  %v2485_v12 = vor.u32 %v2483_v36, %v2481_v59  ;;  %v2489_v37 = vrot.slane %v2487_v27, 1  ;;  %vm13583_vm6 = vcmp.le.s32.totalorder %v10513_v32, 16 }
 0x217   : > { %vm10821_vm13 = vmand %vm10777_vm3, %vm13583_vm6  ;;  %vm13586_vm15 = vcmask 1046528   ;;  %v10831_v59 = vadd.s32 4294967295, %v10755_v62  ;;  %v10835_v27 = vadd.s32 4294967295, %v10765_v51  ;;  %v1873_v32 = vsel %vm10689_vm8, %v13114_v26, 0.0  ;;  %v13594_v26 = vld [vmem:[#allocation27_spill] sm:$0xff] }
 0x218   : > { %8173 = vmatmul.mubr.msk.bf16.gmra.mrb[40].mxu1 %vm8171_vm7, %v8172_v22  ;;  %v2883_v24 = vsel %vm13586_vm15, %v2880_v0, %v2882_v52  ;;  %v1874_v4 = vsel %vm10699_vm14, %v13113_v7, 0.0  ;;  %vm13587_vm3 = vcmp.le.s32.totalorder %v10518_v40, 16  ;;  %vm13590_vm10 = vsmask.f32 7424  ;;  %v1588_v22 = vpop.f32.mrb[60].mxu0 }
 0x219   : > { %vm10849_vm6 = vmand %vm10787_vm2, %vm13587_vm3  ;;  %2952 = vst [vmem:[#allocation3 + $0x118] sm:$0xff] %v2883_v24  ;;  %7506 = vmatmul.mubr.bf16.gmra.mrb[128].mxu0 %v2883_v24  ;;  %v2490_v41 = vsel %vm13590_vm10, %v2485_v12, %v2489_v37  ;;  %v10855_v9 = vadd.s32 352, %v8798_v58  ;;  %v1913_v1 = vpack.c.bf16 %v1874_v4, %v1873_v32  ;;  %vm13591_vm15 = vcmp.ge.s32.totalorder %v10629_v55, 1  ;;  %v10872_v32 = vld [vmem:[#allocation2 + $0x68] sm:$0xff]   ;;  %v7423_v60 = vpop.f32.mrb[61].mxu0 }
 0x21a   : > { %vm10861_vm5 = vmand %vm10810_vm11, %vm13591_vm15  ;;  %2649 = vst [vmem:[#allocation3 + $0x110] sm:$0xff] %v2490_v41  ;;  %3416 = vmatprep.mubr.bf16.mxu1 %v2490_v41  ;;  %v10866_v35 = vmul.f32 0.041666668, %v554_v49  ;;  %v501_v12 = vcvt.s32.f32 %v10803_v18  ;;  %v10870_v24 = vadd.s32 360, %v8798_v58  ;;  %v10875_v4 = vadd.f32 %v9987_v2, %v1588_v22  ;;  %v10880_v41 = vld [vmem:[#allocation2 + $0x68] sm:$0xff]   ;;  %v1591_v49 = vpop.f32.mrb[62].mxu0 }
 0x21b   : > { %v10878_v7 = vcvt.f32.s32 %v7809_v61  ;;  %7146 = vst [vmem:[#allocation2 + $0x70] sm:$0xff] %v1913_v1   ;;  %2184 = vst [vmem:[#allocation3 + $0x150] sm:$0xff] %v1913_v1  ;;  %v10886_v48 = vsub.s32 %v13594_v26, %v710_v29  ;;  %v13595_v22 = vld [vmem:[#allocation20_spill] sm:$0xff]  ;;  %v10893_v53 = vcvt.f32.s32 %v7811_v38  ;;  %v2491_v61 = vshrl.u32 %v10748_v44, 16  ;;  %v7424_v42 = vpop.f32.mrb[63].mxu0 }
 0x21c   : > { %v10891_v60 = vsub.s32 %v13595_v22, %v711_v20  ;;  %v13118_v36 = vmax.f32 %v10875_v4, 0.0  ;;  %v10898_v1 = vadd.f32 %v9987_v2, %v1591_v49  ;;  %vm13596_vm10 = vcmp.lt.s32.totalorder %v10351_v50, 16  ;;  %vm8174_vm2 = vmpackc.low %vm10325_vm0, %vm10309_vm9  ;;  %v13600_v2 = vld [vmem:[#allocation30_spill] sm:$0xff]  ;;  %v13602_v20 = vld [vmem:[#allocation31_spill] sm:$0xff] }
 0x21d   : > { %vm13597_vm15 = vcmp.ge.s32.totalorder %v10351_v50, 0  ;;  %v2495_v11 = vshll.u32 %v10872_v32, 16  ;;  %v13601_v29 = vmax.f32 %v13600_v2, 0.0  ;;  %v13603_v44 = vmax.f32 %v13602_v20, 0.0  ;;  %v1596_v20 = vpop.f32.mrb[64].mxu0 }
 0x21e   : > { %vm10904_vm3 = vmand %vm13597_vm15, %vm13596_vm10  ;;  %v13119_v50 = vrot.slane %v10880_v41, 1  ;;  %vm13604_vm10 = vcmp.lt.s32.totalorder %v10459_v63, 16  ;;  %vm13605_vm15 = vcmp.ge.s32.totalorder %v10459_v63, 0  ;;  %v555_v30 = vadd.f32 0.5, %v501_v12 }
 0x21f   : > { %v8175_v26 = vpack.c.bf16 %v13603_v44, %v13601_v29  ;;  %vm10923_vm7 = vmand %vm13605_vm15, %vm13604_vm10  ;;  %v502_v34 = vcvt.s32.f32 %v10855_v9  ;;  %v10931_v42 = vadd.s32 368, %v8798_v58  ;;  %v13117_v49 = vmax.f32 %v10898_v1, 0.0 }
 0x220   : > { %vm13608_vm0 = vcmp.le.s32.totalorder %v10629_v55, 16  ;;  %v2493_v22 = vor.u32 %v2491_v61, %v2489_v37  ;;  %v2497_v2 = vrot.slane %v2495_v11, 1  ;;  %v714_v12 = vmul.u32 24, %v10878_v7  ;;  %v13626_v61 = vld [vmem:[#allocation22_spill] sm:$0xff] }
 0x221   : > { %8176 = vmatmul.mubr.msk.bf16.gmra.mrb[44].mxu1 %vm8174_vm2, %v8175_v26  ;;  %vm10938_vm2 = vmand %vm10861_vm5, %vm13608_vm0  ;;  %vm13611_vm11 = vcmp.ge.s32.totalorder %v10638_v5, 1  ;;  %vm13614_vm5 = vcmask 1046528   ;;  %v10959_v40 = vadd.s32 4294967295, %v10878_v7  ;;  %v7813_v11 = vtrunc.f32 %v10866_v35 }
 0x222   : > { %vm10949_vm9 = vmand %vm10904_vm3, %vm13611_vm11  ;;  %v2885_v37 = vsel %vm13614_vm5, %v2882_v52, %v13119_v50  ;;  %v1875_v8 = vsel %vm10821_vm13, %v13118_v36, 0.0  ;;  %v1876_v29 = vsel %vm10849_vm6, %v13117_v49, 0.0  ;;  %vm13615_vm11 = vcmp.ge.s32.totalorder %v10643_v15, 1 }
 0x223   : > { %2953 = vst [vmem:[#allocation3 + $0x130] sm:$0xff] %v2885_v37  ;;  %7509 = vmatprep.mubr.bf16.mxu0 %v2885_v37  ;;  %vm10975_vm3 = vmand %vm10923_vm7, %vm13615_vm11  ;;  %vm13618_vm0 = vsmask.f32 7424  ;;  %v503_v7 = vcvt.s32.f32 %v10870_v24  ;;  %v1914_v35 = vpack.c.bf16 %v1876_v29, %v1875_v8  ;;  %vm13619_vm5 = vcmp.lt.s32.totalorder %v10575_v43, 16  ;;  %v10993_v37 = vld [vmem:[#allocation2 + $0x70] sm:$0xff]   ;;  %v7427_v29 = vpop.f32.mrb[65].mxu0 }
 0x224   : > { %v2498_v52 = vsel %vm13618_vm0, %v2493_v22, %v2497_v2  ;;  %vm13620_vm10 = vcmp.ge.s32.totalorder %v10575_v43, 0  ;;  %v10990_v26 = vmul.f32 0.041666668, %v555_v30  ;;  %v556_v38 = vadd.f32 0.5, %v502_v34  ;;  %v10998_v8 = vld [vmem:[%s13034_s2] ss:$0 sm:$0xff] }
 0x225   : > { %2650 = vst [vmem:[#allocation3 + $0x128] sm:$0xff] %v2498_v52  ;;  %3424 = vmatprep.mubr.bf16.mxu1 %v2498_v52  ;;  %vm10985_vm15 = vmand %vm13620_vm10, %vm13619_vm5  ;;  %v504_v22 = vcvt.s32.f32 %v10931_v42  ;;  %v11001_v43 = vadd.f32 %v10998_v8, %v1596_v20  ;;  %v13623_v52 = vmul.u32 24, %v10755_v62  ;;  %v13624_v30 = vld [vmem:[#allocation21_spill] sm:$0xff]  ;;  %v11009_v34 = vld [vmem:[#allocation2 + $0x70] sm:$0xff]   ;;  %v1599_v36 = vpop.f32.mrb[66].mxu0  ;;  %v13625_v20 = vmul.u32 24, %v10765_v51 }
 0x226   : > { %7147 = vst [vmem:[#allocation2 + $0x78] sm:$0xff] %v1914_v35   ;;  %2185 = vst [vmem:[#allocation3 + $0x168] sm:$0xff] %v1914_v35  ;;  %v11018_v50 = vcvt.f32.s32 %v7813_v11  ;;  %v2499_v62 = vshrl.u32 %v10872_v32, 16  ;;  %v7428_v35 = vpop.f32.mrb[67].mxu0  ;;  %vm13627_vm5 = vcmp.ge.s32.totalorder %v10763_v31, 1  ;;  %v2503_v51 = vshll.u32 %v10993_v37, 16 }
 0x227   : > { %v11007_v49 = vsub.s32 %v13624_v30, %v13623_v52  ;;  %v11016_v29 = vsub.s32 %v13626_v61, %v13625_v20  ;;  %v1715_v52 = vmax.f32 %v11001_v43, 0.0  ;;  %v11023_v30 = vadd.f32 %v10998_v8, %v1599_v36  ;;  %vm11029_vm11 = vmand %vm10985_vm15, %vm13627_vm5  ;;  %v1604_v35 = vpop.f32.mrb[68].mxu0 }
 0x228   : > { %vm13630_vm10 = vcmp.le.s32.totalorder %v10638_v5, 16  ;;  %v13631_v36 = vmov 0  ;;  %vm8177_vm15 = vmpackc.low %vm10476_vm4, %vm10452_vm12  ;;  %v13633_v32 = vmax.f32 %v10500_v16, 0.0  ;;  %v13634_v61 = vmax.f32 %v10523_v17, 0.0 }
 0x229   : > { %vm11039_vm7 = vmand %vm10949_vm9, %vm13630_vm10  ;;  %v2886_v44 = vrot.slane %v11009_v34, 1  ;;  %v557_v5 = vadd.f32 0.5, %v503_v7  ;;  %v558_v55 = vadd.f32 0.5, %v504_v22  ;;  %v11054_v20 = vadd.s32 376, %v8798_v58 }
 0x22a   : > { %v13632_v36 = vsel %vm11039_vm7, 4294967295, %v13631_v36  ;;  %v8178_v11 = vpack.c.bf16 %v13634_v61, %v13633_v32  ;;  %v1716_v14 = vmax.f32 %v11023_v30, 0.0  ;;  %vm13635_vm9 = vcmp.le.s32.totalorder %v10643_v15, 16  ;;  %v11955_v30 = vld [vmem:[#allocation3 + $0x38] sm:$0xff] }
 0x22b   : > { %vm11061_vm12 = vmand %vm10975_vm3, %vm13635_vm9  ;;  %v2501_v16 = vor.u32 %v2499_v62, %v2497_v2  ;;  %v2505_v17 = vrot.slane %v2503_v51, 1  ;;  %v7815_v7 = vtrunc.f32 %v10990_v26  ;;  %vm13638_vm10 = vcmp.le.s32.totalorder %v10763_v31, 16 }
 0x22c   : > { %8179 = vmatmul.mubr.msk.bf16.gmra.mrb[48].mxu1 %vm8177_vm15, %v8178_v11  ;;  %vm11071_vm15 = vmand %vm11029_vm11, %vm13638_vm10  ;;  %v13641_v15 = vrot.slane %v10880_v41, 1  ;;  %vm13642_vm3 = vcmask 1046528   ;;  %v11081_v2 = vsub.s32 %v10482_v13, %v714_v12  ;;  %v11084_v62 = vadd.s32 4294967295, %v10893_v53 }
 0x22d   : > { %v11086_v26 = vmul.f32 0.041666668, %v556_v38  ;;  %v1877_v28 = vsel %vm10938_vm2, %v1715_v52, 0.0  ;;  %v1878_v31 = vsel %vm11039_vm7, %v1716_v14, 0.0  ;;  %vm13643_vm11 = vcmp.lt.s32.totalorder %v10709_v39, 16  ;;  %v11121_v11 = vld [vmem:[#allocation2 + $0x78] sm:$0xff]  }
 0x22e   : > { %v2887_v23 = vsel %vm13642_vm3, %v13641_v15, %v2886_v44  ;;  %vm13644_vm9 = vcmp.ge.s32.totalorder %v10709_v39, 0  ;;  %vm13647_vm3 = vmmov %vm13618_vm0  ;;  %v716_v12 = vmul.u32 24, %v11018_v50  ;;  %v1915_v38 = vpack.c.bf16 %v1878_v31, %v1877_v28 }
 0x22f   : > { %2954 = vst [vmem:[#allocation3 + $0x148] sm:$0xff] %v2887_v23  ;;  %7510 = vmatmul.mubr.bf16.gmra.mrb[132].mxu0 %v2887_v23  ;;  %vm11100_vm10 = vmand %vm13644_vm9, %vm13643_vm11  ;;  %v2506_v41 = vsel %vm13647_vm3, %v2501_v16, %v2505_v17  ;;  %vm13648_vm4 = vcmp.lt.s32.totalorder %v10743_v45, 16  ;;  %vm13649_vm5 = vcmp.ge.s32.totalorder %v10743_v45, 0  ;;  %v11116_v39 = vmul.f32 0.041666668, %v557_v5  ;;  %v7431_v45 = vpop.f32.mrb[69].mxu0 }
 0x230   : > { %2651 = vst [vmem:[#allocation3 + $0x140] sm:$0xff] %v2506_v41  ;;  %3432 = vmatprep.mubr.bf16.mxu1 %v2506_v41  ;;  %vm11110_vm0 = vmand %vm13649_vm5, %vm13648_vm4  ;;  %v11118_v32 = vmul.f32 0.041666668, %v558_v55  ;;  %v505_v61 = vcvt.s32.f32 %v11054_v20  ;;  %v11124_v16 = vadd.f32 %v10998_v8, %v1604_v35  ;;  %v11128_v15 = vcvt.f32.s32 %v7815_v7  ;;  %v11130_v23 = vld [vmem:[#allocation2 + $0x78] sm:$0xff]   ;;  %v1607_v5 = vpop.f32.mrb[70].mxu0 }
 0x231   : > { %7148 = vst [vmem:[#allocation2 + $0x80] sm:$0xff] %v1915_v38   ;;  %2186 = vst [vmem:[#allocation3 + $0x180] sm:$0xff] %v1915_v38  ;;  %v13652_v55 = vmul.u32 24, %v10893_v53  ;;  %v7817_v31 = vtrunc.f32 %v11086_v26  ;;  %v2507_v41 = vshrl.u32 %v10993_v37, 16  ;;  %v11142_v7 = vadd.f32 %v10998_v8, %v1607_v5  ;;  %v7432_v45 = vpop.f32.mrb[71].mxu0 }
 0x232   : > { %v13123_v35 = vmax.f32 %v11124_v16, 0.0  ;;  %vm13653_vm5 = vcmp.ge.s32.totalorder %v10886_v48, 1  ;;  %vm13656_vm11 = vcmp.ge.s32.totalorder %v10891_v60, 1  ;;  %vm13659_vm7 = vnez %v13549_v25 }
 0x233   : > { %v11136_v28 = vsub.s32 %v10497_v47, %v13652_v55  ;;  %vm11148_vm3 = vmand %vm11100_vm10, %vm13653_vm5  ;;  %v2511_v47 = vshll.u32 %v11121_v11, 16  ;;  %v13660_v37 = vmax.f32 %v10623_v33, 0.0  ;;  %v13661_v26 = vmax.f32 %v10649_v6, 0.0 }
 0x234   : > { %vm11158_vm9 = vmand %vm11110_vm0, %vm13656_vm11  ;;  %v2888_v5 = vrot.slane %v11130_v23, 1  ;;  %v11173_v51 = vadd.s32 4294967295, %v11018_v50  ;;  %v559_v55 = vadd.f32 0.5, %v505_v61  ;;  %v11176_v45 = vadd.s32 384, %v8798_v58 }
 0x235   : > { %vm8180_vm10 = vmpackc.low %vm13659_vm7, %vm10540_vm1  ;;  %v8181_v13 = vpack.c.bf16 %v13661_v26, %v13660_v37  ;;  %v13122_v21 = vmax.f32 %v11142_v7, 0.0  ;;  %vm13662_vm1 = vcmp.lt.s32.totalorder %v10831_v59, 16  ;;  %vm13663_vm7 = vcmp.ge.s32.totalorder %v10831_v59, 0  ;;  %v4173_v37 = vld [vmem:[#allocation3 + $0x68] sm:$0xff] }
 0x236   : > { %vm11183_vm0 = vmand %vm13663_vm7, %vm13662_vm1  ;;  %v2509_v6 = vor.u32 %v2507_v41, %v2505_v17  ;;  %v2513_v25 = vrot.slane %v2511_v47, 1  ;;  %v717_v61 = vmul.u32 24, %v11128_v15  ;;  %vm13666_vm5 = vcmp.le.s32.totalorder %v10886_v48, 16 }
 0x237   : > { %8182 = vmatmul.mubr.msk.bf16.gmra.mrb[52].mxu1 %vm8180_vm10, %v8181_v13  ;;  %vm11194_vm4 = vmand %vm11148_vm3, %vm13666_vm5  ;;  %vm13669_vm1 = vcmask 1046528   ;;  %v11204_v17 = vadd.s32 4294967295, %v11128_v15  ;;  %v7819_v41 = vtrunc.f32 %v11116_v39  ;;  %v7821_v47 = vtrunc.f32 %v11118_v32  ;;  %v1612_v15 = vpop.f32.mrb[72].mxu0 }
 0x238   : > { %v2889_v59 = vsel %vm13669_vm1, %v2886_v44, %v2888_v5  ;;  %v1879_v48 = vsel %vm11061_vm12, %v13123_v35, 0.0  ;;  %v1880_v38 = vsel %vm11071_vm15, %v13122_v21, 0.0  ;;  %vm13670_vm3 = vcmp.le.s32.totalorder %v10891_v60, 16  ;;  %v11242_v13 = vld [vmem:[#allocation2 + $0x80] sm:$0xff]   ;;  %v7435_v33 = vpop.f32.mrb[73].mxu0 }
 0x239   : > { %vm11220_vm5 = vmand %vm11158_vm9, %vm13670_vm3  ;;  %2955 = vst [vmem:[#allocation3 + $0x160] sm:$0xff] %v2889_v59  ;;  %7513 = vmatprep.mubr.bf16.mxu0 %v2889_v59  ;;  %vm13673_vm7 = vsmask.f32 7424  ;;  %v11225_v39 = vcvt.f32.s32 %v7817_v31  ;;  %v1916_v32 = vpack.c.bf16 %v1880_v38, %v1879_v48  ;;  %vm13674_vm1 = vcmp.ge.s32.totalorder %v11007_v49, 1  ;;  %v11248_v59 = vld [vmem:[#allocation2 + $0x80] sm:$0xff]   ;;  %v1615_v48 = vpop.f32.mrb[74].mxu0 }
 0x23a   : > { %v2514_v44 = vsel %vm13673_vm7, %v2509_v6, %v2513_v25  ;;  %vm11231_vm11 = vmand %vm11183_vm0, %vm13674_vm1  ;;  %v11236_v53 = vmul.f32 0.041666668, %v559_v55  ;;  %v506_v26 = vcvt.s32.f32 %v11176_v45  ;;  %v11240_v31 = vadd.s32 392, %v8798_v58  ;;  %v7436_v35 = vpop.f32.mrb[75].mxu0 }
 0x23b   : > { %2652 = vst [vmem:[#allocation3 + $0x158] sm:$0xff] %v2514_v44  ;;  %3440 = vmatprep.mubr.bf16.mxu1 %v2514_v44  ;;  %v11245_v6 = vadd.f32 %v10998_v8, %v1612_v15  ;;  %7149 = vst [vmem:[#allocation2 + $0x88] sm:$0xff] %v1916_v32   ;;  %v11254_v55 = vsub.s32 %v10682_v19, %v716_v12  ;;  %v11257_v38 = vsub.s32 %v10803_v18, %v717_v61  ;;  %v1620_v19 = vpop.f32.mrb[76].mxu0 }
 0x23c   : > { %2187 = vst [vmem:[#allocation3 + $0x198] sm:$0xff] %v1916_v32  ;;  %v7820_v44 = vcvt.f32.s32 %v7819_v41  ;;  %v11259_v15 = vcvt.f32.s32 %v7821_v47  ;;  %v2515_v33 = vshrl.u32 %v11121_v11, 16  ;;  %v11264_v32 = vadd.f32 %v10998_v8, %v1615_v48  ;;  %vm8183_vm9 = vmpackc.low %vm10699_vm14, %vm10689_vm8 }
 0x23d   : > { %v1719_v21 = vmax.f32 %v11245_v6, 0.0  ;;  %vm13677_vm7 = vcmp.lt.s32.totalorder %v10835_v27, 16  ;;  %vm13678_vm1 = vcmp.ge.s32.totalorder %v10835_v27, 0  ;;  %v2519_v18 = vshll.u32 %v11242_v13, 16 }
 0x23e   : > { %vm11270_vm3 = vmand %vm13678_vm1, %vm13677_vm7  ;;  %v13681_v50 = vmax.f32 %v10751_v57, 0.0  ;;  %v13682_v12 = vmax.f32 %v10771_v10, 0.0  ;;  %v2890_v27 = vrot.slane %v11248_v59, 1  ;;  %vm13683_vm7 = vcmp.lt.s32.totalorder %v10959_v40, 16 }
 0x23f   : > { %vm13684_vm1 = vcmp.ge.s32.totalorder %v10959_v40, 0  ;;  %v718_v3 = vmul.u32 24, %v11225_v39  ;;  %v560_v54 = vadd.f32 0.5, %v506_v26  ;;  %v507_v10 = vcvt.s32.f32 %v11240_v31 }
 0x240   : > { %v8184_v11 = vpack.c.bf16 %v13682_v12, %v13681_v50  ;;  %vm11289_vm10 = vmand %vm13684_vm1, %vm13683_vm7  ;;  %v1720_v57 = vmax.f32 %v11264_v32, 0.0  ;;  %vm13687_vm14 = vcmp.le.s32.totalorder %v11007_v49, 16  ;;  %v2517_v61 = vor.u32 %v2515_v33, %v2513_v25  ;;  %v8078_v32 = vld [vmem:[%s8689_s13 + $0x14] sm:$0xff]  }
 0x241   : > { %v2521_v41 = vrot.slane %v2519_v18, 1  ;;  %v11309_v47 = vadd.s32 4294967295, %v11225_v39  ;;  %vm13690_vm0 = vcmp.ge.s32.totalorder %v11016_v29, 1  ;;  %v719_v60 = vmul.u32 24, %v7820_v44 }
 0x242   : > { %8185 = vmatmul.mubr.msk.bf16.gmra.mrb[56].mxu1 %vm8183_vm9, %v8184_v11  ;;  %vm11302_vm9 = vmand %vm11231_vm11, %vm13687_vm14  ;;  %vm13693_vm11 = vcmask 1046528   ;;  %v11324_v26 = vadd.s32 4294967295, %v7820_v44  ;;  %v7823_v39 = vtrunc.f32 %v11236_v53  ;;  %v1881_v48 = vsel %vm11194_vm4, %v1719_v21, 0.0  ;;  %v11359_v35 = vld [vmem:[#allocation2 + $0x88] sm:$0xff]  }
 0x243   : > { %vm11315_vm8 = vmand %vm11270_vm3, %vm13690_vm0  ;;  %v2891_v25 = vsel %vm13693_vm11, %v2888_v5, %v2890_v27  ;;  %v1882_v33 = vsel %vm11220_vm5, %v1720_v57, 0.0  ;;  %vm13694_vm0 = vcmp.ge.s32.totalorder %v11081_v2, 1  ;;  %vm13697_vm14 = vsmask.f32 7424 }
 0x244   : > { %2956 = vst [vmem:[#allocation3 + $0x178] sm:$0xff] %v2891_v25  ;;  %7514 = vmatmul.mubr.bf16.gmra.mrb[136].mxu0 %v2891_v25  ;;  %vm11339_vm3 = vmand %vm11289_vm10, %vm13694_vm0  ;;  %v2522_v5 = vsel %vm13697_vm14, %v2517_v61, %v2521_v41  ;;  %v720_v53 = vmul.u32 24, %v11259_v15  ;;  %v1917_v44 = vpack.c.bf16 %v1882_v33, %v1881_v48  ;;  %vm13698_vm11 = vcmp.lt.s32.totalorder %v11084_v62, 16  ;;  %v7439_v25 = vpop.f32.mrb[77].mxu0  ;;  %v11368_v48 = vld [vmem:[#allocation2 + $0x88] sm:$0xff]  }
 0x245   : > { %2653 = vst [vmem:[#allocation3 + $0x170] sm:$0xff] %v2522_v5  ;;  %3448 = vmatprep.mubr.bf16.mxu1 %v2522_v5  ;;  %vm13699_vm7 = vcmp.ge.s32.totalorder %v11084_v62, 0  ;;  %v11355_v50 = vadd.s32 4294967295, %v11259_v15  ;;  %v11357_v12 = vmul.f32 0.041666668, %v560_v54  ;;  %v561_v11 = vadd.f32 0.5, %v507_v10 }
 0x246   : > { %vm11349_vm1 = vmand %vm13699_vm7, %vm13698_vm11  ;;  %v11362_v61 = vadd.f32 %v10998_v8, %v1620_v19  ;;  %v11366_v62 = vsub.s32 %v10855_v9, %v718_v3  ;;  %7150 = vst [vmem:[#allocation2 + $0x90] sm:$0xff] %v1917_v44   ;;  %v1623_v15 = vpop.f32.mrb[78].mxu0  ;;  %v11373_v54 = vsub.s32 %v10870_v24, %v719_v60  ;;  %v7824_v10 = vcvt.f32.s32 %v7823_v39 }
 0x247   : > { %2188 = vst [vmem:[#allocation3 + $0x1b0] sm:$0xff] %v1917_v44  ;;  %v2523_v33 = vshrl.u32 %v11242_v13, 16  ;;  %v11378_v9 = vadd.f32 %v10998_v8, %v1623_v15  ;;  %v7440_v3 = vpop.f32.mrb[79].mxu0  ;;  %vm13702_vm11 = vcmp.ge.s32.totalorder %v11136_v28, 1  ;;  %v2527_v24 = vshll.u32 %v11359_v35, 16 }
 0x248   : > { %v1721_v5 = vmax.f32 %v11362_v61, 0.0  ;;  %vm11384_vm0 = vmand %vm11349_vm1, %vm13702_vm11  ;;  %vm13705_vm14 = vcmp.le.s32.totalorder %v11016_v29, 16  ;;  %v13706_v13 = vmov 0  ;;  %v13708_v60 = vmax.f32 %v10875_v4, 0.0 }
 0x249   : > { %vm11394_vm10 = vmand %vm11315_vm8, %vm13705_vm14  ;;  %v13709_v39 = vmax.f32 %v10898_v1, 0.0  ;;  %v2892_v18 = vrot.slane %v11368_v48, 1  ;;  %v615_v29 = vmul.f32 0.041666668, %v561_v11  ;;  %v11409_v49 = vadd.s32 400, %v8798_v58 }
 0x24a   : > { %v13707_v13 = vsel %vm11394_vm10, 4294967295, %v13706_v13  ;;  %vm8186_vm1 = vmpackc.low %vm10849_vm6, %vm10821_vm13  ;;  %v11412_v25 = vadd.s32 408, %v8798_v58  ;;  %v1722_v56 = vmax.f32 %v11378_v9, 0.0  ;;  %vm13710_vm13 = vcmp.le.s32.totalorder %v11081_v2, 16 }
 0x24b   : > { %v8187_v19 = vpack.c.bf16 %v13709_v39, %v13708_v60  ;;  %vm11419_vm6 = vmand %vm11339_vm3, %vm13710_vm13  ;;  %v2525_v4 = vor.u32 %v2523_v33, %v2521_v41  ;;  %v2529_v1 = vrot.slane %v2527_v24, 1  ;;  %v11425_v11 = vsub.s32 %v10931_v42, %v720_v53  ;;  %v1628_v33 = vpop.f32.mrb[80].mxu0 }
 0x24c   : > { %vm13713_vm14 = vcmp.le.s32.totalorder %v11136_v28, 16  ;;  %vm13716_vm3 = vcmask 1046528   ;;  %v721_v41 = vmul.u32 24, %v7824_v10  ;;  %v11440_v23 = vadd.s32 4294967295, %v7824_v10 }
 0x24d   : > { %8188 = vmatmul.mubr.msk.bf16.gmra.mrb[60].mxu1 %vm8186_vm1, %v8187_v19  ;;  %vm11431_vm1 = vmand %vm11384_vm0, %vm13713_vm14  ;;  %v2893_v2 = vsel %vm13716_vm3, %v2890_v27, %v2892_v18  ;;  %v7825_v42 = vtrunc.f32 %v11357_v12  ;;  %v1883_v28 = vsel %vm11302_vm9, %v1721_v5, 0.0  ;;  %v1884_v53 = vsel %vm11394_vm10, %v1722_v56, 0.0  ;;  %v11475_v60 = vld [vmem:[#allocation2 + $0x90] sm:$0xff]   ;;  %v7443_v19 = vpop.f32.mrb[81].mxu0 }
 0x24e   : > { %2957 = vst [vmem:[#allocation3 + $0x190] sm:$0xff] %v2893_v2  ;;  %7517 = vmatprep.mubr.bf16.mxu0 %v2893_v2  ;;  %vm13717_vm0 = vcmp.lt.s32.totalorder %v11173_v51, 16  ;;  %vm13718_vm13 = vcmp.ge.s32.totalorder %v11173_v51, 0  ;;  %vm13721_vm3 = vsmask.f32 7424  ;;  %v11461_v12 = vadd.s32 416, %v8798_v58 }
 0x24f   : > { %vm11455_vm14 = vmand %vm13718_vm13, %vm13717_vm0  ;;  %v2530_v27 = vsel %vm13721_vm3, %v2525_v4, %v2529_v1  ;;  %v1918_v10 = vpack.c.bf16 %v1884_v53, %v1883_v28  ;;  %vm13722_vm8 = vcmp.lt.s32.totalorder %v11204_v17, 16  ;;  %vm13723_vm11 = vcmp.ge.s32.totalorder %v11204_v17, 0  ;;  %v11482_v17 = vld [vmem:[#allocation2 + $0x90] sm:$0xff]   ;;  %v1631_v4 = vpop.f32.mrb[82].mxu0 }
 0x250   : > { %2654 = vst [vmem:[#allocation3 + $0x188] sm:$0xff] %v2530_v27  ;;  %3456 = vmatprep.mubr.bf16.mxu1 %v2530_v27  ;;  %vm11467_vm7 = vmand %vm13723_vm11, %vm13722_vm8  ;;  %v7827_v51 = vtrunc.f32 %v615_v29  ;;  %v508_v44 = vcvt.s32.f32 %v11409_v49  ;;  %v509_v24 = vcvt.s32.f32 %v11412_v25  ;;  %v11478_v39 = vadd.f32 %v10998_v8, %v1628_v33  ;;  %v7444_v33 = vpop.f32.mrb[83].mxu0 }
 0x251   : > { %7151 = vst [vmem:[#allocation2 + $0x98] sm:$0xff] %v1918_v10   ;;  %2189 = vst [vmem:[#allocation3 + $0x1c8] sm:$0xff] %v1918_v10  ;;  %v11486_v29 = vsub.s32 %v11054_v20, %v721_v41  ;;  %v7826_v2 = vcvt.f32.s32 %v7825_v42  ;;  %v2531_v28 = vshrl.u32 %v11359_v35, 16  ;;  %v11491_v27 = vadd.f32 %v10998_v8, %v1631_v4 }
 0x252   : > { %v1723_v53 = vmax.f32 %v11478_v39, 0.0  ;;  %vm13726_vm11 = vcmp.ge.s32.totalorder %v11254_v55, 1  ;;  %v2535_v20 = vshll.u32 %v11475_v60, 16  ;;  %vm13729_vm0 = vcmp.ge.s32.totalorder %v11257_v38, 1 }
 0x253   : > { %vm11497_vm8 = vmand %vm11455_vm14, %vm13726_vm11  ;;  %vm13732_vm10 = vnez %v13632_v36  ;;  %v8190_v41 = vpack.c.bf16 %v1716_v14, %v1715_v52  ;;  %v2894_v42 = vrot.slane %v11482_v17, 1  ;;  %v11521_v59 = vcvt.f32.s32 %v7827_v51 }
 0x254   : > { %vm11507_vm13 = vmand %vm11467_vm7, %vm13729_vm0  ;;  %v562_v3 = vadd.f32 0.5, %v508_v44  ;;  %v563_v19 = vadd.f32 0.5, %v509_v24  ;;  %v1724_v4 = vmax.f32 %v11491_v27, 0.0  ;;  %vm13733_vm7 = vcmp.lt.s32.totalorder %v11309_v47, 16  ;;  %v1636_v24 = vpop.f32.mrb[84].mxu0 }
 0x255   : > { %vm8189_vm14 = vmpackc.low %vm13732_vm10, %vm10938_vm2  ;;  %vm13734_vm2 = vcmp.ge.s32.totalorder %v11309_v47, 0  ;;  %v2533_v43 = vor.u32 %v2531_v28, %v2529_v1  ;;  %v2537_v52 = vrot.slane %v2535_v20, 1  ;;  %v722_v14 = vmul.u32 24, %v7826_v2  ;;  %v7447_v35 = vpop.f32.mrb[85].mxu0 }
 0x256   : > { %8191 = vmatmul.mubr.msk.bf16.gmra.mrb[64].mxu1 %vm8189_vm14, %v8190_v41  ;;  %vm11528_vm10 = vmand %vm13734_vm2, %vm13733_vm7  ;;  %vm13737_vm14 = vcmp.le.s32.totalorder %v11254_v55, 16  ;;  %vm13740_vm7 = vcmask 1046528   ;;  %v11547_v47 = vadd.s32 4294967295, %v7826_v2  ;;  %v1885_v55 = vsel %vm11419_vm6, %v1723_v53, 0.0  ;;  %v1639_v63 = vpop.f32.mrb[86].mxu0 }
 0x257   : > { %vm11537_vm11 = vmand %vm11497_vm8, %vm13737_vm14  ;;  %v2895_v36 = vsel %vm13740_vm7, %v2892_v18, %v2894_v42  ;;  %v1886_v1 = vsel %vm11431_vm1, %v1724_v4, 0.0  ;;  %vm13741_vm8 = vcmp.le.s32.totalorder %v11257_v38, 16  ;;  %v13742_v48 = vmov 0 }
 0x258   : > { %vm11561_vm14 = vmand %vm11507_vm13, %vm13741_vm8  ;;  %2958 = vst [vmem:[#allocation3 + $0x1a8] sm:$0xff] %v2895_v36  ;;  %7518 = vmatmul.mubr.bf16.gmra.mrb[140].mxu0 %v2895_v36  ;;  %v510_v51 = vcvt.s32.f32 %v11461_v12  ;;  %v1919_v44 = vpack.c.bf16 %v1886_v1, %v1885_v55  ;;  %vm13745_vm0 = vcmp.ge.s32.totalorder %v11366_v62, 1  ;;  %v11577_v2 = vadd.s32 4294967295, %v11521_v59  ;;  %v11579_v10 = vld [vmem:[#allocation2 + $0x98] sm:$0xff]   ;;  %v7448_v55 = vpop.f32.mrb[87].mxu0 }
 0x259   : > { %v13743_v48 = vsel %vm11561_vm14, 4294967295, %v13742_v48  ;;  %vm13744_vm7 = vmmov %vm13721_vm3  ;;  %v616_v28 = vmul.f32 0.041666668, %v562_v3  ;;  %v617_v33 = vmul.f32 0.041666668, %v563_v19  ;;  %v11582_v20 = vadd.f32 %v10998_v8, %v1636_v24  ;;  %v11585_v41 = vld [vmem:[#allocation2 + $0x98] sm:$0xff]  }
 0x25a   : > { %v2538_v18 = vsel %vm13744_vm7, %v2533_v43, %v2537_v52  ;;  %vm11571_vm2 = vmand %vm11528_vm10, %vm13745_vm0  ;;  %7152 = vst [vmem:[#allocation2 + $0xa0] sm:$0xff] %v1919_v44   ;;  %v11589_v43 = vsub.s32 %v11176_v45, %v722_v14  ;;  %v2539_v3 = vshrl.u32 %v11475_v60, 16  ;;  %v11594_v36 = vadd.f32 %v10998_v8, %v1639_v63 }
 0x25b   : > { %2655 = vst [vmem:[#allocation3 + $0x1a0] sm:$0xff] %v2538_v18  ;;  %3464 = vmatprep.mubr.bf16.mxu1 %v2538_v18  ;;  %2190 = vst [vmem:[#allocation3 + $0x1e0] sm:$0xff] %v1919_v44  ;;  %v1725_v19 = vmax.f32 %v11582_v20, 0.0  ;;  %vm13748_vm8 = vcmp.lt.s32.totalorder %v11324_v26, 16  ;;  %vm13749_vm7 = vcmp.ge.s32.totalorder %v11324_v26, 0  ;;  %v2543_v18 = vshll.u32 %v11579_v10, 16 }
 0x25c   : > { %vm11600_vm10 = vmand %vm13749_vm7, %vm13748_vm8  ;;  %v13752_v45 = vmax.f32 %v11124_v16, 0.0  ;;  %v13753_v60 = vmax.f32 %v11142_v7, 0.0  ;;  %v2896_v26 = vrot.slane %v11585_v41, 1  ;;  %vm13754_vm8 = vcmp.lt.s32.totalorder %v11355_v50, 16 }
 0x25d   : > { %vm8192_vm13 = vmpackc.low %vm11071_vm15, %vm11061_vm12  ;;  %vm13755_vm7 = vcmp.ge.s32.totalorder %v11355_v50, 0  ;;  %v7829_v46 = vtrunc.f32 %v616_v28  ;;  %v564_v24 = vadd.f32 0.5, %v510_v51  ;;  %v11624_v22 = vadd.s32 424, %v8798_v58 }
 0x25e   : > { %v8193_v14 = vpack.c.bf16 %v13753_v60, %v13752_v45  ;;  %vm11619_vm3 = vmand %vm13755_vm7, %vm13754_vm8  ;;  %v1726_v16 = vmax.f32 %v11594_v36, 0.0  ;;  %vm13758_vm12 = vcmp.le.s32.totalorder %v11366_v62, 16  ;;  %v2541_v50 = vor.u32 %v2539_v3, %v2537_v52 }
 0x25f   : > { %vm11631_vm15 = vmand %vm11571_vm2, %vm13758_vm12  ;;  %v2545_v35 = vrot.slane %v2543_v18, 1  ;;  %vm13761_vm8 = vcmp.ge.s32.totalorder %v11373_v54, 1  ;;  %vm13764_vm0 = vcmask 1046528   ;;  %v723_v51 = vmul.u32 24, %v11521_v59 }
 0x260   : > { %8194 = vmatmul.mubr.msk.bf16.gmra.mrb[68].mxu1 %vm8192_vm13, %v8193_v14  ;;  %vm11640_vm7 = vmand %vm11600_vm10, %vm13761_vm8  ;;  %v2897_v62 = vsel %vm13764_vm0, %v2894_v42, %v2896_v26  ;;  %v7831_v52 = vtrunc.f32 %v617_v33  ;;  %v1887_v38 = vsel %vm11537_vm11, %v1725_v19, 0.0  ;;  %v1888_v28 = vsel %vm11561_vm14, %v1726_v16, 0.0  ;;  %v1644_v33 = vpop.f32.mrb[88].mxu0 }
 0x261   : > { %2959 = vst [vmem:[#allocation3 + $0x1c0] sm:$0xff] %v2897_v62  ;;  %7521 = vmatprep.mubr.bf16.mxu0 %v2897_v62  ;;  %vm13765_vm10 = vcmp.ge.s32.totalorder %v11425_v11, 1  ;;  %vm13768_vm12 = vsmask.f32 7424  ;;  %vm888_vm8 = vcmp.ge.s32.totalorder %v11577_v2, 0  ;;  %v1920_v59 = vpack.c.bf16 %v1888_v28, %v1887_v38  ;;  %v11677_v1 = vld [vmem:[#allocation2 + $0xa0] sm:$0xff]  }
 0x262   : > { %vm11661_vm0 = vmand %vm11619_vm3, %vm13765_vm10  ;;  %v2546_v42 = vsel %vm13768_vm12, %v2541_v50, %v2545_v35  ;;  %vm13769_vm13 = vcmp.lt.s32.totalorder %v11440_v23, 16  ;;  %vm13770_vm2 = vcmp.ge.s32.totalorder %v11440_v23, 0  ;;  %v7830_v63 = vcvt.f32.s32 %v7829_v46  ;;  %v7451_v45 = vpop.f32.mrb[89].mxu0  ;;  %v11682_v60 = vld [vmem:[#allocation2 + $0xa0] sm:$0xff]  }
 0x263   : > { %2656 = vst [vmem:[#allocation3 + $0x1b8] sm:$0xff] %v2546_v42  ;;  %3472 = vmatprep.mubr.bf16.mxu1 %v2546_v42  ;;  %vm11671_vm14 = vmand %vm13770_vm2, %vm13769_vm13  ;;  %v618_v3 = vmul.f32 0.041666668, %v564_v24  ;;  %v511_v55 = vcvt.s32.f32 %v11624_v22  ;;  %v11680_v18 = vadd.f32 %v10998_v8, %v1644_v33  ;;  %v1647_v23 = vpop.f32.mrb[90].mxu0  ;;  %v11685_v14 = vsub.s32 %v11240_v31, %v723_v51 }
 0x264   : > { %7153 = vst [vmem:[#allocation2 + $0xa8] sm:$0xff] %v1920_v59   ;;  %2191 = vst [vmem:[#allocation3 + $0x1f8] sm:$0xff] %v1920_v59  ;;  %v11687_v44 = vcvt.f32.s32 %v7831_v52  ;;  %v2547_v46 = vshrl.u32 %v11579_v10, 16  ;;  %v11692_v50 = vadd.f32 %v10998_v8, %v1647_v23  ;;  %v7452_v62 = vpop.f32.mrb[91].mxu0  ;;  %vm13773_vm13 = vcmp.ge.s32.totalorder %v11486_v29, 1  ;;  %v4166_v10 = vld [vmem:[#allocation3 + $0x30] sm:$0xff] }
 0x265   : > { %v1727_v24 = vmax.f32 %v11680_v18, 0.0  ;;  %vm11698_vm2 = vmand %vm11671_vm14, %vm13773_vm13  ;;  %v2551_v31 = vshll.u32 %v11677_v1, 16  ;;  %vm13776_vm12 = vcmp.le.s32.totalorder %v11373_v54, 16  ;;  %v8196_v51 = vpack.c.bf16 %v1720_v57, %v1719_v21  ;;  %v1652_v33 = vpop.f32.mrb[92].mxu0 }
 0x266   : > { %vm11708_vm3 = vmand %vm11640_vm7, %vm13776_vm12  ;;  %v2898_v52 = vrot.slane %v11682_v60, 1  ;;  %vm942_vm13 = vcmp.lt.s32.totalorder %v11577_v2, 16  ;;  %v11722_v54 = vadd.s32 4294967295, %v7830_v63  ;;  %v565_v58 = vadd.f32 0.5, %v511_v55  ;;  %v7455_v45 = vpop.f32.mrb[93].mxu0 }
 0x267   : > { %vm8195_vm14 = vmpackc.low %vm11220_vm5, %vm11194_vm4  ;;  %v1728_v28 = vmax.f32 %v11692_v50, 0.0  ;;  %vm13779_vm7 = vcmp.le.s32.totalorder %v11425_v11, 16  ;;  %v2549_v34 = vor.u32 %v2547_v46, %v2545_v35  ;;  %v2553_v21 = vrot.slane %v2551_v31, 1  ;;  %v1655_v23 = vpop.f32.mrb[94].mxu0 }
 0x268   : > { %8197 = vmatmul.mubr.msk.bf16.gmra.mrb[72].mxu1 %vm8195_vm14, %v8196_v51  ;;  %vm11729_vm4 = vmand %vm11661_vm0, %vm13779_vm7  ;;  %v724_v6 = vmul.u32 24, %v7830_v63  ;;  %vm13782_vm5 = vcmp.le.s32.totalorder %v11486_v29, 16  ;;  %vm13785_vm14 = vcmask 1046528   ;;  %vm1050_vm10 = vcmp.ge.s32.totalorder %v11685_v14, 1  ;;  %v7456_v31 = vpop.f32.mrb[95].mxu0 }
 0x269   : > { %vm11737_vm12 = vmand %vm11698_vm2, %vm13782_vm5  ;;  %v2899_v57 = vsel %vm13785_vm14, %v2896_v26, %v2898_v52  ;;  %v7833_v11 = vtrunc.f32 %v618_v3  ;;  %v1889_v35 = vsel %vm11631_vm15, %v1727_v24, 0.0  ;;  %v1890_v29 = vsel %vm11708_vm3, %v1728_v28, 0.0 }
 0x26a   : > { %2960 = vst [vmem:[#allocation3 + $0x1d8] sm:$0xff] %v2899_v57  ;;  %7522 = vmatmul.mubr.bf16.gmra.mrb[144].mxu0 %v2899_v57  ;;  %vm13786_vm2 = vcmp.lt.s32.totalorder %v11547_v47, 16  ;;  %vm13787_vm7 = vcmp.ge.s32.totalorder %v11547_v47, 0  ;;  %vm13790_vm14 = vsmask.f32 7424  ;;  %v725_v42 = vmul.u32 24, %v11687_v44  ;;  %vm11766_vm0 = vmand %vm888_vm8, %vm942_vm13 }
 0x26b   : > { %vm11756_vm5 = vmand %vm13787_vm7, %vm13786_vm2  ;;  %v2554_v17 = vsel %vm13790_vm14, %v2549_v34, %v2553_v21  ;;  %v1921_v59 = vpack.c.bf16 %v1890_v29, %v1889_v35  ;;  %v11772_v47 = vadd.s32 4294967295, %v11687_v44  ;;  %v619_v63 = vmul.f32 0.041666668, %v565_v58  ;;  %v11774_v3 = vld [vmem:[#allocation2 + $0xa8] sm:$0xff]  }
 0x26c   : > { %2657 = vst [vmem:[#allocation3 + $0x1d0] sm:$0xff] %v2554_v17  ;;  %3480 = vmatprep.mubr.bf16.mxu1 %v2554_v17  ;;  %v11777_v55 = vadd.f32 %v10998_v8, %v1652_v33  ;;  %v11780_v60 = vsub.s32 %v11409_v49, %v724_v6  ;;  %v11782_v2 = vld [vmem:[#allocation2 + $0xa8] sm:$0xff]   ;;  %v7834_v46 = vcvt.f32.s32 %v7833_v11  ;;  %v2555_v62 = vshrl.u32 %v11677_v1, 16  ;;  %vm11798_vm7 = vmand %vm11766_vm0, %vm1050_vm10  ;;  %v1660_v11 = vpop.f32.mrb[96].mxu0 }
 0x26d   : > { %7154 = vst [vmem:[#allocation2 + $0xb0] sm:$0xff] %v1921_v59   ;;  %2192 = vst [vmem:[#allocation3 + $0x210] sm:$0xff] %v1921_v59  ;;  %v11787_v38 = vadd.f32 %v10998_v8, %v1655_v23  ;;  %vm13793_vm8 = vcmp.ge.s32.totalorder %v11589_v43, 1  ;;  %v2559_v49 = vshll.u32 %v11774_v3, 16  ;;  %vm13796_vm14 = vnez %v13707_v13 }
 0x26e   : > { %v1729_v44 = vmax.f32 %v11777_v55, 0.0  ;;  %vm1103_vm13 = vmand %vm11756_vm5, %vm13793_vm8  ;;  %v8199_v1 = vpack.c.bf16 %v1722_v56, %v1721_v5  ;;  %v2900_v58 = vrot.slane %v11782_v2, 1  ;;  %vm943_vm5 = vcmp.lt.s32.totalorder %v11722_v54, 16 }
 0x26f   : > { %vm8198_vm2 = vmpackc.low %vm13796_vm14, %vm11302_vm9  ;;  %v11813_v34 = vsub.s32 %v11412_v25, %v725_v42  ;;  %v7835_v6 = vtrunc.f32 %v619_v63  ;;  %v1730_v57 = vmax.f32 %v11787_v38, 0.0  ;;  %v2557_v40 = vor.u32 %v2555_v62, %v2553_v21  ;;  %v7459_v42 = vpop.f32.mrb[97].mxu0  ;;  %v11872_v62 = vld [vmem:[#allocation9 + $0x200] sm:$0xff]  }
 0x270   : > { %8200 = vmatmul.mubr.msk.bf16.gmra.mrb[76].mxu1 %vm8198_vm2, %v8199_v1  ;;  %v2561_v13 = vrot.slane %v2559_v49, 1  ;;  %vm13797_vm9 = vcmp.le.s32.totalorder %v11589_v43, 16  ;;  %vm13800_vm2 = vcmask 1046528   ;;  %v726_v9 = vmul.u32 24, %v7834_v46  ;;  %7661 = vmatprep.subr.bf16.mxu0 %v11872_v62 }
 0x271   : > { %vm11819_vm0 = vmand %vm1103_vm13, %vm13797_vm9  ;;  %v2901_v5 = vsel %vm13800_vm2, %v2898_v52, %v2900_v58  ;;  %v1891_v25 = vsel %vm11729_vm4, %v1729_v44, 0.0  ;;  %v1892_v56 = vsel %vm11737_vm12, %v1730_v57, 0.0  ;;  %vm13801_vm13 = vcmp.le.s32.totalorder %v11685_v14, 16 }
 0x272   : > { %vm11838_vm9 = vmand %vm11798_vm7, %vm13801_vm13  ;;  %2961 = vst [vmem:[#allocation3 + $0x1f0] sm:$0xff] %v2901_v5  ;;  %7525 = vmatprep.mubr.bf16.mxu0 %v2901_v5  ;;  %vm13804_vm2 = vsmask.f32 7424  ;;  %vm944_vm8 = vcmp.lt.s32.totalorder %v11772_v47, 16  ;;  %v1922_v21 = vpack.c.bf16 %v1892_v56, %v1891_v25  ;;  %vm13805_vm14 = vcmp.ge.s32.totalorder %v11722_v54, 0  ;;  %v1663_v54 = vpop.f32.mrb[98].mxu0 }
 0x273   : > { %v2562_v52 = vsel %vm13804_vm2, %v2557_v40, %v2561_v13  ;;  %vm11848_vm10 = vmand %vm13805_vm14, %vm943_vm5  ;;  %vm1052_vm7 = vcmp.ge.s32.totalorder %v11813_v34, 1  ;;  %v837_v35 = vadd.s32 4294967295, %v7834_v46  ;;  %v7836_v29 = vcvt.f32.s32 %v7835_v6  ;;  %v7460_v2 = vpop.f32.mrb[99].mxu0 }
 0x274   : > { %2658 = vst [vmem:[#allocation3 + $0x1e8] sm:$0xff] %v2562_v52  ;;  %3488 = vmatprep.mubr.bf16.mxu1 %v2562_v52  ;;  %v11853_v26 = vld [vmem:[#allocation2 + $0xb0] sm:$0xff]   ;;  %v1661_v17 = vadd.f32 %v10998_v8, %v1660_v11  ;;  %7155 = vst [vmem:[#allocation2 + $0xb8] sm:$0xff] %v1922_v21   ;;  %v11859_v33 = vsub.s32 %v11461_v12, %v726_v9  ;;  %v2563_v41 = vshrl.u32 %v11774_v3, 16  ;;  %vm13808_vm5 = vcmp.ge.s32.totalorder %v11780_v60, 1 }
 0x275   : > { %v11856_v59 = vld [vmem:[#allocation2 + $0xb0] sm:$0xff]   ;;  %2193 = vst [vmem:[#allocation3 + $0x228] sm:$0xff] %v1922_v21  ;;  %v1664_v45 = vadd.f32 %v10998_v8, %v1663_v54  ;;  %vm11867_vm14 = vmand %vm11848_vm10, %vm13808_vm5  ;;  %v2567_v46 = vshll.u32 %v11853_v26, 16  ;;  %vm13811_vm13 = vcmp.ge.s32.totalorder %v11772_v47, 0  ;;  %v8202_v3 = vpack.c.bf16 %v1724_v4, %v1723_v53  ;;  %v8079_v21 = vld [vmem:[%s8689_s13 + $0x1c] sm:$0xff]  }
 0x276   : > { %v1731_v63 = vmax.f32 %v1661_v17, 0.0  ;;  %vm11878_vm2 = vmand %vm13811_vm13, %vm944_vm8  ;;  %v2902_v31 = vrot.slane %v11856_v59, 1  ;;  %v727_v49 = vmul.u32 24, %v7836_v29  ;;  %v838_v47 = vadd.s32 4294967295, %v7836_v29 }
 0x277   : > { %vm8201_vm10 = vmpackc.low %vm11431_vm1, %vm11419_vm6  ;;  %v1732_v51 = vmax.f32 %v1664_v45, 0.0  ;;  %vm945_vm8 = vcmp.lt.s32.totalorder %v837_v35, 16  ;;  %v2565_v1 = vor.u32 %v2563_v41, %v2561_v13  ;;  %v2569_v6 = vrot.slane %v2567_v46, 1  ;;  %v8135_v45 = vld [vmem:[%s13034_s2] ss:$0 sm:$0xff] }
 0x278   : > { %8203 = vmatmul.mubr.msk.bf16.gmra.mrb[80].mxu1 %vm8201_vm10, %v8202_v3  ;;  %vm13814_vm13 = vcmp.le.s32.totalorder %v11780_v60, 16  ;;  %vm1160_vm1 = vcmp.le.s32.totalorder %v11813_v34, 16  ;;  %vm13817_vm10 = vcmask 1046528   ;;  %v1893_v39 = vsel %vm11819_vm0, %v1731_v63, 0.0  ;;  %vm11910_vm5 = vmand %vm11878_vm2, %vm1052_vm7 }
 0x279   : > { %vm11896_vm6 = vmand %vm11867_vm14, %vm13814_vm13  ;;  %v2903_v15 = vsel %vm13817_vm10, %v2900_v58, %v2902_v31  ;;  %v1894_v53 = vsel %vm11838_vm9, %v1732_v51, 0.0  ;;  %vm1053_vm14 = vcmp.ge.s32.totalorder %v11859_v33, 1  ;;  %vm13820_vm13 = vsmask.f32 7424  ;;  %v1668_v58 = vpop.f32.mrb[100].mxu0 }
 0x27a   : > { %2962 = vst [vmem:[#allocation3 + $0x208] sm:$0xff] %v2903_v15  ;;  %7526 = vmatmul.mubr.bf16.gmra.mrb[148].mxu0 %v2903_v15  ;;  %v2570_v4 = vsel %vm13820_vm13, %v2565_v1, %v2569_v6  ;;  %v1923_v60 = vpack.c.bf16 %v1894_v53, %v1893_v39  ;;  %vm13821_vm0 = vcmp.ge.s32.totalorder %v837_v35, 0  ;;  %v781_v13 = vsub.s32 %v11624_v22, %v727_v49  ;;  %v7463_v9 = vpop.f32.mrb[101].mxu0  ;;  %vm11929_vm2 = vmand %vm11910_vm5, %vm1160_vm1 }
 0x27b   : > { %vm11918_vm10 = vmand %vm13821_vm0, %vm945_vm8  ;;  %2659 = vst [vmem:[#allocation3 + $0x200] sm:$0xff] %v2570_v4  ;;  %3496 = vmatprep.mubr.bf16.mxu1 %v2570_v4  ;;  %vm892_vm9 = vcmp.ge.s32.totalorder %v838_v47, 0  ;;  %vm946_vm7 = vcmp.lt.s32.totalorder %v838_v47, 16  ;;  %v8055_v61 = vld [vmem:[#allocation2 + $0xb8] sm:$0xff]   ;;  %v1669_v5 = vadd.f32 %v10998_v8, %v1668_v58  ;;  %v1671_v56 = vpop.f32.mrb[102].mxu0  ;;  %v2571_v43 = vshrl.u32 %v11853_v26, 16 }
 0x27c   : > { %v8056_v25 = vld [vmem:[#allocation2 + $0xb8] sm:$0xff]   ;;  %7156 = vst [vmem:[#allocation2 + $0xc0] sm:$0xff] %v1923_v60   ;;  %2194 = vst [vmem:[#allocation3 + $0x240] sm:$0xff] %v1923_v60  ;;  %v1672_v22 = vadd.f32 %v10998_v8, %v1671_v56  ;;  %v7464_v11 = vpop.f32.mrb[103].mxu0  ;;  %v2575_v14 = vshll.u32 %v8055_v61, 16  ;;  %vm1161_vm13 = vcmp.le.s32.totalorder %v11859_v33, 16  ;;  %vm13828_vm5 = vnez %v13743_v48 }
 0x27d   : > { %v1733_v52 = vmax.f32 %v1669_v5, 0.0  ;;  %vm11938_vm8 = vmand %vm11918_vm10, %vm1053_vm14  ;;  %vm1054_vm0 = vcmp.ge.s32.totalorder %v781_v13, 1  ;;  %v8205_v8 = vpack.c.bf16 %v1726_v16, %v1725_v19  ;;  %v2904_v34 = vrot.slane %v8056_v25, 1  ;;  %v1676_v59 = vpop.f32.mrb[104].mxu0  ;;  %v4164_v33 = vld [vmem:[#allocation3 + $0x20] sm:$0xf0] }
 0x27e   : > { %vm8204_vm1 = vmpackc.low %vm13828_vm5, %vm11537_vm11  ;;  %v1734_v26 = vmax.f32 %v1672_v22, 0.0  ;;  %v2573_v17 = vor.u32 %v2571_v43, %v2569_v6  ;;  %v2577_v42 = vrot.slane %v2575_v14, 1  ;;  %vm13829_vm10 = vcmask 1046528   ;;  %v7467_v23 = vpop.f32.mrb[105].mxu0  ;;  %v4163_v4 = vld [vmem:[#allocation3 + $0x18] sm:$0xf0] }
 0x27f   : > { %v1895_v29 = vsel %vm11896_vm6, %v1733_v52, 0.0  ;;  %vm1000_vm14 = vmand %vm892_vm9, %vm946_vm7  ;;  %v2905_v48 = vsel %vm13829_vm10, %v2902_v31, %v2904_v34  ;;  %vm13832_vm6 = vsmask.f32 7424  ;;  %vm1162_vm7 = vcmp.le.s32.totalorder %v781_v13, 16  ;;  %v1679_v12 = vpop.f32.mrb[106].mxu0  ;;  %v4170_v60 = vld [vmem:[#allocation3 + $0x50] sm:$0xff] }
 0x280   : > { %8206 = vmatmul.mubr.msk.bf16.gmra.mrb[84].mxu1 %vm8204_vm1, %v8205_v8  ;;  %v1896_v20 = vsel %vm11929_vm2, %v1734_v26, 0.0  ;;  %vm11962_vm11 = vmand %vm11938_vm8, %vm1161_vm13  ;;  %2963 = vst [vmem:[#allocation3 + $0x220] sm:$0xff] %v2905_v48  ;;  %7529 = vmatprep.mubr.bf16.mxu0 %v2905_v48  ;;  %v2578_v36 = vsel %vm13832_vm6, %v2573_v17, %v2577_v42  ;;  %v4367_v41 = vrot.slane %v11955_v30, 4  ;;  %v1677_v2 = vadd.f32 %v8135_v45, %v1676_v59  ;;  %v7468_v51 = vpop.f32.mrb[107].mxu0  ;;  %v8076_v58 = vld [vmem:[%s8689_s13 + $0xc] sm:$0xff]   ;;  %v8113_v25 = vld [vmem:[#allocation9 + $0x208] sm:$0xff]  }
 0x281   : > { %v1924_v16 = vpack.c.bf16 %v1896_v20, %v1895_v29  ;;  %vm11968_vm9 = vmand %vm1000_vm14, %vm1054_vm0  ;;  %2660 = vst [vmem:[#allocation3 + $0x218] sm:$0xff] %v2578_v36  ;;  %3504 = vmatprep.mubr.bf16.mxu1 %v2578_v36  ;;  %v2579_v3 = vshrl.u32 %v8055_v61, 16  ;;  %v1680_v49 = vadd.f32 %v8135_v45, %v1679_v12  ;;  %v8208_v1 = vpack.c.bf16 %v1728_v28, %v1727_v24  ;;  %v8070_v9 = vld [vmem:[#allocation2 + $0xd8] ss:$0 sps:$4 sm:$0x11]   ;;  %v4169_v52 = vld [vmem:[#allocation3 + $0x48] sm:$0xff] }
 0x282   : > { %v1735_v31 = vmax.f32 %v1677_v2, 0.0  ;;  %vm1216_vm2 = vmand %vm11968_vm9, %vm1162_vm7  ;;  %v4366_v0 = vrot.slane %v4164_v33, 4  ;;  %v4364_v40 = vrot.slane %v4166_v10, 4  ;;  %v4374_v13 = vrot.slane %v4170_v60, 4  ;;  %v8081_v22 = vld [vmem:[#allocation9 + $0x148] sm:$0xff]   ;;  %v8085_v26 = vld [vmem:[#allocation9 + $0x150] sm:$0xff]  }
 0x283   : > { %v11973_v63 = vld [vmem:[#allocation2 + $0xc0] sm:$0xff]   ;;  %7157 = vst [vmem:[#allocation2 + $0xc8] sm:$0xff] %v1924_v16   ;;  %2195 = vst [vmem:[#allocation3 + $0x258] sm:$0xff] %v1924_v16  ;;  %v1736_v39 = vmax.f32 %v1680_v49, 0.0  ;;  %v2581_v53 = vor.u32 %v2579_v3, %v2577_v42  ;;  %v8211_v61 = vpack.c.bf16 %v1730_v57, %v1729_v44  ;;  %v4363_v5 = vrot.slane %v4163_v4, 4  ;;  %v8082_v59 = vld [vmem:[%s8689_s13 + $0x2c] sm:$0xff]  }
 0x284   : > { %v11978_v46 = vld [vmem:[#allocation2 + $0xc0] sm:$0xff]   ;;  %v2583_v47 = vshll.u32 %v11973_v63, 16  ;;  %vm8207_vm8 = vmpackc.low %vm11708_vm3, %vm11631_vm15  ;;  %v1897_v15 = vsel %vm11962_vm11, %v1735_v31, 0.0  ;;  %vm4362_vm3 = vcmask 1043456   ;;  %v2912_v44 = vrot.slane %v8070_v9, 1  ;;  %v8089_v33 = vld [vmem:[#allocation9 + $0x158] sm:$0xff]  }
 0x285   : > { %v2906_v6 = vrot.slane %v11978_v46, 1  ;;  %vm13835_vm15 = vmmov %vm13829_vm10  ;;  %v1898_v18 = vsel %vm1216_vm2, %v1736_v39, 0.0  ;;  %v4368_v24 = vsel %vm4362_vm3, %v4366_v0, %v4367_v41  ;;  %v4365_v56 = vsel %vm4362_vm3, %v4363_v5, %v4364_v40  ;;  %v4172_v30 = vld [vmem:[#allocation3 + $0x60] sm:$0xff]  ;;  %v8093_v31 = vld [vmem:[#allocation9 + $0x160] sm:$0xff]   ;;  %v7487_v9 = vpop.f32.mrb[108].mxu0 }
 0x286   : > { %v11995_v27 = vrot.slane %v2583_v47, 1  ;;  %vm13836_vm13 = vmmov %vm13832_vm6  ;;  %v1925_v28 = vpack.c.bf16 %v1898_v18, %v1897_v15  ;;  %v4375_v43 = vsel %vm4362_vm3, %v4367_v41, %v4374_v13  ;;  %v4372_v57 = vrot.slane %v4169_v52, 4  ;;  %v8080_v48 = vld [vmem:[%s8689_s13 + $0x24] sm:$0xff]   ;;  %v4175_v49 = vld [vmem:[#allocation3 + $0x78] sm:$0xff]  ;;  %v3330_v18 = vpop.f32.mrb[0].mxu1 }
 0x287   : > { %v2907_v7 = vsel %vm13835_vm15, %v2904_v34, %v2906_v6  ;;  %vm8210_vm0 = vmpackc.low %vm11737_vm12, %vm11729_vm4  ;;  %v4380_v14 = vrot.slane %v4173_v37, 4  ;;  %v8136_v34 = vld [vmem:[#allocation9 + $0x140] sm:$0xff]   ;;  %v4176_v20 = vld [vmem:[#allocation3 + $0x80] sm:$0xff]  ;;  %v2587_v19 = vshrl.u32 %v11973_v63, 16  ;;  %v4378_v54 = vrot.slane %v4172_v30, 4 }
 0x288   : > { %8209 = vmatmul.mubr.msk.bf16.gmra.mrb[88].mxu1 %vm8207_vm8, %v8208_v1  ;;  %2964 = vst [vmem:[#allocation3 + $0x238] sm:$0xff] %v2907_v7  ;;  %7530 = vmatmul.mubr.bf16.gmra.mrb[152].mxu0 %v2907_v7  ;;  %v2586_v50 = vsel %vm13836_vm13, %v2581_v53, %v11995_v27  ;;  %7158 = vst [vmem:[#allocation2 + $0xd0] sm:$0xff] %v1925_v28   ;;  %v4386_v45 = vrot.slane %v4176_v20, 4  ;;  %v8083_v47 = vld [vmem:[%s8689_s13 + $0x34] sm:$0xff]   ;;  %v8084_v0 = vld [vmem:[%s8689_s13 + $0x3c] sm:$0xff]   ;;  %v4384_v15 = vrot.slane %v4175_v49, 4 }
 0x289   : > { %4758 = vmatprep.mubr.bf16.mxu0 %v4368_v24  ;;  %2661 = vst [vmem:[#allocation3 + $0x230] sm:$0xff] %v2586_v50  ;;  %3512 = vmatprep.mubr.bf16.mxu1 %v2586_v50  ;;  %2196 = vst [vmem:[#allocation3 + $0x270] sm:$0xff] %v1925_v28  ;;  %v4381_v42 = vsel %vm4362_vm3, %v4374_v13, %v4380_v14  ;;  %v2589_v41 = vor.u32 %v2587_v19, %v11995_v27  ;;  %v4179_v51 = vld [vmem:[#allocation3 + $0x98] sm:$0xff]  ;;  %v8097_v39 = vld [vmem:[#allocation9 + $0x168] sm:$0xff]   ;;  %v3332_v50 = vpop.f32.mrb[1].mxu1 }
 0x28a   : > { %v8063_v55 = vld [vmem:[#allocation2 + $0xc8] sm:$0xff]   ;;  %vm13837_vm4 = vmmov %vm13829_vm10  ;;  %v4379_v3 = vsel %vm4362_vm3, %v4372_v57, %v4378_v54  ;;  %v4387_v46 = vsel %vm4362_vm3, %v4380_v14, %v4386_v45  ;;  %v4392_v27 = vrot.slane %v4179_v51, 4  ;;  %v4385_v10 = vsel %vm4362_vm3, %v4378_v54, %v4384_v15  ;;  %v3333_v4 = vpop.f32.mrb[2].mxu1  ;;  %v4188_v54 = vld [vmem:[#allocation3 + $0xe0] sm:$0xff] }
 0x28b   : > { %v8064_v11 = vld [vmem:[#allocation2 + $0xc8] sm:$0xff]   ;;  %v2591_v8 = vshll.u32 %v8063_v55, 16  ;;  %vm13838_vm12 = vmmov %vm13837_vm4  ;;  %v2595_v23 = vshrl.u32 %v8063_v55, 16 }
 0x28c   : > { %v2908_v17 = vrot.slane %v8064_v11, 1  ;;  %vm13839_vm5 = vmmov %vm13832_vm6  ;;  %v8118_v53 = vld [vmem:[#allocation9 + $0x210] sm:$0xff]   ;;  %v4393_v60 = vsel %vm4362_vm3, %v4386_v45, %v4392_v27 }
 0x28d   : > { %v2593_v36 = vrot.slane %v2591_v8, 1  ;;  %vm13840_vm1 = vmmov %vm13837_vm4  ;;  %v8101_v28 = vld [vmem:[#allocation9 + $0x170] sm:$0xff]   ;;  %v8088_v8 = vld [vmem:[%s8689_s13 + $0x54] sm:$0xff]  }
 0x28e   : > { %v2909_v2 = vsel %vm13838_vm12, %v2906_v6, %v2908_v17  ;;  %vm13841_vm14 = vmmov %vm13839_vm5  ;;  %v8086_v13 = vld [vmem:[%s8689_s13 + $0x44] sm:$0xff]   ;;  %v8087_v5 = vld [vmem:[%s8689_s13 + $0x4c] sm:$0xff]  }
 0x28f   : > { %v8069_v38 = vld [vmem:[#allocation2 + $0xd0] sm:$0xff]   ;;  %2965 = vst [vmem:[#allocation3 + $0x250] sm:$0xff] %v2909_v2  ;;  %v12028_v63 = vsel %vm13839_vm5, %v2589_v41, %v2593_v36  ;;  %v2597_v1 = vor.u32 %v2595_v23, %v2593_v36  ;;  %v4181_v14 = vld [vmem:[#allocation3 + $0xa8] sm:$0xff]  ;;  %v4184_v36 = vld [vmem:[#allocation3 + $0xc0] sm:$0xff] }
 0x290   : > { %8212 = vmatmul.mubr.msk.bf16.gmra.mrb[92].mxu1 %vm8210_vm0, %v8211_v61  ;;  %4759 = vmatmul.mubr.bf16.vlgmr.msra.gmra.mrb[156].mxu0 %v4365_v56  ;;  %v2910_v35 = vrot.slane %v8069_v38, 1  ;;  %v8068_v16 = vld [vmem:[#allocation2 + $0xd0] sm:$0xff]   ;;  %2662 = vst [vmem:[#allocation3 + $0x248] sm:$0xff] %v12028_v63  ;;  %v4402_v45 = vrot.slane %v4184_v36, 4  ;;  %vm13862_vm10 = vmmov %vm13839_vm5 }
 0x291   : > { %7549 = vmatprep.mubr.bf16.mxu1 %v8076_v58  ;;  %4766 = vmatprep.mubr.bf16.mxu0 %v4375_v43  ;;  %v2599_v12 = vshll.u32 %v8068_v16, 16  ;;  %v4178_v58 = vld [vmem:[#allocation3 + $0x90] sm:$0xff]  ;;  %v3555_v43 = vpop.f32.mrb[109].mxu0 }
 0x292   : > { %7662 = vmatpush3.bf16.msra.mxu0 %v11872_v62  ;;  %v2913_v29 = vsel %vm13837_vm4, %v2910_v35, %v2912_v44  ;;  %v4373_v62 = vsel %vm4362_vm3, %v4364_v40, %v4372_v57  ;;  %v2911_v7 = vsel %vm13840_vm1, %v2908_v17, %v2910_v35  ;;  %v3335_v40 = vpop.f32.mrb[3].mxu1  ;;  %v4182_v61 = vld [vmem:[#allocation3 + $0xb0] sm:$0xff]  ;;  %v12044_v37 = vadd.f32 %v3555_v43, %v3330_v18 }
 0x293   : > { %7663 = vmatprep.subr.bf16.mxu0 %v8113_v25  ;;  %2967 = vst [vmem:[#allocation3 + $0x280] sm:$0xff] %v2913_v29  ;;  %v12034_v6 = vrot.slane %v2599_v12, 1  ;;  %2966 = vst [vmem:[#allocation3 + $0x268] sm:$0xff] %v2911_v7  ;;  %v8105_v56 = vld [vmem:[#allocation9 + $0x178] sm:$0xff]   ;;  %v4398_v52 = vrot.slane %v4182_v61, 4  ;;  %v8090_v29 = vld [vmem:[%s8689_s13 + $0x5c] sm:$0xff]  }
 0x294   : > { %v8123_v2 = vld [vmem:[#allocation9 + $0x218] sm:$0xff]   ;;  %v4410_v12 = vrot.slane %v4188_v54, 4  ;;  %v4191_v7 = vld [vmem:[#allocation3 + $0xf8] sm:$0xff] }
 0x295   : > { %v2602_v24 = vsel %vm13841_vm14, %v2597_v1, %v12034_v6  ;;  %v4399_v11 = vsel %vm4362_vm3, %v4392_v27, %v4398_v52  ;;  %v8094_v27 = vld [vmem:[%s8689_s13 + $0x74] sm:$0xff]  }
 0x296   : > { %7664 = vmatpush3.bf16.msra.mxu0 %v8113_v25  ;;  %2663 = vst [vmem:[#allocation3 + $0x260] sm:$0xff] %v2602_v24  ;;  %v4390_v25 = vrot.slane %v4178_v58, 4  ;;  %v8095_v24 = vld [vmem:[%s8689_s13 + $0x7c] sm:$0xff]   ;;  %v4190_v61 = vld [vmem:[#allocation3 + $0xf0] sm:$0xff] }
 0x297   : > { %7665 = vmatprep.subr.bf16.mxu0 %v8118_v53 }
 0x298   : > { %7550 = vmatmul.mubr.bf16.vlgmr.msra.gmra.mrb[96].mxu1 %v8078_v32  ;;  %4767 = vmatmul.mubr.bf16.gmra.mrb[160].mxu0 %v4373_v62  ;;  %v7488_v32 = vpop.f32.mrb[110].mxu0  ;;  %v4391_v38 = vsel %vm4362_vm3, %v4384_v15, %v4390_v25  ;;  %v4396_v62 = vrot.slane %v4181_v14, 4 }
 0x299   : > { %7598 = vmatpush3.bf16.msra.mxu1 %v8136_v34  ;;  %7553 = vmatprep.mubr.bf16.mxu1 %v8079_v21  ;;  %v3338_v21 = vpop.f32.mrb[4].mxu1  ;;  %v4185_v34 = vld [vmem:[#allocation3 + $0xc8] sm:$0xff] }
 0x29a   : > { %7599 = vmatprep.subr.bf16.mxu1 %v8081_v22  ;;  %4774 = vmatprep.mubr.bf16.mxu0 %v4381_v42  ;;  %v3340_v44 = vpop.f32.mrb[5].mxu1  ;;  %v4404_v17 = vrot.slane %v4185_v34, 4  ;;  %v4403_v1 = vsel %vm4362_vm3, %v4396_v62, %v4402_v45  ;;  %v8130_v34 = vld [vmem:[#allocation9 + $0x238] sm:$0xff]  }
 0x29b   : > { %7666 = vmatpush3.bf16.msra.mxu0 %v8118_v53  ;;  %v3341_v57 = vpop.f32.mrb[6].mxu1  ;;  %v4414_v44 = vrot.slane %v4190_v61, 4 }
 0x29c   : > { %v3343_v35 = vpop.f32.mrb[7].mxu1  ;;  %v4405_v19 = vsel %vm4362_vm3, %v4398_v52, %v4404_v17  ;;  %7667 = vmatprep.subr.bf16.mxu0 %v8123_v2  ;;  %v4411_v15 = vsel %vm4362_vm3, %v4404_v17, %v4410_v12  ;;  %v8098_v52 = vld [vmem:[%s8689_s13 + $0x8c] sm:$0xff]  }
 0x29d   : > { %7600 = vmatpush3.bf16.msra.mxu1 %v8081_v22  ;;  %v3558_v22 = vpop.f32.mrb[111].mxu0  ;;  %v3346_v42 = vpop.f32.mrb[8].mxu1 }
 0x29e   : > { %7601 = vmatprep.subr.bf16.mxu1 %v8085_v26  ;;  %v12046_v55 = vadd.f32 %v3558_v22, %v3333_v4  ;;  %v3348_v30 = vpop.f32.mrb[9].mxu1  ;;  %v7491_v41 = vpop.f32.mrb[112].mxu0  ;;  %v4416_v4 = vrot.slane %v4191_v7, 4 }
 0x29f   : > { %v3349_v20 = vpop.f32.mrb[10].mxu1  ;;  %v3571_v23 = vpop.f32.mrb[113].mxu0  ;;  %7668 = vmatpush3.bf16.msra.mxu0 %v8123_v2  ;;  %v4193_v30 = vld [vmem:[#allocation3 + $0x108] sm:$0xff] }
 0x2a0   : > { %7554 = vmatmul.mubr.bf16.gmra.mrb[100].mxu1 %v8080_v48  ;;  %4775 = vmatmul.mubr.bf16.gmra.mrb[164].mxu0 %v4379_v3  ;;  %v4397_v48 = vsel %vm4362_vm3, %v4390_v25, %v4396_v62  ;;  %v3351_v16 = vpop.f32.mrb[11].mxu1  ;;  %v12057_v3 = vadd.f32 %v7487_v9, %v3338_v21  ;;  %v8096_v9 = vld [vmem:[%s8689_s13 + $0x84] sm:$0xff]   ;;  %v4420_v54 = vrot.slane %v4193_v30, 4 }
 0x2a1   : > { %7557 = vmatprep.mubr.bf16.mxu1 %v8082_v59  ;;  %7602 = vmatpush3.bf16.msra.mxu1 %v8085_v26  ;;  %v13842_v26 = vmov 0   ;;  %v8091_v59 = vld [vmem:[%s8689_s13 + $0x64] sm:$0xff]   ;;  %v8100_v16 = vld [vmem:[%s8689_s13 + $0x9c] sm:$0xff]  }
 0x2a2   : > { %7603 = vmatprep.subr.bf16.mxu1 %v8089_v33  ;;  %4782 = vmatprep.mubr.bf16.mxu0 %v4387_v46  ;;  %v7492_v46 = vpop.f32.mrb[114].mxu0  ;;  %v4194_v25 = vld [vmem:[#allocation3 + $0x110] sm:$0xff] }
 0x2a3   : > { %v3574_v49 = vpop.f32.mrb[115].mxu0 }
 0x2a4   : > { %v12063_v51 = vadd.f32 %v3574_v49, %v3349_v20  ;;  %v8099_v20 = vld [vmem:[%s8689_s13 + $0x94] sm:$0xff]  }
 0x2a5   : > { %7604 = vmatpush3.bf16.msra.mxu1 %v8089_v33  ;;  %v8092_v33 = vld [vmem:[%s8689_s13 + $0x6c] sm:$0xff]   ;;  %v4200_v49 = vld [vmem:[#allocation3 + $0x140] sm:$0xff] }
 0x2a6   : > { %7605 = vmatprep.subr.bf16.mxu1 %v8093_v31 }
 0x2a8   : > { %7558 = vmatmul.mubr.bf16.gmra.mrb[104].mxu1 %v8083_v47  ;;  %4783 = vmatmul.mubr.bf16.gmra.mrb[168].mxu0 %v4385_v10  ;;  %v12061_v47 = vadd.f32 %v7488_v32, %v3341_v57  ;;  %v7495_v43 = vpop.f32.mrb[116].mxu0  ;;  %v8129_v32 = vld [vmem:[#allocation9 + $0x230] sm:$0xff]  }
 0x2a9   : > { %7561 = vmatprep.mubr.bf16.mxu1 %v8084_v0  ;;  %7606 = vmatpush3.bf16.msra.mxu1 %v8093_v31  ;;  %v12059_v31 = vadd.f32 %v3571_v23, %v3346_v42  ;;  %v3354_v0 = vpop.f32.mrb[12].mxu1  ;;  %v3587_v22 = vpop.f32.mrb[117].mxu0  ;;  %v4196_v23 = vld [vmem:[#allocation3 + $0x120] sm:$0xff] }
 0x2aa   : > { %7607 = vmatprep.subr.bf16.mxu1 %v8097_v39  ;;  %4790 = vmatprep.mubr.bf16.mxu0 %v4393_v60  ;;  %v3356_v53 = vpop.f32.mrb[13].mxu1  ;;  %v8127_v60 = vld [vmem:[#allocation9 + $0x228] sm:$0xff]   ;;  %v7496_v57 = vpop.f32.mrb[118].mxu0  ;;  %v12075_v14 = vadd.f32 %v7491_v41, %v3354_v0  ;;  %v4421_v41 = vsel %vm4362_vm3, %v4414_v44, %v4420_v54 }
 0x2ab   : > { %v3357_v18 = vpop.f32.mrb[14].mxu1  ;;  %v3590_v35 = vpop.f32.mrb[119].mxu0 }
 0x2ac   : > { %v3359_v50 = vpop.f32.mrb[15].mxu1 }
 0x2ad   : > { %7608 = vmatpush3.bf16.msra.mxu1 %v8097_v39  ;;  %v4187_v39 = vld [vmem:[#allocation3 + $0xd8] sm:$0xff]  ;;  %v3362_v40 = vpop.f32.mrb[16].mxu1 }
 0x2ae   : > { %7609 = vmatprep.subr.bf16.mxu1 %v8101_v28  ;;  %v4408_v10 = vrot.slane %v4187_v39, 4 }
 0x2b0   : > { %7562 = vmatmul.mubr.bf16.gmra.mrb[108].mxu1 %v8086_v13  ;;  %4791 = vmatmul.mubr.bf16.gmra.mrb[172].mxu0 %v4391_v38  ;;  %v4409_v58 = vsel %vm4362_vm3, %v4402_v45, %v4408_v10  ;;  %v4417_v13 = vsel %vm4362_vm3, %v4410_v12, %v4416_v4  ;;  %v12073_v38 = vadd.f32 %v3587_v22, %v3362_v40 }
 0x2b1   : > { %7565 = vmatprep.mubr.bf16.mxu1 %v8087_v5  ;;  %7610 = vmatpush3.bf16.msra.mxu1 %v8101_v28  ;;  %v8125_v28 = vld [vmem:[#allocation9 + $0x220] sm:$0xff]   ;;  %v3364_v5 = vpop.f32.mrb[17].mxu1  ;;  %v4415_v62 = vsel %vm4362_vm3, %v4408_v10, %v4414_v44 }
 0x2b2   : > { %7611 = vmatprep.subr.bf16.mxu1 %v8105_v56  ;;  %4798 = vmatprep.mubr.bf16.mxu0 %v4399_v11  ;;  %v4422_v11 = vrot.slane %v4194_v25, 4  ;;  %v8104_v5 = vld [vmem:[%s8689_s13 + $0xb4] sm:$0xff]  }
 0x2b3   : > { %7669 = vmatprep.subr.bf16.mxu0 %v8125_v28 }
 0x2b4   : > { %7670 = vmatpush3.bf16.msra.mxu0 %v8125_v28  ;;  %v4423_v42 = vsel %vm4362_vm3, %v4416_v4, %v4422_v11 }
 0x2b5   : > { %7612 = vmatpush3.bf16.msra.mxu1 %v8105_v56  ;;  %7671 = vmatprep.subr.bf16.mxu0 %v8127_v60  ;;  %v3365_v56 = vpop.f32.mrb[18].mxu1 }
 0x2b6   : > { %5489 = vmatprep.subr.bf16.mxu1 %v13842_v26  ;;  %v3367_v21 = vpop.f32.mrb[19].mxu1 }
 0x2b7   : > { %v3370_v17 = vpop.f32.mrb[20].mxu1  ;;  %v4168_v21 = vld [vmem:[#allocation3 + $0x40] sm:$0xff] }
 0x2b8   : > { %7566 = vmatmul.mubr.bf16.gmra.mrb[112].mxu1 %v8088_v8  ;;  %4799 = vmatmul.mubr.bf16.gmra.mrb[176].mxu0 %v4397_v48  ;;  %v12077_v8 = vadd.f32 %v3590_v35, %v3365_v56  ;;  %v3372_v48 = vpop.f32.mrb[21].mxu1  ;;  %v12091_v50 = vadd.f32 %v7495_v43, %v3370_v17  ;;  %v8106_v56 = vld [vmem:[%s8689_s13 + $0xbc] sm:$0xff]   ;;  %v4202_v35 = vld [vmem:[#allocation3 + $0x150] sm:$0xff]  ;;  %v4370_v17 = vrot.slane %v4168_v21, 4 }
 0x2b9   : > { %7569 = vmatprep.mubr.bf16.mxu1 %v8090_v29  ;;  %4806 = vmatprep.mubr.bf16.mxu0 %v4405_v19  ;;  %v12079_v29 = vadd.f32 %v7492_v46, %v3357_v18  ;;  %v4197_v19 = vld [vmem:[#allocation3 + $0x128] sm:$0xff]  ;;  %v3373_v36 = vpop.f32.mrb[22].mxu1 }
 0x2ba   : > { %7672 = vmatpush3.bf16.msra.mxu0 %v8127_v60  ;;  %v8102_v46 = vld [vmem:[%s8689_s13 + $0xa4] sm:$0xff]   ;;  %v12095_v4 = vadd.f32 %v7496_v57, %v3373_v36 }
 0x2bb   : > { %7673 = vmatprep.subr.bf16.mxu0 %v8129_v32 }
 0x2be   : > { %7674 = vmatpush3.bf16.msra.mxu0 %v8129_v32 }
 0x2bf   : > { %7675 = vmatprep.subr.bf16.mxu0 %v8130_v34 }
 0x2c0   : > { %7570 = vmatmul.mubr.bf16.gmra.mrb[116].mxu1 %v8091_v59  ;;  %4807 = vmatmul.mubr.bf16.gmra.mrb[180].mxu0 %v4403_v1  ;;  %v3375_v59 = vpop.f32.mrb[23].mxu1  ;;  %v7499_v0 = vpop.f32.mrb[120].mxu0 }
 0x2c1   : > { %7573 = vmatprep.mubr.bf16.mxu1 %v8092_v33  ;;  %4814 = vmatprep.mubr.bf16.mxu0 %v4411_v15  ;;  %v4428_v33 = vrot.slane %v4197_v19, 4  ;;  %v3378_v45 = vpop.f32.mrb[24].mxu1  ;;  %v8103_v15 = vld [vmem:[%s8689_s13 + $0xac] sm:$0xff]   ;;  %v3603_v53 = vpop.f32.mrb[121].mxu0 }
 0x2c2   : > { %7676 = vmatpush3.bf16.msra.mxu0 %v8130_v34  ;;  %v3380_v12 = vpop.f32.mrb[25].mxu1  ;;  %v12089_v7 = vadd.f32 %v3603_v53, %v3378_v45  ;;  %v7500_v18 = vpop.f32.mrb[122].mxu0  ;;  %v4205_v53 = vld [vmem:[#allocation3 + $0x168] sm:$0xff] }
 0x2c3   : > { %v4429_v2 = vsel %vm4362_vm3, %v4422_v11, %v4428_v33  ;;  %v3381_v1 = vpop.f32.mrb[26].mxu1  ;;  %v3606_v10 = vpop.f32.mrb[123].mxu0  ;;  %v4165_v11 = vld [vmem:[#allocation3 + $0x28] sm:$0xf0] }
 0x2c4   : > { %v3383_v39 = vpop.f32.mrb[27].mxu1  ;;  %v12093_v28 = vadd.f32 %v3606_v10, %v3381_v1  ;;  %v4369_v36 = vrot.slane %v4165_v11, 4 }
 0x2c6   : > { %v4371_v45 = vsel %vm4362_vm3, %v4369_v36, %v4370_v17 }
 0x2c8   : > { %7574 = vmatmul.mubr.bf16.gmra.mrb[120].mxu1 %v8094_v27  ;;  %4815 = vmatmul.mubr.bf16.gmra.mrb[184].mxu0 %v4409_v58  ;;  %v4426_v27 = vrot.slane %v4196_v23, 4  ;;  %v12109_v23 = vld [vmem:[#allocation3 + $0x58] sm:$0xff] }
 0x2c9   : > { %7577 = vmatprep.mubr.bf16.mxu1 %v8095_v24  ;;  %4822 = vmatprep.mubr.bf16.mxu0 %v4417_v13  ;;  %v4434_v24 = vrot.slane %v4200_v49, 4  ;;  %v3386_v58 = vpop.f32.mrb[28].mxu1  ;;  %v4199_v13 = vld [vmem:[#allocation3 + $0x138] sm:$0xff]  ;;  %v4376_v39 = vrot.slane %v12109_v23, 4 }
 0x2ca   : > { %v4427_v60 = vsel %vm4362_vm3, %v4420_v54, %v4426_v27  ;;  %v3388_v61 = vpop.f32.mrb[29].mxu1 }
 0x2cb   : > { %v4435_v40 = vsel %vm4362_vm3, %v4428_v33, %v4434_v24  ;;  %v3389_v25 = vpop.f32.mrb[30].mxu1  ;;  %v4444_v61 = vrot.slane %v4205_v53, 4 }
 0x2cc   : > { %v3391_v43 = vpop.f32.mrb[31].mxu1  ;;  %v12115_v49 = vadd.f32 %v7500_v18, %v3389_v25 }
 0x2cd   : > { %v8110_v43 = vld [vmem:[#allocation9 + $0x188] sm:$0xff]  }
 0x2d0   : > { %7578 = vmatmul.mubr.bf16.gmra.mrb[124].mxu1 %v8096_v9  ;;  %4823 = vmatmul.mubr.bf16.gmra.mrb[188].mxu0 %v4415_v62  ;;  %v4203_v9 = vld [vmem:[#allocation3 + $0x158] sm:$0xff]  ;;  %v8107_v62 = vld [vmem:[%s8689_s13 + $0xc4] sm:$0xff]  }
 0x2d1   : > { %7581 = vmatprep.mubr.bf16.mxu1 %v8098_v52  ;;  %4830 = vmatprep.mubr.bf16.mxu0 %v4423_v42  ;;  %v4432_v52 = vrot.slane %v4199_v13, 4  ;;  %v4440_v32 = vrot.slane %v4203_v9, 4  ;;  %v4206_v42 = vld [vmem:[#allocation3 + $0x170] sm:$0xff] }
 0x2d2   : > { %v4446_v33 = vrot.slane %v4206_v42, 4 }
 0x2d3   : > { %v4433_v22 = vsel %vm4362_vm3, %v4426_v27, %v4432_v52  ;;  %v4441_v57 = vsel %vm4362_vm3, %v4434_v24, %v4440_v32 }
 0x2d4   : > { %v3394_v44 = vpop.f32.mrb[32].mxu1  ;;  %v7503_v48 = vpop.f32.mrb[124].mxu0 }
 0x2d5   : > { %v3396_v34 = vpop.f32.mrb[33].mxu1  ;;  %v3619_v19 = vpop.f32.mrb[125].mxu0 }
 0x2d6   : > { %v3397_v30 = vpop.f32.mrb[34].mxu1  ;;  %v12104_v59 = vadd.f32 %v3619_v19, %v3394_v44  ;;  %v7504_v54 = vpop.f32.mrb[126].mxu0  ;;  %v4212_v34 = vld [vmem:[#allocation3 + $0x1a0] sm:$0xff] }
 0x2d7   : > { %v4458_v36 = vrot.slane %v4212_v34, 4  ;;  %v8115_v34 = vld [vmem:[#allocation9 + $0x1a8] sm:$0xff]  }
 0x2d8   : > { %7582 = vmatmul.mubr.bf16.gmra.mrb[128].mxu1 %v8099_v20  ;;  %4831 = vmatmul.mubr.bf16.gmra.mrb[192].mxu0 %v4421_v41  ;;  %v3399_v20 = vpop.f32.mrb[35].mxu1  ;;  %v12106_v41 = vadd.f32 %v7499_v0, %v3386_v58  ;;  %v4447_v0 = vsel %vm4362_vm3, %v4440_v32, %v4446_v33 }
 0x2d9   : > { %7585 = vmatprep.mubr.bf16.mxu1 %v8100_v16  ;;  %4838 = vmatprep.mubr.bf16.mxu0 %v4429_v2  ;;  %v4438_v16 = vrot.slane %v4202_v35, 4  ;;  %v3622_v2 = vpop.f32.mrb[127].mxu0 }
 0x2da   : > { %v12111_v12 = vadd.f32 %v3622_v2, %v3397_v30 }
 0x2db   : > { %v4439_v1 = vsel %vm4362_vm3, %v4432_v52, %v4438_v16  ;;  %v12129_v52 = vld [vmem:[#allocation3 + $0xa0] sm:$0xff]  ;;  %v4445_v32 = vsel %vm4362_vm3, %v4438_v16, %v4444_v61 }
 0x2dc   : > { %v4394_v35 = vrot.slane %v12129_v52, 4 }
 0x2e0   : > { %7586 = vmatmul.mubr.bf16.gmra.mrb[132].mxu1 %v8102_v46  ;;  %4839 = vmatmul.mubr.bf16.gmra.mrb[196].mxu0 %v4427_v60  ;;  %v12113_v46 = vld [vmem:[#allocation3 + $0x70] sm:$0xff]  ;;  %v4209_v60 = vld [vmem:[#allocation3 + $0x188] sm:$0xff] }
 0x2e1   : > { %7589 = vmatprep.mubr.bf16.mxu1 %v8103_v15  ;;  %4846 = vmatprep.mubr.bf16.mxu0 %v4435_v40  ;;  %v3402_v15 = vpop.f32.mrb[36].mxu1  ;;  %v4382_v10 = vrot.slane %v12113_v46, 4  ;;  %v8109_v40 = vld [vmem:[#allocation9 + $0x180] sm:$0xff]   ;;  %v4452_v9 = vrot.slane %v4209_v60, 4 }
 0x2e2   : > { %v12120_v27 = vadd.f32 %v7503_v48, %v3402_v15  ;;  %v3404_v24 = vpop.f32.mrb[37].mxu1  ;;  %v8112_v15 = vld [vmem:[#allocation9 + $0x198] sm:$0xff]   ;;  %v4211_v60 = vld [vmem:[#allocation3 + $0x198] sm:$0xff] }
 0x2e3   : > { %v3405_v58 = vpop.f32.mrb[38].mxu1  ;;  %v4383_v25 = vsel %vm4362_vm3, %v4376_v39, %v4382_v10  ;;  %v4459_v24 = vsel %vm4362_vm3, %v4452_v9, %v4458_v36 }
 0x2e4   : > { %v12123_v18 = vadd.f32 %v7504_v54, %v3405_v58  ;;  %v3407_v13 = vpop.f32.mrb[39].mxu1 }
 0x2e8   : > { %7590 = vmatmul.mubr.bf16.gmra.mrb[136].mxu1 %v8104_v5  ;;  %4847 = vmatmul.mubr.bf16.gmra.mrb[200].mxu0 %v4433_v22  ;;  %v4377_v5 = vsel %vm4362_vm3, %v4370_v17, %v4376_v39  ;;  %v4453_v22 = vsel %vm4362_vm3, %v4446_v33, %v4452_v9  ;;  %v8111_v17 = vld [vmem:[#allocation9 + $0x190] sm:$0xff]  }
 0x2e9   : > { %7593 = vmatprep.mubr.bf16.mxu1 %v8106_v56  ;;  %4854 = vmatprep.mubr.bf16.mxu0 %v4441_v57  ;;  %v12127_v56 = vld [vmem:[#allocation3 + $0x88] sm:$0xff]  ;;  %v4208_v57 = vld [vmem:[#allocation3 + $0x180] sm:$0xff] }
 0x2ea   : > { %v4388_v44 = vrot.slane %v12127_v56, 4  ;;  %v4450_v48 = vrot.slane %v4208_v57, 4  ;;  %v12159_v57 = vld [vmem:[#allocation3 + $0xe8] sm:$0xff] }
 0x2eb   : > { %v3410_v21 = vpop.f32.mrb[40].mxu1 }
 0x2ec   : > { %v3412_v11 = vpop.f32.mrb[41].mxu1  ;;  %v7507_v30 = vpop.f32.mrb[128].mxu0  ;;  %v4389_v20 = vsel %vm4362_vm3, %v4382_v10, %v4388_v44  ;;  %v4395_v54 = vsel %vm4362_vm3, %v4388_v44, %v4394_v35  ;;  %v4451_v39 = vsel %vm4362_vm3, %v4444_v61, %v4450_v48 }
 0x2ed   : > { %v3635_v19 = vpop.f32.mrb[129].mxu0  ;;  %v12161_v11 = vld [vmem:[#allocation3 + $0x100] sm:$0xff] }
 0x2ee   : > { %v12138_v16 = vadd.f32 %v3635_v19, %v3410_v21  ;;  %v7508_v33 = vpop.f32.mrb[130].mxu0  ;;  %v4456_v21 = vrot.slane %v4211_v60, 4  ;;  %v4418_v19 = vrot.slane %v12161_v11, 4 }
 0x2ef   : > { %v3638_v2 = vpop.f32.mrb[131].mxu0 }
 0x2f0   : > { %7594 = vmatmul.mubr.bf16.gmra.mrb[140].mxu1 %v8107_v62  ;;  %4855 = vmatmul.mubr.bf16.gmra.mrb[204].mxu0 %v4439_v1  ;;  %v3413_v62 = vpop.f32.mrb[42].mxu1  ;;  %v12143_v1 = vld [vmem:[#allocation3 + $0xd0] sm:$0xff] }
 0x2f1   : > { %7613 = vmatprep.mubr.bf16.mxu1 %v4371_v45  ;;  %4862 = vmatprep.mubr.bf16.mxu0 %v4447_v0  ;;  %v3415_v42 = vpop.f32.mrb[43].mxu1  ;;  %v12141_v45 = vld [vmem:[#allocation3 + $0xb8] sm:$0xff]  ;;  %v12145_v0 = vadd.f32 %v3638_v2, %v3413_v62  ;;  %v4406_v13 = vrot.slane %v12143_v1, 4  ;;  %v4457_v62 = vsel %vm4362_vm3, %v4450_v48, %v4456_v21  ;;  %v8116_v2 = vld [vmem:[#allocation9 + $0x1b0] sm:$0xff]  }
 0x2f2   : > { %v4400_v10 = vrot.slane %v12141_v45, 4 }
 0x2f3   : > { %13843 = vst [vmem:[#allocation23_spill] sm:$0xff] %v12145_v0  ;;  %v12239_v0 = vld [vmem:[#allocation3 + $0x1f0] sm:$0xff] }
 0x2f4   : > { %v3418_v53 = vpop.f32.mrb[44].mxu1  ;;  %v4401_v9 = vsel %vm4362_vm3, %v4394_v35, %v4400_v10  ;;  %v4407_v44 = vsel %vm4362_vm3, %v4400_v10, %v4406_v13  ;;  %v4412_v35 = vrot.slane %v12159_v57, 4 }
 0x2f5   : > { %v12151_v58 = vadd.f32 %v7507_v30, %v3418_v53  ;;  %v4214_v30 = vld [vmem:[#allocation3 + $0x1b0] sm:$0xff] }
 0x2f6   : > { %v4462_v48 = vrot.slane %v4214_v30, 4  ;;  %v4413_v53 = vsel %vm4362_vm3, %v4406_v13, %v4412_v35  ;;  %v4419_v60 = vsel %vm4362_vm3, %v4412_v35, %v4418_v19 }
 0x2f8   : > { %7614 = vmatmul.mubr.bf16.vlgmr.msra.gmra.mrb[144].mxu1 %v4377_v5  ;;  %4863 = vmatmul.mubr.bf16.gmra.mrb[208].mxu0 %v4445_v32  ;;  %v4215_v5 = vld [vmem:[#allocation3 + $0x1b8] sm:$0xff]  ;;  %v4463_v13 = vsel %vm4362_vm3, %v4456_v21, %v4462_v48 }
 0x2f9   : > { %5490 = vmatpush1.bf16.msra.mxu1 %v8109_v40  ;;  %7617 = vmatprep.mubr.bf16.mxu1 %v4383_v25  ;;  %v3420_v40 = vpop.f32.mrb[45].mxu1 }
 0x2fa   : > { %5491 = vmatprep.subr.bf16.mxu1 %v13842_v26  ;;  %4870 = vmatprep.mubr.bf16.mxu0 %v4453_v22  ;;  %v3421_v25 = vpop.f32.mrb[46].mxu1  ;;  %v4464_v22 = vrot.slane %v4215_v5, 4  ;;  %v12173_v5 = vld [vmem:[#allocation3 + $0x118] sm:$0xff] }
 0x2fb   : > { %v12154_v61 = vadd.f32 %v7508_v33, %v3421_v25  ;;  %v3423_v32 = vpop.f32.mrb[47].mxu1 }
 0x2fc   : > { %v4465_v42 = vsel %vm4362_vm3, %v4458_v36, %v4464_v22  ;;  %v8117_v32 = vld [vmem:[#allocation9 + $0x1b8] sm:$0xff]  }
 0x2fd   : > { %5492 = vmatpush1.bf16.msra.mxu1 %v8110_v43  ;;  %v8114_v43 = vld [vmem:[#allocation9 + $0x1a0] sm:$0xff]   ;;  %13844 = vst [vmem:[#allocation24_spill] sm:$0xff] %v12154_v61 }
 0x2fe   : > { %5493 = vmatprep.subr.bf16.mxu1 %v13842_v26 }
 0x300   : > { %7618 = vmatmul.mubr.bf16.gmra.mrb[148].mxu1 %v4389_v20  ;;  %4871 = vmatmul.mubr.bf16.gmra.mrb[212].mxu0 %v4451_v39 }
 0x301   : > { %7621 = vmatprep.mubr.bf16.mxu1 %v4395_v54  ;;  %5494 = vmatpush1.bf16.msra.mxu1 %v8111_v17  ;;  %v3426_v17 = vpop.f32.mrb[48].mxu1  ;;  %v4218_v54 = vld [vmem:[#allocation3 + $0x1d0] sm:$0xff] }
 0x302   : > { %5495 = vmatprep.subr.bf16.mxu1 %v13842_v26  ;;  %4878 = vmatprep.mubr.bf16.mxu0 %v4459_v24  ;;  %v3428_v20 = vpop.f32.mrb[49].mxu1  ;;  %v7511_v39 = vpop.f32.mrb[132].mxu0  ;;  %v4470_v36 = vrot.slane %v4218_v54, 4 }
 0x303   : > { %v3429_v33 = vpop.f32.mrb[50].mxu1  ;;  %v3651_v24 = vpop.f32.mrb[133].mxu0  ;;  %v4221_v20 = vld [vmem:[#allocation3 + $0x1e8] sm:$0xff] }
 0x304   : > { %v12170_v10 = vadd.f32 %v3651_v24, %v3426_v17  ;;  %v7512_v40 = vpop.f32.mrb[134].mxu0  ;;  %v4217_v17 = vld [vmem:[#allocation3 + $0x1c8] sm:$0xff] }
 0x305   : > { %5496 = vmatpush1.bf16.msra.mxu1 %v8112_v15  ;;  %v3431_v15 = vpop.f32.mrb[51].mxu1  ;;  %v3654_v25 = vpop.f32.mrb[135].mxu0  ;;  %v12191_v24 = vld [vmem:[#allocation3 + $0x148] sm:$0xff] }
 0x306   : > { %5497 = vmatprep.subr.bf16.mxu1 %v13842_v26  ;;  %13845 = vst [vmem:[#allocation29_spill] sm:$0xff] %v12170_v10  ;;  %v4468_v15 = vrot.slane %v4217_v17, 4  ;;  %v4224_v17 = vld [vmem:[#allocation3 + $0x200] sm:$0xff] }
 0x308   : > { %7622 = vmatmul.mubr.bf16.gmra.mrb[152].mxu1 %v4401_v9  ;;  %4879 = vmatmul.mubr.bf16.gmra.mrb[216].mxu0 %v4457_v62  ;;  %v12177_v9 = vadd.f32 %v3654_v25, %v3429_v33  ;;  %v4424_v62 = vrot.slane %v12173_v5, 4  ;;  %v8119_v33 = vld [vmem:[#allocation9 + $0x1c0] sm:$0xff]   ;;  %v8120_v25 = vld [vmem:[#allocation9 + $0x1c8] sm:$0xff]  }
 0x309   : > { %7625 = vmatprep.mubr.bf16.mxu1 %v4407_v44  ;;  %5498 = vmatpush1.bf16.msra.mxu1 %v8114_v43  ;;  %v12175_v43 = vld [vmem:[#allocation3 + $0x130] sm:$0xff] }
 0x30a   : > { %5499 = vmatprep.subr.bf16.mxu1 %v13842_v26  ;;  %4886 = vmatprep.mubr.bf16.mxu0 %v4465_v42  ;;  %13846 = vst [vmem:[#allocation32_spill] sm:$0xff] %v12177_v9  ;;  %v3434_v44 = vpop.f32.mrb[52].mxu1  ;;  %v4430_v30 = vrot.slane %v12175_v43, 4  ;;  %v12207_v9 = vld [vmem:[#allocation3 + $0x190] sm:$0xff] }
 0x30b   : > { %v12183_v42 = vadd.f32 %v7511_v39, %v3434_v44  ;;  %v3436_v35 = vpop.f32.mrb[53].mxu1  ;;  %v4220_v44 = vld [vmem:[#allocation3 + $0x1e0] sm:$0xff] }
 0x30c   : > { %v3437_v54 = vpop.f32.mrb[54].mxu1  ;;  %v4431_v39 = vsel %vm4362_vm3, %v4424_v62, %v4430_v30 }
 0x30d   : > { %5500 = vmatpush1.bf16.msra.mxu1 %v8115_v34  ;;  %v4471_v34 = vsel %vm4362_vm3, %v4464_v22, %v4470_v36  ;;  %13847 = vst [vmem:[#allocation33_spill] sm:$0xff] %v12183_v42  ;;  %v12186_v21 = vadd.f32 %v7512_v40, %v3437_v54  ;;  %v4425_v22 = vsel %vm4362_vm3, %v4418_v19, %v4424_v62  ;;  %v4436_v19 = vrot.slane %v12191_v24, 4  ;;  %v12237_v42 = vld [vmem:[#allocation3 + $0x1d8] sm:$0xff] }
 0x30e   : > { %5501 = vmatprep.subr.bf16.mxu1 %v13842_v26  ;;  %v4469_v40 = vsel %vm4362_vm3, %v4462_v48, %v4468_v15  ;;  %v4474_v48 = vrot.slane %v4220_v44, 4  ;;  %v8122_v44 = vld [vmem:[#allocation9 + $0x1d8] sm:$0xff]  }
 0x30f   : > { %13848 = vst [vmem:[#allocation28_spill] sm:$0xff] %v12186_v21 }
 0x310   : > { %7626 = vmatmul.mubr.bf16.gmra.mrb[156].mxu1 %v4413_v53  ;;  %4887 = vmatmul.mubr.bf16.gmra.mrb[220].mxu0 %v4463_v13  ;;  %v4476_v53 = vrot.slane %v4221_v20, 4  ;;  %v8121_v20 = vld [vmem:[#allocation9 + $0x1d0] sm:$0xff]  }
 0x311   : > { %7629 = vmatprep.mubr.bf16.mxu1 %v4419_v60  ;;  %5502 = vmatpush1.bf16.msra.mxu1 %v8116_v2  ;;  %v3439_v2 = vpop.f32.mrb[55].mxu1  ;;  %v12193_v60 = vld [vmem:[#allocation3 + $0x160] sm:$0xff] }
 0x312   : > { %5503 = vmatprep.subr.bf16.mxu1 %v13842_v26  ;;  %4894 = vmatprep.mubr.bf16.mxu0 %v4471_v34  ;;  %v4477_v13 = vsel %vm4362_vm3, %v4470_v36, %v4476_v53  ;;  %v4442_v62 = vrot.slane %v12193_v60, 4  ;;  %v4437_v2 = vsel %vm4362_vm3, %v4430_v30, %v4436_v19  ;;  %v4482_v36 = vrot.slane %v4224_v17, 4 }
 0x313   : > { %v4475_v30 = vsel %vm4362_vm3, %v4468_v15, %v4474_v48 }
 0x315   : > { %5504 = vmatpush1.bf16.msra.mxu1 %v8117_v32  ;;  %v3442_v32 = vpop.f32.mrb[56].mxu1 }
 0x316   : > { %5505 = vmatprep.subr.bf16.mxu1 %v13842_v26  ;;  %v3444_v34 = vpop.f32.mrb[57].mxu1 }
 0x317   : > { %v3445_v35 = vpop.f32.mrb[58].mxu1  ;;  %v12205_v34 = vld [vmem:[#allocation3 + $0x178] sm:$0xff] }
 0x318   : > { %7630 = vmatmul.mubr.bf16.gmra.mrb[160].mxu1 %v4425_v22  ;;  %4895 = vmatmul.mubr.bf16.gmra.mrb[224].mxu0 %v4469_v40  ;;  %v3447_v54 = vpop.f32.mrb[59].mxu1  ;;  %v4443_v40 = vsel %vm4362_vm3, %v4436_v19, %v4442_v62  ;;  %v4448_v19 = vrot.slane %v12205_v34, 4 }
 0x319   : > { %7633 = vmatprep.mubr.bf16.mxu1 %v4431_v39  ;;  %5506 = vmatpush1.bf16.msra.mxu1 %v8119_v33  ;;  %v7515_v33 = vpop.f32.mrb[136].mxu0 }
 0x31a   : > { %5507 = vmatprep.subr.bf16.mxu1 %v13842_v26  ;;  %4902 = vmatprep.mubr.bf16.mxu0 %v4477_v13  ;;  %v3667_v22 = vpop.f32.mrb[137].mxu0 }
 0x31b   : > { %v12202_v39 = vadd.f32 %v3667_v22, %v3442_v32  ;;  %v7516_v13 = vpop.f32.mrb[138].mxu0  ;;  %v4483_v32 = vsel %vm4362_vm3, %v4476_v53, %v4482_v36  ;;  %v4449_v53 = vsel %vm4362_vm3, %v4442_v62, %v4448_v19 }
 0x31d   : > { %5508 = vmatpush1.bf16.msra.mxu1 %v8120_v25  ;;  %13849 = vst [vmem:[#allocation34_spill] sm:$0xff] %v12202_v39  ;;  %v3670_v25 = vpop.f32.mrb[139].mxu0  ;;  %v4227_v39 = vld [vmem:[#allocation3 + $0x218] sm:$0xff] }
 0x31e   : > { %5509 = vmatprep.subr.bf16.mxu1 %v13842_v26  ;;  %v12209_v54 = vadd.f32 %v3670_v25, %v3445_v35  ;;  %v8124_v25 = vld [vmem:[#allocation9 + $0x1e0] sm:$0xff]  }
 0x320   : > { %7634 = vmatmul.mubr.bf16.gmra.mrb[164].mxu1 %v4437_v2  ;;  %13850 = vst [vmem:[#allocation37_spill] sm:$0xff] %v12209_v54  ;;  %v3450_v17 = vpop.f32.mrb[60].mxu1  ;;  %4903 = vmatmul.mubr.bf16.gmra.mrb[228].mxu0 %v4475_v30  ;;  %v4223_v2 = vld [vmem:[#allocation3 + $0x1f8] sm:$0xff]  ;;  %v4488_v30 = vrot.slane %v4227_v39, 4  ;;  %v4226_v39 = vld [vmem:[#allocation3 + $0x210] sm:$0xff] }
 0x321   : > { %7637 = vmatprep.mubr.bf16.mxu1 %v4443_v40  ;;  %5510 = vmatpush1.bf16.msra.mxu1 %v8121_v20  ;;  %v12215_v22 = vadd.f32 %v7515_v33, %v3450_v17  ;;  %v3452_v40 = vpop.f32.mrb[61].mxu1  ;;  %v4454_v20 = vrot.slane %v12207_v9, 4  ;;  %v4480_v21 = vrot.slane %v4223_v2, 4  ;;  %v12223_v17 = vld [vmem:[#allocation3 + $0x1a8] sm:$0xff] }
 0x322   : > { %5511 = vmatprep.subr.bf16.mxu1 %v13842_v26  ;;  %4910 = vmatprep.mubr.bf16.mxu0 %v4483_v32  ;;  %v3453_v35 = vpop.f32.mrb[62].mxu1  ;;  %v12225_v32 = vld [vmem:[#allocation3 + $0x1c0] sm:$0xff]  ;;  %v4489_v2 = vsel %vm4362_vm3, %v4482_v36, %v4488_v30  ;;  %v4460_v62 = vrot.slane %v12223_v17, 4 }
 0x323   : > { %13851 = vst [vmem:[#allocation39_spill] sm:$0xff] %v12215_v22  ;;  %v12218_v15 = vadd.f32 %v7516_v13, %v3453_v35  ;;  %v3455_v54 = vpop.f32.mrb[63].mxu1  ;;  %v4455_v33 = vsel %vm4362_vm3, %v4448_v19, %v4454_v20  ;;  %v4481_v13 = vsel %vm4362_vm3, %v4474_v48, %v4480_v21  ;;  %v4466_v19 = vrot.slane %v12225_v32, 4  ;;  %v4230_v35 = vld [vmem:[#allocation3 + $0x230] sm:$0xff] }
 0x324   : > { %v4486_v48 = vrot.slane %v4226_v39, 4  ;;  %v4494_v36 = vrot.slane %v4230_v35, 4  ;;  %v8131_v39 = vld [vmem:[#allocation9 + $0x1f8] sm:$0xff]  }
 0x325   : > { %5512 = vmatpush1.bf16.msra.mxu1 %v8122_v44  ;;  %13852 = vst [vmem:[#allocation40_spill] sm:$0xff] %v12218_v15  ;;  %v8126_v44 = vld [vmem:[#allocation9 + $0x1e8] sm:$0xff]  }
 0x326   : > { %5513 = vmatprep.subr.bf16.mxu1 %v13842_v26 }
 0x328   : > { %7638 = vmatmul.mubr.bf16.gmra.mrb[168].mxu1 %v4449_v53  ;;  %4911 = vmatmul.mubr.bf16.gmra.mrb[232].mxu0 %v4481_v13  ;;  %v4461_v13 = vsel %vm4362_vm3, %v4454_v20, %v4460_v62  ;;  %v4487_v20 = vsel %vm4362_vm3, %v4480_v21, %v4486_v48 }
 0x329   : > { %7641 = vmatprep.mubr.bf16.mxu1 %v4455_v33  ;;  %5514 = vmatpush1.bf16.msra.mxu1 %v8124_v25  ;;  %v3458_v54 = vpop.f32.mrb[64].mxu1  ;;  %v8128_v25 = vld [vmem:[#allocation9 + $0x1f0] sm:$0xff]  }
 0x32a   : > { %5515 = vmatprep.subr.bf16.mxu1 %v13842_v26  ;;  %v3460_v40 = vpop.f32.mrb[65].mxu1  ;;  %4918 = vmatprep.mubr.bf16.mxu0 %v4489_v2  ;;  %v4467_v2 = vsel %vm4362_vm3, %v4460_v62, %v4466_v19  ;;  %v4229_v62 = vld [vmem:[#allocation3 + $0x228] sm:$0xff] }
 0x32b   : > { %v3461_v53 = vpop.f32.mrb[66].mxu1  ;;  %v7519_v15 = vpop.f32.mrb[140].mxu0 }
 0x32c   : > { %v3463_v33 = vpop.f32.mrb[67].mxu1  ;;  %v3683_v22 = vpop.f32.mrb[141].mxu0 }
 0x32d   : > { %5516 = vmatpush1.bf16.msra.mxu1 %v8126_v44  ;;  %v12234_v10 = vadd.f32 %v3683_v22, %v3458_v54  ;;  %v7520_v40 = vpop.f32.mrb[142].mxu0  ;;  %v4495_v22 = vsel %vm4362_vm3, %v4488_v30, %v4494_v36  ;;  %v4472_v54 = vrot.slane %v12237_v42, 4 }
 0x32e   : > { %5517 = vmatprep.subr.bf16.mxu1 %v13842_v26  ;;  %v3686_v44 = vpop.f32.mrb[143].mxu0 }
 0x32f   : > { %13853 = vst [vmem:[#allocation25_spill] sm:$0xff] %v12234_v10  ;;  %v12241_v33 = vadd.f32 %v3686_v44, %v3461_v53  ;;  %v4492_v44 = vrot.slane %v4229_v62, 4 }
 0x330   : > { %7642 = vmatmul.mubr.bf16.gmra.mrb[172].mxu1 %v4461_v13  ;;  %4919 = vmatmul.mubr.bf16.gmra.mrb[236].mxu0 %v4487_v20  ;;  %v4500_v20 = vrot.slane %v12028_v63, 4 }
 0x331   : > { %7645 = vmatprep.mubr.bf16.mxu1 %v4467_v2  ;;  %5518 = vmatpush1.bf16.msra.mxu1 %v8128_v25  ;;  %13854 = vst [vmem:[#allocation35_spill] sm:$0xff] %v12241_v33  ;;  %v4478_v25 = vrot.slane %v12239_v0, 4  ;;  %v12255_v33 = vld [vmem:[#allocation3 + $0x208] sm:$0xff] }
 0x332   : > { %5519 = vmatprep.subr.bf16.mxu1 %v13842_v26  ;;  %4926 = vmatprep.mubr.bf16.mxu0 %v4495_v22  ;;  %v4473_v26 = vsel %vm4362_vm3, %v4466_v19, %v4472_v54 }
 0x333   : > { %v3466_v35 = vpop.f32.mrb[68].mxu1  ;;  %v4479_v30 = vsel %vm4362_vm3, %v4472_v54, %v4478_v25  ;;  %v4236_v54 = vld [vmem:[#allocation3 + $0x260] sm:$0xf] }
 0x334   : > { %v12247_v13 = vadd.f32 %v7519_v15, %v3466_v35  ;;  %v3468_v2 = vpop.f32.mrb[69].mxu1  ;;  %v12257_v15 = vld [vmem:[#allocation3 + $0x220] sm:$0xff]  ;;  %v4493_v35 = vsel %vm4362_vm3, %v4486_v48, %v4492_v44 }
 0x335   : > { %v3469_v10 = vpop.f32.mrb[70].mxu1  ;;  %5520 = vmatpush1.bf16.msra.mxu1 %v8131_v39  ;;  %13857 = vst [vmem:[#allocation41_spill] sm:$0xff] %v12257_v15  ;;  %v12262_v39 = vld [vmem:[#allocation3 + $0x240] sm:$0xff]  ;;  %v4490_v63 = vrot.slane %v12257_v15, 4 }
 0x336   : > { %13855 = vst [vmem:[#allocation36_spill] sm:$0xff] %v12247_v13  ;;  %v12250_v53 = vadd.f32 %v7520_v40, %v3469_v10  ;;  %v3471_v21 = vpop.f32.mrb[71].mxu1  ;;  %v4501_v10 = vsel %vm4362_vm3, %v4494_v36, %v4500_v20  ;;  %v4484_v40 = vrot.slane %v12255_v33, 4  ;;  %13858 = vst [vmem:[#allocation19_spill] sm:$0xff] %v12262_v39 }
 0x338   : > { %13856 = vst [vmem:[#allocation38_spill] sm:$0xff] %v12250_v53  ;;  %7646 = vmatmul.mubr.bf16.gmra.mrb[176].mxu1 %v4473_v26  ;;  %4927 = vmatmul.mubr.bf16.gmra.mrb[240].mxu0 %v4493_v35  ;;  %v4498_v26 = vrot.slane %v12262_v39, 4  ;;  %v4485_v48 = vsel %vm4362_vm3, %v4478_v25, %v4484_v40  ;;  %v4506_v35 = vrot.slane %v4236_v54, 4  ;;  %v4491_v53 = vsel %vm4362_vm3, %v4484_v40, %v4490_v63  ;;  %v12279_v40 = vld [vmem:[#allocation3 + $0x250] sm:$0xff] }
 0x339   : > { %7649 = vmatprep.mubr.bf16.mxu1 %v4479_v30  ;;  %4934 = vmatprep.mubr.bf16.mxu0 %v4501_v10 }
 0x33a   : > { %v4507_v25 = vsel %vm4362_vm3, %v4500_v20, %v4506_v35  ;;  %v4237_v35 = vld [vmem:[#allocation3 + $0x268] sm:$0xf] }
 0x33b   : > { %v3474_v22 = vpop.f32.mrb[72].mxu1 }
 0x33c   : > { %v3476_v19 = vpop.f32.mrb[73].mxu1 }
 0x33d   : > { %v3477_v62 = vpop.f32.mrb[74].mxu1  ;;  %v7523_v21 = vpop.f32.mrb[144].mxu0  ;;  %v12270_v19 = vld [vmem:[#allocation3 + $0x238] sm:$0xff] }
 0x33e   : > { %v3479_v2 = vpop.f32.mrb[75].mxu1  ;;  %v3699_v30 = vpop.f32.mrb[145].mxu0  ;;  %v4496_v54 = vrot.slane %v12270_v19, 4 }
 0x33f   : > { %v12267_v36 = vadd.f32 %v3699_v30, %v3474_v22  ;;  %v7524_v13 = vpop.f32.mrb[146].mxu0  ;;  %v4499_v2 = vsel %vm4362_vm3, %v4492_v44, %v4498_v26 }
 0x340   : > { %7650 = vmatmul.mubr.bf16.gmra.mrb[180].mxu1 %v4485_v48  ;;  %v3702_v10 = vpop.f32.mrb[147].mxu0  ;;  %4935 = vmatmul.mubr.bf16.gmra.mrb[244].mxu0 %v4499_v2  ;;  %v4235_v48 = vld [vmem:[#allocation3 + $0x258] sm:$0xf]  ;;  %v4497_v2 = vsel %vm4362_vm3, %v4490_v63, %v4496_v54 }
 0x341   : > { %13859 = vst [vmem:[#allocation26_spill] sm:$0xff] %v12267_v36  ;;  %7653 = vmatprep.mubr.bf16.mxu1 %v4491_v53  ;;  %v12272_v15 = vadd.f32 %v3702_v10, %v3477_v62  ;;  %4942 = vmatprep.mubr.bf16.mxu0 %v4507_v25  ;;  %v4502_v53 = vrot.slane %v12279_v40, 4  ;;  %v4504_v44 = vrot.slane %v4235_v48, 4  ;;  %v4508_v36 = vrot.slane %v4237_v35, 4 }
 0x343   : > { %13860 = vst [vmem:[#allocation27_spill] sm:$0xff] %v12272_v15  ;;  %v3482_v61 = vpop.f32.mrb[76].mxu1  ;;  %v4503_v20 = vsel %vm4362_vm3, %v4496_v54, %v4502_v53  ;;  %v8138_v15 = vld [vmem:[#allocation2 + $0xd0] sm:$0xff]   ;;  %v4505_v25 = vsel %vm4362_vm3, %v4498_v26, %v4504_v44 }
 0x344   : > { %v12277_v22 = vadd.f32 %v7523_v21, %v3482_v61  ;;  %v3484_v30 = vpop.f32.mrb[77].mxu1  ;;  %v2603_v61 = vshrl.u32 %v8138_v15, 16  ;;  %v8132_v21 = vld [vmem:[#allocation2 + $0xd8] ss:$0 sps:$4 sm:$0x11]   ;;  %v5225_v44 = vld [vmem:[#allocation3 + $0x50] sm:$0xff] }
 0x345   : > { %v3485_v39 = vpop.f32.mrb[78].mxu1 }
 0x346   : > { %13861 = vst [vmem:[#allocation20_spill] sm:$0xff] %v12277_v22  ;;  %v12282_v62 = vadd.f32 %v7524_v13, %v3485_v39  ;;  %v3487_v10 = vpop.f32.mrb[79].mxu1  ;;  %v2607_v22 = vshll.u32 %v8132_v21, 16  ;;  %v2605_v63 = vor.u32 %v2603_v61, %v12034_v6 }
 0x348   : > { %7654 = vmatmul.mubr.bf16.gmra.mrb[184].mxu1 %v4497_v2  ;;  %4943 = vmatmul.mubr.bf16.gmra.mrb[248].mxu0 %v4505_v25  ;;  %v2609_v48 = vrot.slane %v2607_v22, 1  ;;  %v4509_v2 = vsel %vm4362_vm3, %v4502_v53, %v4508_v36 }
 0x349   : > { %7657 = vmatprep.mubr.bf16.mxu1 %v4503_v20  ;;  %7677 = vmatprep.mubr.bf16.mxu0 %v12109_v23 }
 0x34a   : > { %v12291_v20 = vsel %vm13862_vm10, %v2605_v63, %v2609_v48 }
 0x34b   : > { %v3490_v30 = vpop.f32.mrb[80].mxu1  ;;  %13863 = vst [vmem:[#allocation30_spill] sm:$0xff] %v12291_v20 }
 0x34c   : > { %v3492_v13 = vpop.f32.mrb[81].mxu1 }
 0x34d   : > { %v3493_v39 = vpop.f32.mrb[82].mxu1  ;;  %v7527_v54 = vpop.f32.mrb[148].mxu0  ;;  %v5228_v13 = vld [vmem:[#allocation3 + $0x68] sm:$0xff] }
 0x34e   : > { %v3495_v10 = vpop.f32.mrb[83].mxu1  ;;  %v3715_v15 = vpop.f32.mrb[149].mxu0 }
 0x34f   : > { %v12293_v26 = vadd.f32 %v3715_v15, %v3490_v30  ;;  %v7528_v35 = vpop.f32.mrb[150].mxu0  ;;  %v5224_v30 = vld [vmem:[#allocation3 + $0x48] sm:$0xff]  ;;  %v5231_v15 = vld [vmem:[#allocation3 + $0x80] sm:$0xff] }
 0x350   : > { %7658 = vmatmul.mubr.bf16.gmra.mrb[188].mxu1 %v4509_v2  ;;  %v3718_v21 = vpop.f32.mrb[151].mxu0  ;;  %7678 = vmatmul.mubr.bf16.vlgmr.msra.gmra.mrb[252].mxu0 %v12113_v46 }
 0x351   : > { %5521 = vmatprep.mubr.bf16.mxu1 %v5225_v44  ;;  %v12295_v23 = vadd.f32 %v3718_v21, %v3493_v39  ;;  %7681 = vmatprep.mubr.bf16.mxu0 %v12127_v56 }
 0x353   : > { %v3498_v25 = vpop.f32.mrb[84].mxu1 }
 0x354   : > { %v12298_v6 = vadd.f32 %v7527_v54, %v3498_v25  ;;  %v3500_v22 = vpop.f32.mrb[85].mxu1  ;;  %v5227_v54 = vld [vmem:[#allocation3 + $0x60] sm:$0xff] }
 0x355   : > { %v3501_v36 = vpop.f32.mrb[86].mxu1 }
 0x356   : > { %v12301_v53 = vadd.f32 %v7528_v35, %v3501_v36  ;;  %v3503_v61 = vpop.f32.mrb[87].mxu1 }
 0x358   : > { %5522 = vmatmul.mubr.bf16.vlgmr.msra.gmra.mrb[192].mxu1 %v5224_v30  ;;  %7682 = vmatmul.mubr.bf16.gmra.mrb[0].mxu0 %v12129_v52 }
 0x359   : > { %5529 = vmatprep.mubr.bf16.mxu1 %v5228_v13  ;;  %7685 = vmatprep.mubr.bf16.mxu0 %v12141_v45  ;;  %v5230_v13 = vld [vmem:[#allocation3 + $0x78] sm:$0xff] }
 0x35b   : > { %v3506_v63 = vpop.f32.mrb[88].mxu1  ;;  %v7531_v10 = vpop.f32.mrb[152].mxu0 }
 0x35c   : > { %v3508_v39 = vpop.f32.mrb[89].mxu1  ;;  %v3731_v2 = vpop.f32.mrb[153].mxu0 }
 0x35d   : > { %v3509_v46 = vpop.f32.mrb[90].mxu1  ;;  %v12305_v56 = vadd.f32 %v3731_v2, %v3506_v63  ;;  %v7532_v44 = vpop.f32.mrb[154].mxu0  ;;  %v5234_v39 = vld [vmem:[#allocation3 + $0x98] sm:$0xff] }
 0x35e   : > { %v3511_v48 = vpop.f32.mrb[91].mxu1  ;;  %v3734_v35 = vpop.f32.mrb[155].mxu0 }
 0x35f   : > { %v12307_v21 = vadd.f32 %v3734_v35, %v3509_v46 }
 0x360   : > { %5530 = vmatmul.mubr.bf16.gmra.mrb[196].mxu1 %v5227_v54  ;;  %7686 = vmatmul.mubr.bf16.gmra.mrb[4].mxu0 %v12143_v1 }
 0x361   : > { %5537 = vmatprep.mubr.bf16.mxu1 %v5231_v15  ;;  %7689 = vmatprep.mubr.bf16.mxu0 %v12159_v57 }
 0x363   : > { %v3514_v25 = vpop.f32.mrb[92].mxu1  ;;  %v12315_v30 = vpop.f32.mrb[156].mxu0 }
 0x364   : > { %v12310_v52 = vadd.f32 %v7531_v10, %v3514_v25  ;;  %v3516_v45 = vpop.f32.mrb[93].mxu1  ;;  %v4762_v63 = vpop.f32.mrb[157].mxu0 }
 0x365   : > { %v3517_v22 = vpop.f32.mrb[94].mxu1  ;;  %v12317_v46 = vpop.f32.mrb[158].mxu0 }
 0x366   : > { %v12313_v36 = vadd.f32 %v7532_v44, %v3517_v22  ;;  %v3519_v61 = vpop.f32.mrb[95].mxu1  ;;  %v4765_v48 = vpop.f32.mrb[159].mxu0 }
 0x368   : > { %5538 = vmatmul.mubr.bf16.gmra.mrb[200].mxu1 %v5230_v13  ;;  %7690 = vmatmul.mubr.bf16.gmra.mrb[8].mxu0 %v12161_v11  ;;  %v5233_v11 = vld [vmem:[#allocation3 + $0x90] sm:$0xff] }
 0x369   : > { %5545 = vmatprep.mubr.bf16.mxu1 %v5234_v39  ;;  %7693 = vmatprep.mubr.bf16.mxu0 %v12173_v5 }
 0x36b   : > { %v7551_v1 = vpop.f32.mrb[96].mxu1  ;;  %v12330_v35 = vpop.f32.mrb[160].mxu0 }
 0x36c   : > { %v12321_v10 = vadd.f32 %v7551_v1, %v12057_v3  ;;  %v3972_v57 = vpop.f32.mrb[97].mxu1  ;;  %v4770_v45 = vpop.f32.mrb[161].mxu0  ;;  %v5237_v3 = vld [vmem:[#allocation3 + $0xb0] sm:$0xff] }
 0x36d   : > { %v12325_v54 = vadd.f32 %v3972_v57, %v12044_v37  ;;  %v7552_v2 = vpop.f32.mrb[98].mxu1  ;;  %v12335_v22 = vpop.f32.mrb[162].mxu0 }
 0x36e   : > { %v12328_v15 = vadd.f32 %v7552_v2, %v12061_v47  ;;  %v3975_v44 = vpop.f32.mrb[99].mxu1  ;;  %v4773_v5 = vpop.f32.mrb[163].mxu0 }
 0x36f   : > { %v12333_v25 = vadd.f32 %v3975_v44, %v12046_v55 }
 0x370   : > { %5546 = vmatmul.mubr.bf16.gmra.mrb[204].mxu1 %v5233_v11  ;;  %7694 = vmatmul.mubr.bf16.gmra.mrb[12].mxu0 %v12175_v43  ;;  %v5236_v43 = vld [vmem:[#allocation3 + $0xa8] sm:$0xff] }
 0x371   : > { %5553 = vmatprep.mubr.bf16.mxu1 %v5237_v3  ;;  %7697 = vmatprep.mubr.bf16.mxu0 %v12191_v24 }
 0x373   : > { %v7555_v37 = vpop.f32.mrb[100].mxu1  ;;  %v12348_v48 = vpop.f32.mrb[164].mxu0 }
 0x374   : > { %v12339_v47 = vadd.f32 %v7555_v37, %v12075_v14  ;;  %v3988_v61 = vpop.f32.mrb[101].mxu1  ;;  %v4778_v57 = vpop.f32.mrb[165].mxu0  ;;  %v5240_v14 = vld [vmem:[#allocation3 + $0xc8] sm:$0xff] }
 0x375   : > { %v12343_v55 = vadd.f32 %v3988_v61, %v12059_v31  ;;  %v7556_v13 = vpop.f32.mrb[102].mxu1  ;;  %v12353_v2 = vpop.f32.mrb[166].mxu0 }
 0x376   : > { %v12346_v63 = vadd.f32 %v7556_v13, %v12079_v29  ;;  %v3991_v39 = vpop.f32.mrb[103].mxu1  ;;  %v4781_v24 = vpop.f32.mrb[167].mxu0 }
 0x377   : > { %v12351_v1 = vadd.f32 %v3991_v39, %v12063_v51 }
 0x378   : > { %5554 = vmatmul.mubr.bf16.gmra.mrb[208].mxu1 %v5236_v43  ;;  %7698 = vmatmul.mubr.bf16.gmra.mrb[16].mxu0 %v12193_v60  ;;  %v5239_v60 = vld [vmem:[#allocation3 + $0xc0] sm:$0xff] }
 0x379   : > { %5561 = vmatprep.mubr.bf16.mxu1 %v5240_v14  ;;  %7701 = vmatprep.mubr.bf16.mxu0 %v12205_v34 }
 0x37b   : > { %v7559_v31 = vpop.f32.mrb[104].mxu1  ;;  %v12366_v5 = vpop.f32.mrb[168].mxu0 }
 0x37c   : > { %v12357_v29 = vadd.f32 %v7559_v31, %v12091_v50  ;;  %v4004_v44 = vpop.f32.mrb[105].mxu1  ;;  %v4786_v61 = vpop.f32.mrb[169].mxu0  ;;  %v5243_v50 = vld [vmem:[#allocation3 + $0xe0] sm:$0xff] }
 0x37d   : > { %v12361_v51 = vadd.f32 %v4004_v44, %v12073_v38  ;;  %v7560_v11 = vpop.f32.mrb[106].mxu1  ;;  %v12371_v13 = vpop.f32.mrb[170].mxu0 }
 0x37e   : > { %v12364_v45 = vadd.f32 %v7560_v11, %v12095_v4  ;;  %v4007_v3 = vpop.f32.mrb[107].mxu1  ;;  %v4789_v34 = vpop.f32.mrb[171].mxu0 }
 0x37f   : > { %v12369_v37 = vadd.f32 %v4007_v3, %v12077_v8 }
 0x380   : > { %5562 = vmatmul.mubr.bf16.gmra.mrb[212].mxu1 %v5239_v60  ;;  %7702 = vmatmul.mubr.bf16.gmra.mrb[20].mxu0 %v12207_v9  ;;  %v5242_v9 = vld [vmem:[#allocation3 + $0xd8] sm:$0xff] }
 0x381   : > { %5569 = vmatprep.mubr.bf16.mxu1 %v5243_v50  ;;  %7705 = vmatprep.mubr.bf16.mxu0 %v12223_v17 }
 0x383   : > { %v7563_v38 = vpop.f32.mrb[108].mxu1  ;;  %v12384_v24 = vpop.f32.mrb[172].mxu0 }
 0x384   : > { %v12375_v4 = vadd.f32 %v7563_v38, %v12106_v41  ;;  %v4020_v39 = vpop.f32.mrb[109].mxu1  ;;  %v4794_v44 = vpop.f32.mrb[173].mxu0  ;;  %v5246_v41 = vld [vmem:[#allocation3 + $0xf8] sm:$0xff] }
 0x385   : > { %v12379_v8 = vadd.f32 %v4020_v39, %v12089_v7  ;;  %v7564_v43 = vpop.f32.mrb[110].mxu1  ;;  %v12389_v11 = vpop.f32.mrb[174].mxu0  ;;  %v13866_v44 = vld [vmem:[#allocation24_spill] sm:$0xff] }
 0x386   : > { %v12382_v57 = vadd.f32 %v7564_v43, %v12115_v49  ;;  %v4023_v14 = vpop.f32.mrb[111].mxu1  ;;  %v4797_v17 = vpop.f32.mrb[175].mxu0 }
 0x387   : > { %v12387_v31 = vadd.f32 %v4023_v14, %v12093_v28 }
 0x388   : > { %5570 = vmatmul.mubr.bf16.gmra.mrb[216].mxu1 %v5242_v9  ;;  %7706 = vmatmul.mubr.bf16.gmra.mrb[24].mxu0 %v12225_v32  ;;  %v5245_v32 = vld [vmem:[#allocation3 + $0xf0] sm:$0xff] }
 0x389   : > { %5577 = vmatprep.mubr.bf16.mxu1 %v5246_v41  ;;  %7709 = vmatprep.mubr.bf16.mxu0 %v12237_v42 }
 0x38b   : > { %v7567_v7 = vpop.f32.mrb[112].mxu1  ;;  %v12402_v34 = vpop.f32.mrb[176].mxu0 }
 0x38c   : > { %v12393_v49 = vadd.f32 %v7567_v7, %v12120_v27  ;;  %v4036_v3 = vpop.f32.mrb[113].mxu1  ;;  %v4802_v39 = vpop.f32.mrb[177].mxu0  ;;  %v5249_v27 = vld [vmem:[#allocation3 + $0x110] sm:$0xff] }
 0x38d   : > { %v12397_v28 = vadd.f32 %v4036_v3, %v12104_v59  ;;  %v7568_v60 = vpop.f32.mrb[114].mxu1  ;;  %v12407_v43 = vpop.f32.mrb[178].mxu0  ;;  %v13868_v3 = vld [vmem:[#allocation23_spill] sm:$0xff]  ;;  %v13870_v39 = vld [vmem:[#allocation41_spill] sm:$0xff] }
 0x38e   : > { %v12400_v61 = vadd.f32 %v7568_v60, %v12123_v18  ;;  %v4039_v50 = vpop.f32.mrb[115].mxu1  ;;  %v4805_v42 = vpop.f32.mrb[179].mxu0 }
 0x38f   : > { %v12405_v38 = vadd.f32 %v4039_v50, %v12111_v12 }
 0x390   : > { %5578 = vmatmul.mubr.bf16.gmra.mrb[220].mxu1 %v5245_v32  ;;  %7710 = vmatmul.mubr.bf16.gmra.mrb[28].mxu0 %v12239_v0  ;;  %v5248_v0 = vld [vmem:[#allocation3 + $0x108] sm:$0xff] }
 0x391   : > { %5585 = vmatprep.mubr.bf16.mxu1 %v5249_v27  ;;  %7713 = vmatprep.mubr.bf16.mxu0 %v12255_v33  ;;  %v13871_v27 = vld [vmem:[#allocation33_spill] sm:$0xff] }
 0x393   : > { %v7571_v59 = vpop.f32.mrb[116].mxu1  ;;  %v12420_v7 = vpop.f32.mrb[180].mxu0 }
 0x394   : > { %v12411_v18 = vadd.f32 %v7571_v59, %v12151_v58  ;;  %v4052_v14 = vpop.f32.mrb[117].mxu1  ;;  %v4810_v50 = vpop.f32.mrb[181].mxu0  ;;  %v5252_v58 = vld [vmem:[#allocation3 + $0x128] sm:$0xff] }
 0x395   : > { %v12415_v12 = vadd.f32 %v4052_v14, %v12138_v16  ;;  %v7572_v9 = vpop.f32.mrb[118].mxu1  ;;  %v12425_v32 = vpop.f32.mrb[182].mxu0  ;;  %v13873_v14 = vld [vmem:[#allocation29_spill] sm:$0xff] }
 0x396   : > { %13864 = vst [vmem:[#allocation31_spill] sm:$0xff] %v12411_v18  ;;  %v12418_v41 = vadd.f32 %v7572_v9, %v13866_v44  ;;  %v4055_v17 = vpop.f32.mrb[119].mxu1  ;;  %v4813_v33 = vpop.f32.mrb[183].mxu0  ;;  %v5264_v18 = vld [vmem:[#allocation3 + $0x188] sm:$0xff] }
 0x397   : > { %13865 = vst [vmem:[#allocation21_spill] sm:$0xff] %v12415_v12  ;;  %v12423_v60 = vadd.f32 %v4055_v17, %v13868_v3  ;;  %v13875_v17 = vld [vmem:[#allocation28_spill] sm:$0xff] }
 0x398   : > { %13867 = vst [vmem:[#allocation22_spill] sm:$0xff] %v12418_v41  ;;  %5586 = vmatmul.mubr.bf16.gmra.mrb[224].mxu1 %v5248_v0  ;;  %7714 = vmatmul.mubr.bf16.gmra.mrb[32].mxu0 %v13870_v39  ;;  %v5251_v39 = vld [vmem:[#allocation3 + $0x120] sm:$0xff]  ;;  %v13893_v41 = vld [vmem:[#allocation35_spill] sm:$0xff] }
 0x399   : > { %13869 = vst [vmem:[#allocation24_spill] sm:$0xff] %v12423_v60  ;;  %5593 = vmatprep.mubr.bf16.mxu1 %v5252_v58  ;;  %7717 = vmatprep.mubr.bf16.mxu0 %v12270_v19  ;;  %v13877_v58 = vld [vmem:[#allocation32_spill] sm:$0xff] }
 0x39b   : > { %v7575_v16 = vpop.f32.mrb[120].mxu1  ;;  %v12438_v50 = vpop.f32.mrb[184].mxu0 }
 0x39c   : > { %v12429_v42 = vadd.f32 %v7575_v16, %v13871_v27  ;;  %v4068_v59 = vpop.f32.mrb[121].mxu1  ;;  %v4818_v20 = vpop.f32.mrb[185].mxu0  ;;  %v5255_v16 = vld [vmem:[#allocation3 + $0x140] sm:$0xff] }
 0x39d   : > { %v12433_v9 = vadd.f32 %v4068_v59, %v13873_v14  ;;  %v7576_v44 = vpop.f32.mrb[122].mxu1  ;;  %v12443_v27 = vpop.f32.mrb[186].mxu0  ;;  %v13879_v14 = vld [vmem:[#allocation39_spill] sm:$0xff]  ;;  %v13883_v20 = vld [vmem:[#allocation40_spill] sm:$0xff] }
 0x39e   : > { %13872 = vst [vmem:[#allocation23_spill] sm:$0xff] %v12429_v42  ;;  %v12436_v3 = vadd.f32 %v7576_v44, %v13875_v17  ;;  %v4071_v0 = vpop.f32.mrb[123].mxu1  ;;  %v4821_v19 = vpop.f32.mrb[187].mxu0 }
 0x39f   : > { %13874 = vst [vmem:[#allocation41_spill] sm:$0xff] %v12433_v9  ;;  %v12441_v33 = vadd.f32 %v4071_v0, %v13877_v58  ;;  %v13881_v9 = vld [vmem:[#allocation34_spill] sm:$0xff] }
 0x3a0   : > { %13876 = vst [vmem:[#allocation33_spill] sm:$0xff] %v12436_v3  ;;  %5594 = vmatmul.mubr.bf16.gmra.mrb[228].mxu1 %v5251_v39  ;;  %7718 = vmatmul.mubr.bf16.gmra.mrb[36].mxu0 %v12279_v40  ;;  %v8139_v3 = vld [vmem:[#allocation3 + $0x268] sm:$0xff]  ;;  %v5254_v40 = vld [vmem:[#allocation3 + $0x138] sm:$0xff] }
 0x3a1   : > { %13878 = vst [vmem:[#allocation29_spill] sm:$0xff] %v12441_v33  ;;  %5601 = vmatprep.mubr.bf16.mxu1 %v5255_v16  ;;  %7721 = vmatprep.mubr.bf16.mxu0 %v8139_v3  ;;  %v13885_v16 = vld [vmem:[#allocation37_spill] sm:$0xff] }
 0x3a3   : > { %v7579_v59 = vpop.f32.mrb[124].mxu1  ;;  %v12455_v42 = vpop.f32.mrb[188].mxu0 }
 0x3a4   : > { %v12447_v44 = vadd.f32 %v7579_v59, %v13879_v14  ;;  %v4084_v17 = vpop.f32.mrb[125].mxu1  ;;  %v4826_v60 = vpop.f32.mrb[189].mxu0  ;;  %v5258_v59 = vld [vmem:[#allocation3 + $0x158] sm:$0xff] }
 0x3a5   : > { %v12450_v0 = vadd.f32 %v4084_v17, %v13881_v9  ;;  %v7580_v58 = vpop.f32.mrb[126].mxu1  ;;  %v12460_v14 = vpop.f32.mrb[190].mxu0  ;;  %v5295_v9 = vld [vmem:[#allocation3 + $0x280] sm:$0xff] }
 0x3a6   : > { %13880 = vst [vmem:[#allocation28_spill] sm:$0xff] %v12447_v44  ;;  %v12453_v39 = vadd.f32 %v7580_v58, %v13883_v20  ;;  %v4087_v33 = vpop.f32.mrb[127].mxu1  ;;  %v4829_v3 = vpop.f32.mrb[191].mxu0 }
 0x3a7   : > { %13882 = vst [vmem:[#allocation32_spill] sm:$0xff] %v12450_v0  ;;  %v12458_v19 = vadd.f32 %v4087_v33, %v13885_v16  ;;  %v13887_v0 = vld [vmem:[#allocation36_spill] sm:$0xff]  ;;  %v13891_v16 = vld [vmem:[#allocation38_spill] sm:$0xff] }
 0x3a8   : > { %13884 = vst [vmem:[#allocation39_spill] sm:$0xff] %v12453_v39  ;;  %5602 = vmatmul.mubr.bf16.gmra.mrb[232].mxu1 %v5254_v40  ;;  %7722 = vmatmul.mubr.bf16.gmra.mrb[40].mxu0 %v5295_v9  ;;  %v13889_v39 = vld [vmem:[#allocation25_spill] sm:$0xff]  ;;  %v5257_v3 = vld [vmem:[#allocation3 + $0x150] sm:$0xff] }
 0x3a9   : > { %13886 = vst [vmem:[#allocation34_spill] sm:$0xff] %v12458_v19  ;;  %5609 = vmatprep.mubr.bf16.mxu1 %v5258_v59  ;;  %v5261_v9 = vld [vmem:[#allocation3 + $0x170] sm:$0xff] }
 0x3ab   : > { %v7583_v17 = vpop.f32.mrb[128].mxu1  ;;  %v12471_v40 = vpop.f32.mrb[192].mxu0 }
 0x3ac   : > { %v12463_v58 = vadd.f32 %v7583_v17, %v13887_v0  ;;  %v4100_v20 = vpop.f32.mrb[129].mxu1  ;;  %v4834_v12 = vpop.f32.mrb[193].mxu0 }
 0x3ad   : > { %v12466_v44 = vadd.f32 %v4100_v20, %v13889_v39  ;;  %v7584_v33 = vpop.f32.mrb[130].mxu1  ;;  %v12476_v0 = vpop.f32.mrb[194].mxu0  ;;  %v13895_v20 = vld [vmem:[#allocation20_spill] sm:$0xff] }
 0x3ae   : > { %13888 = vst [vmem:[#allocation40_spill] sm:$0xff] %v12463_v58  ;;  %v12469_v19 = vadd.f32 %v7584_v33, %v13891_v16  ;;  %v4103_v60 = vpop.f32.mrb[131].mxu1  ;;  %v4837_v17 = vpop.f32.mrb[195].mxu0  ;;  %v13896_v16 = vld [vmem:[#allocation26_spill] sm:$0xff] }
 0x3af   : > { %13890 = vst [vmem:[#allocation37_spill] sm:$0xff] %v12466_v44  ;;  %v12474_v59 = vadd.f32 %v4103_v60, %v13893_v41 }
 0x3b0   : > { %13892 = vst [vmem:[#allocation36_spill] sm:$0xff] %v12469_v19  ;;  %5610 = vmatmul.mubr.bf16.gmra.mrb[236].mxu1 %v5257_v3  ;;  %v13898_v3 = vld [vmem:[#allocation27_spill] sm:$0xff] }
 0x3b1   : > { %13894 = vst [vmem:[#allocation25_spill] sm:$0xff] %v12474_v59  ;;  %5617 = vmatprep.mubr.bf16.mxu1 %v5261_v9  ;;  %v5260_v9 = vld [vmem:[#allocation3 + $0x168] sm:$0xff] }
 0x3b3   : > { %v7587_v39 = vpop.f32.mrb[132].mxu1  ;;  %v12487_v12 = vpop.f32.mrb[196].mxu0 }
 0x3b4   : > { %v12479_v44 = vadd.f32 %v7587_v39, %v13895_v20  ;;  %v4116_v33 = vpop.f32.mrb[133].mxu1  ;;  %v4842_v17 = vpop.f32.mrb[197].mxu0 }
 0x3b5   : > { %v12482_v19 = vadd.f32 %v4116_v33, %v13896_v16  ;;  %v7588_v58 = vpop.f32.mrb[134].mxu1  ;;  %v12492_v39 = vpop.f32.mrb[198].mxu0 }
 0x3b6   : > { %v12485_v41 = vadd.f32 %v7588_v58, %v12282_v62  ;;  %v4119_v60 = vpop.f32.mrb[135].mxu1  ;;  %v4845_v20 = vpop.f32.mrb[199].mxu0 }
 0x3b7   : > { %v12490_v59 = vadd.f32 %v4119_v60, %v13898_v3 }
 0x3b8   : > { %13897 = vst [vmem:[#allocation38_spill] sm:$0xff] %v12485_v41  ;;  %5618 = vmatmul.mubr.bf16.gmra.mrb[240].mxu1 %v5260_v9 }
 0x3b9   : > { %13899 = vst [vmem:[#allocation35_spill] sm:$0xff] %v12490_v59  ;;  %5625 = vmatprep.mubr.bf16.mxu1 %v5264_v18  ;;  %v5263_v18 = vld [vmem:[#allocation3 + $0x180] sm:$0xff] }
 0x3ba   : > { %v5267_v59 = vld [vmem:[#allocation3 + $0x1a0] sm:$0xff] }
 0x3bb   : > { %v7591_v33 = vpop.f32.mrb[136].mxu1  ;;  %v12503_v17 = vpop.f32.mrb[200].mxu0 }
 0x3bc   : > { %v12495_v16 = vadd.f32 %v7591_v33, %v12298_v6  ;;  %v4132_v62 = vpop.f32.mrb[137].mxu1  ;;  %v4850_v20 = vpop.f32.mrb[201].mxu0 }
 0x3bd   : > { %v12498_v58 = vadd.f32 %v4132_v62, %v12293_v26  ;;  %v7592_v41 = vpop.f32.mrb[138].mxu1  ;;  %v12508_v6 = vpop.f32.mrb[202].mxu0 }
 0x3be   : > { %v12501_v60 = vadd.f32 %v7592_v41, %v12301_v53  ;;  %v4135_v3 = vpop.f32.mrb[139].mxu1  ;;  %v4853_v33 = vpop.f32.mrb[203].mxu0 }
 0x3bf   : > { %v12506_v9 = vadd.f32 %v4135_v3, %v12295_v23 }
 0x3c0   : > { %13900 = vst [vmem:[#allocation20_spill] sm:$0xff] %v12501_v60  ;;  %5626 = vmatmul.mubr.bf16.gmra.mrb[244].mxu1 %v5263_v18 }
 0x3c1   : > { %13901 = vst [vmem:[#allocation26_spill] sm:$0xff] %v12506_v9  ;;  %5633 = vmatprep.mubr.bf16.mxu1 %v5267_v59  ;;  %v5266_v59 = vld [vmem:[#allocation3 + $0x198] sm:$0xff] }
 0x3c2   : > { %v5270_v9 = vld [vmem:[#allocation3 + $0x1b8] sm:$0xff] }
 0x3c3   : > { %v7595_v26 = vpop.f32.mrb[140].mxu1  ;;  %v12519_v20 = vpop.f32.mrb[204].mxu0 }
 0x3c4   : > { %v12511_v62 = vadd.f32 %v7595_v26, %v12310_v52  ;;  %v4148_v53 = vpop.f32.mrb[141].mxu1  ;;  %v4858_v33 = vpop.f32.mrb[205].mxu0 }
 0x3c5   : > { %v12514_v41 = vadd.f32 %v4148_v53, %v12305_v56  ;;  %v7596_v60 = vpop.f32.mrb[142].mxu1  ;;  %v12524_v52 = vpop.f32.mrb[206].mxu0 }
 0x3c6   : > { %v12517_v23 = vadd.f32 %v7596_v60, %v12313_v36  ;;  %v4151_v3 = vpop.f32.mrb[143].mxu1  ;;  %v4861_v26 = vpop.f32.mrb[207].mxu0 }
 0x3c7   : > { %13902 = vst [vmem:[#allocation27_spill] sm:$0xff] %v12514_v41  ;;  %v12522_v18 = vadd.f32 %v4151_v3, %v12307_v21  ;;  %v5269_v26 = vld [vmem:[#allocation3 + $0x1b0] sm:$0xff] }
 0x3c8   : > { %13903 = vst [vmem:[#allocation42_spill] sm:$0xff] %v12517_v23  ;;  %5634 = vmatmul.mubr.bf16.gmra.mrb[248].mxu1 %v5266_v59 }
 0x3c9   : > { %13904 = vst [vmem:[#allocation43_spill] sm:$0xff] %v12522_v18  ;;  %5641 = vmatprep.mubr.bf16.mxu1 %v5270_v9 }
 0x3cb   : > { %v7615_v56 = vpop.f32.mrb[144].mxu1  ;;  %v12532_v33 = vpop.f32.mrb[208].mxu0 }
 0x3cc   : > { %v4994_v53 = vadd.f32 %v7615_v56, %v12330_v35  ;;  %v4985_v41 = vpop.f32.mrb[145].mxu1  ;;  %v4866_v18 = vpop.f32.mrb[209].mxu0 }
 0x3cd   : > { %v4986_v36 = vadd.f32 %v4985_v41, %v12315_v30  ;;  %v7616_v60 = vpop.f32.mrb[146].mxu1  ;;  %v5273_v30 = vld [vmem:[#allocation3 + $0x1d0] sm:$0xff]  ;;  %v12541_v41 = vpop.f32.mrb[210].mxu0 }
 0x3ce   : > { %v12529_v23 = vadd.f32 %v4994_v53, %v12321_v10  ;;  %v4997_v21 = vadd.f32 %v7616_v60, %v12335_v22  ;;  %v4988_v3 = vpop.f32.mrb[147].mxu1  ;;  %v4869_v22 = vpop.f32.mrb[211].mxu0 }
 0x3cf   : > { %v12535_v59 = vadd.f32 %v4986_v36, %v12325_v54  ;;  %v4989_v9 = vadd.f32 %v4988_v3, %v12317_v46 }
 0x3d0   : > { %v12539_v35 = vadd.f32 %v4997_v21, %v12328_v15  ;;  %5642 = vmatmul.mubr.bf16.gmra.mrb[252].mxu1 %v5269_v26 }
 0x3d1   : > { %v12544_v10 = vadd.f32 %v4989_v9, %v12333_v25  ;;  %5649 = vmatprep.mubr.bf16.mxu1 %v5273_v30  ;;  %v5272_v9 = vld [vmem:[#allocation3 + $0x1c8] sm:$0xff] }
 0x3d3   : > { %v7619_v56 = vpop.f32.mrb[148].mxu1  ;;  %v12552_v21 = vpop.f32.mrb[212].mxu0 }
 0x3d4   : > { %v5010_v54 = vadd.f32 %v7619_v56, %v12366_v5  ;;  %v5001_v53 = vpop.f32.mrb[149].mxu1  ;;  %v4874_v26 = vpop.f32.mrb[213].mxu0 }
 0x3d5   : > { %v5002_v46 = vadd.f32 %v5001_v53, %v12348_v48  ;;  %v7620_v36 = vpop.f32.mrb[150].mxu1  ;;  %v5276_v48 = vld [vmem:[#allocation3 + $0x1e8] sm:$0xff]  ;;  %v12561_v30 = vpop.f32.mrb[214].mxu0 }
 0x3d6   : > { %v12549_v18 = vadd.f32 %v5010_v54, %v12339_v47  ;;  %v5013_v15 = vadd.f32 %v7620_v36, %v12371_v13  ;;  %v5004_v60 = vpop.f32.mrb[151].mxu1  ;;  %v4877_v13 = vpop.f32.mrb[215].mxu0 }
 0x3d7   : > { %v12555_v25 = vadd.f32 %v5002_v46, %v12343_v55  ;;  %v5005_v3 = vadd.f32 %v5004_v60, %v12353_v2  ;;  %v5275_v60 = vld [vmem:[#allocation3 + $0x1e0] sm:$0xff] }
 0x3d8   : > { %v12559_v5 = vadd.f32 %v5013_v15, %v12346_v63  ;;  %5650 = vmatmul.mubr.bf16.gmra.mrb[0].mxu1 %v5272_v9 }
 0x3d9   : > { %v12564_v47 = vadd.f32 %v5005_v3, %v12351_v1  ;;  %5657 = vmatprep.mubr.bf16.mxu1 %v5276_v48 }
 0x3db   : > { %v7623_v22 = vpop.f32.mrb[152].mxu1  ;;  %v12572_v36 = vpop.f32.mrb[216].mxu0 }
 0x3dc   : > { %v5026_v55 = vadd.f32 %v7623_v22, %v12402_v34  ;;  %v5017_v56 = vpop.f32.mrb[153].mxu1  ;;  %v4882_v3 = vpop.f32.mrb[217].mxu0 }
 0x3dd   : > { %v5018_v2 = vadd.f32 %v5017_v56, %v12384_v24  ;;  %v7624_v54 = vpop.f32.mrb[154].mxu1  ;;  %v5279_v24 = vld [vmem:[#allocation3 + $0x200] sm:$0xff]  ;;  %v12581_v9 = vpop.f32.mrb[218].mxu0 }
 0x3de   : > { %v12569_v53 = vadd.f32 %v5026_v55, %v12357_v29  ;;  %v5029_v63 = vadd.f32 %v7624_v54, %v12407_v43  ;;  %v5020_v46 = vpop.f32.mrb[155].mxu1  ;;  %v4885_v43 = vpop.f32.mrb[219].mxu0  ;;  %v5278_v54 = vld [vmem:[#allocation3 + $0x1f8] sm:$0xff] }
 0x3df   : > { %v12575_v1 = vadd.f32 %v5018_v2, %v12361_v51  ;;  %v5021_v15 = vadd.f32 %v5020_v46, %v12389_v11 }
 0x3e0   : > { %v12579_v34 = vadd.f32 %v5029_v63, %v12364_v45  ;;  %5658 = vmatmul.mubr.bf16.gmra.mrb[4].mxu1 %v5275_v60 }
 0x3e1   : > { %v12584_v29 = vadd.f32 %v5021_v15, %v12369_v37  ;;  %5665 = vmatprep.mubr.bf16.mxu1 %v5279_v24 }
 0x3e3   : > { %v7627_v26 = vpop.f32.mrb[156].mxu1  ;;  %v12592_v56 = vpop.f32.mrb[220].mxu0 }
 0x3e4   : > { %v5042_v51 = vadd.f32 %v7627_v26, %v12438_v50  ;;  %v5033_v48 = vpop.f32.mrb[157].mxu1  ;;  %v4890_v63 = vpop.f32.mrb[221].mxu0 }
 0x3e5   : > { %v5034_v11 = vadd.f32 %v5033_v48, %v12420_v7  ;;  %v7628_v13 = vpop.f32.mrb[158].mxu1  ;;  %v5282_v7 = vld [vmem:[#allocation3 + $0x218] sm:$0xff]  ;;  %v12601_v46 = vpop.f32.mrb[222].mxu0  ;;  %v5281_v48 = vld [vmem:[#allocation3 + $0x210] sm:$0xff] }
 0x3e6   : > { %v12589_v22 = vadd.f32 %v5042_v51, %v12375_v4  ;;  %v5045_v45 = vadd.f32 %v7628_v13, %v12443_v27  ;;  %v5036_v55 = vpop.f32.mrb[159].mxu1  ;;  %v4893_v27 = vpop.f32.mrb[223].mxu0 }
 0x3e7   : > { %v12595_v37 = vadd.f32 %v5034_v11, %v12379_v8  ;;  %v5037_v2 = vadd.f32 %v5036_v55, %v12425_v32 }
 0x3e8   : > { %v12599_v50 = vadd.f32 %v5045_v45, %v12382_v57  ;;  %5666 = vmatmul.mubr.bf16.gmra.mrb[8].mxu1 %v5278_v54  ;;  %v13905_v54 = vld [vmem:[#allocation31_spill] sm:$0xff] }
 0x3e9   : > { %v12604_v4 = vadd.f32 %v5037_v2, %v12387_v31  ;;  %5673 = vmatprep.mubr.bf16.mxu1 %v5282_v7 }
 0x3eb   : > { %v7631_v15 = vpop.f32.mrb[160].mxu1  ;;  %v12612_v26 = vpop.f32.mrb[224].mxu0 }
 0x3ec   : > { %v5058_v8 = vadd.f32 %v7631_v15, %v12471_v40  ;;  %v5049_v60 = vpop.f32.mrb[161].mxu1  ;;  %v4898_v11 = vpop.f32.mrb[225].mxu0  ;;  %v13906_v15 = vld [vmem:[#allocation21_spill] sm:$0xff] }
 0x3ed   : > { %v5050_v32 = vadd.f32 %v5049_v60, %v12455_v42  ;;  %v7632_v3 = vpop.f32.mrb[162].mxu1  ;;  %v5285_v42 = vld [vmem:[#allocation3 + $0x230] sm:$0xff]  ;;  %v12621_v13 = vpop.f32.mrb[226].mxu0  ;;  %v5284_v60 = vld [vmem:[#allocation3 + $0x228] sm:$0xff] }
 0x3ee   : > { %v12609_v24 = vadd.f32 %v5058_v8, %v12393_v49  ;;  %v5061_v57 = vadd.f32 %v7632_v3, %v12476_v0  ;;  %v5052_v43 = vpop.f32.mrb[163].mxu1  ;;  %v4901_v0 = vpop.f32.mrb[227].mxu0 }
 0x3ef   : > { %v12615_v31 = vadd.f32 %v5050_v32, %v12397_v28  ;;  %v5053_v51 = vadd.f32 %v5052_v43, %v12460_v14  ;;  %v13908_v43 = vld [vmem:[#allocation24_spill] sm:$0xff] }
 0x3f0   : > { %v12619_v40 = vadd.f32 %v5061_v57, %v12400_v61  ;;  %5674 = vmatmul.mubr.bf16.gmra.mrb[12].mxu1 %v5281_v48 }
 0x3f1   : > { %v12624_v49 = vadd.f32 %v5053_v51, %v12405_v38  ;;  %5681 = vmatprep.mubr.bf16.mxu1 %v5285_v42 }
 0x3f3   : > { %v7635_v45 = vpop.f32.mrb[164].mxu1  ;;  %v12632_v27 = vpop.f32.mrb[228].mxu0 }
 0x3f4   : > { %v5074_v28 = vadd.f32 %v7635_v45, %v12503_v17  ;;  %v5065_v55 = vpop.f32.mrb[165].mxu1  ;;  %v4906_v32 = vpop.f32.mrb[229].mxu0  ;;  %v13907_v17 = vld [vmem:[#allocation22_spill] sm:$0xff]  ;;  %v13909_v45 = vld [vmem:[#allocation23_spill] sm:$0xff] }
 0x3f5   : > { %v5066_v14 = vadd.f32 %v5065_v55, %v12487_v12  ;;  %v7636_v2 = vpop.f32.mrb[166].mxu1  ;;  %v5288_v12 = vld [vmem:[#allocation3 + $0x248] sm:$0xff]  ;;  %v12641_v57 = vpop.f32.mrb[230].mxu0 }
 0x3f6   : > { %v12629_v63 = vadd.f32 %v5074_v28, %v13905_v54  ;;  %v5077_v61 = vadd.f32 %v7636_v2, %v12508_v6  ;;  %v5068_v7 = vpop.f32.mrb[167].mxu1  ;;  %v4909_v6 = vpop.f32.mrb[231].mxu0  ;;  %v13910_v54 = vld [vmem:[#allocation41_spill] sm:$0xff] }
 0x3f7   : > { %v12635_v38 = vadd.f32 %v5066_v14, %v13906_v15  ;;  %v5069_v8 = vadd.f32 %v5068_v7, %v12492_v39  ;;  %v13913_v32 = vld [vmem:[#allocation29_spill] sm:$0xff] }
 0x3f8   : > { %v12639_v3 = vadd.f32 %v5077_v61, %v13907_v17  ;;  %5682 = vmatmul.mubr.bf16.gmra.mrb[16].mxu1 %v5284_v60 }
 0x3f9   : > { %v12644_v51 = vadd.f32 %v5069_v8, %v13908_v43  ;;  %5689 = vmatprep.mubr.bf16.mxu1 %v5288_v12  ;;  %v13911_v8 = vld [vmem:[#allocation33_spill] sm:$0xff]  ;;  %v8140_v12 = vld [vmem:[#allocation3 + $0x260] sm:$0xff] }
 0x3fb   : > { %v7639_v48 = vpop.f32.mrb[168].mxu1  ;;  %v4912_v2 = vpop.f32.mrb[232].mxu0 }
 0x3fc   : > { %v5090_v11 = vadd.f32 %v7639_v48, %v12532_v33  ;;  %v5081_v42 = vpop.f32.mrb[169].mxu1  ;;  %v4914_v15 = vpop.f32.mrb[233].mxu0  ;;  %v13912_v33 = vld [vmem:[#allocation19_spill] sm:$0xff] }
 0x3fd   : > { %v5082_v39 = vadd.f32 %v5081_v42, %v12519_v20  ;;  %v7640_v0 = vpop.f32.mrb[170].mxu1  ;;  %v4915_v20 = vpop.f32.mrb[234].mxu0  ;;  %v13914_v42 = vld [vmem:[#allocation28_spill] sm:$0xff]  ;;  %v5290_v15 = vld [vmem:[#allocation3 + $0x258] sm:$0xff] }
 0x3fe   : > { %v12649_v28 = vadd.f32 %v5090_v11, %v13909_v45  ;;  %v5093_v55 = vadd.f32 %v7640_v0, %v12541_v41  ;;  %v5084_v14 = vpop.f32.mrb[171].mxu1  ;;  %v4917_v41 = vpop.f32.mrb[235].mxu0 }
 0x3ff   : > { %v12653_v61 = vadd.f32 %v5082_v39, %v13910_v54  ;;  %v5085_v7 = vadd.f32 %v5084_v14, %v12524_v52  ;;  %v13915_v14 = vld [vmem:[#allocation32_spill] sm:$0xff]  ;;  %v13918_v41 = vld [vmem:[#allocation30_spill] sm:$0xff] }
 0x400   : > { %v12657_v60 = vadd.f32 %v5093_v55, %v13911_v8  ;;  %5690 = vmatmul.mubr.bf16.gmra.mrb[20].mxu1 %v13912_v33  ;;  %v13916_v33 = vld [vmem:[#allocation39_spill] sm:$0xff] }
 0x401   : > { %v12661_v17 = vadd.f32 %v5085_v7, %v13913_v32  ;;  %5697 = vmatprep.mubr.bf16.mxu1 %v8140_v12  ;;  %v13917_v32 = vld [vmem:[#allocation34_spill] sm:$0xff] }
 0x403   : > { %v7643_v43 = vpop.f32.mrb[172].mxu1  ;;  %v4920_v55 = vpop.f32.mrb[236].mxu0 }
 0x404   : > { %v5106_v6 = vadd.f32 %v7643_v43, %v12572_v36  ;;  %v5097_v48 = vpop.f32.mrb[173].mxu1  ;;  %v4922_v8 = vpop.f32.mrb[237].mxu0 }
 0x405   : > { %v5098_v11 = vadd.f32 %v5097_v48, %v12552_v21  ;;  %v7644_v52 = vpop.f32.mrb[174].mxu1  ;;  %v4923_v21 = vpop.f32.mrb[238].mxu0 }
 0x406   : > { %v12666_v39 = vadd.f32 %v5106_v6, %v13914_v42  ;;  %v5109_v0 = vadd.f32 %v7644_v52, %v12581_v9  ;;  %v5100_v45 = vpop.f32.mrb[175].mxu1  ;;  %v4925_v9 = vpop.f32.mrb[239].mxu0  ;;  %v13919_v52 = vld [vmem:[#allocation40_spill] sm:$0xff] }
 0x407   : > { %v12670_v54 = vadd.f32 %v5098_v11, %v13915_v14  ;;  %v5101_v7 = vadd.f32 %v5100_v45, %v12561_v30  ;;  %v13922_v9 = vld [vmem:[#allocation25_spill] sm:$0xff] }
 0x408   : > { %v12674_v36 = vadd.f32 %v5109_v0, %v13916_v33  ;;  %5698 = vmatmul.mubr.bf16.gmra.mrb[24].mxu1 %v5290_v15  ;;  %v13920_v15 = vld [vmem:[#allocation37_spill] sm:$0xff]  ;;  %v5293_v33 = vld [vmem:[#allocation3 + $0x270] sm:$0xff] }
 0x409   : > { %v12677_v12 = vadd.f32 %v5101_v7, %v13917_v32  ;;  %5705 = vmatprep.mubr.bf16.mxu1 %v13918_v41  ;;  %v13921_v41 = vld [vmem:[#allocation36_spill] sm:$0xff] }
 0x40b   : > { %v7647_v43 = vpop.f32.mrb[176].mxu1  ;;  %v4928_v14 = vpop.f32.mrb[240].mxu0 }
 0x40c   : > { %v5122_v6 = vadd.f32 %v7647_v43, %v12612_v26  ;;  %v5113_v48 = vpop.f32.mrb[177].mxu1  ;;  %v4930_v32 = vpop.f32.mrb[241].mxu0 }
 0x40d   : > { %v5114_v11 = vadd.f32 %v5113_v48, %v12592_v56  ;;  %v7648_v30 = vpop.f32.mrb[178].mxu1  ;;  %v4931_v56 = vpop.f32.mrb[242].mxu0 }
 0x40e   : > { %v12683_v42 = vadd.f32 %v5122_v6, %v13919_v52  ;;  %v5125_v0 = vadd.f32 %v7648_v30, %v12621_v13  ;;  %v5116_v45 = vpop.f32.mrb[179].mxu1  ;;  %v4933_v6 = vpop.f32.mrb[243].mxu0 }
 0x40f   : > { %v12687_v7 = vadd.f32 %v5114_v11, %v13920_v15  ;;  %v5117_v8 = vadd.f32 %v5116_v45, %v12601_v46  ;;  %v13925_v6 = vld [vmem:[#allocation35_spill] sm:$0xff] }
 0x410   : > { %v12691_v26 = vadd.f32 %v5125_v0, %v13921_v41  ;;  %5706 = vmatmul.mubr.bf16.gmra.mrb[28].mxu1 %v5293_v33  ;;  %v13924_v41 = vld [vmem:[#allocation38_spill] sm:$0xff] }
 0x411   : > { %v12694_v43 = vadd.f32 %v5117_v8, %v13922_v9 }
 0x413   : > { %v7651_v48 = vpop.f32.mrb[180].mxu1  ;;  %v4936_v32 = vpop.f32.mrb[244].mxu0 }
 0x414   : > { %v5138_v13 = vadd.f32 %v7651_v48, %v4912_v2  ;;  %v5129_v30 = vpop.f32.mrb[181].mxu1  ;;  %v4938_v8 = vpop.f32.mrb[245].mxu0 }
 0x415   : > { %v5130_v52 = vadd.f32 %v5129_v30, %v12632_v27  ;;  %v7652_v11 = vpop.f32.mrb[182].mxu1  ;;  %v4939_v2 = vpop.f32.mrb[246].mxu0 }
 0x416   : > { %v12698_v15 = vadd.f32 %v5138_v13, %v12479_v44  ;;  %v5141_v46 = vadd.f32 %v7652_v11, %v4915_v20  ;;  %v5132_v45 = vpop.f32.mrb[183].mxu1  ;;  %v4941_v27 = vpop.f32.mrb[247].mxu0 }
 0x417   : > { %v12701_v0 = vadd.f32 %v5130_v52, %v12482_v19  ;;  %v5133_v33 = vadd.f32 %v5132_v45, %v12641_v57  ;;  %v13928_v27 = vld [vmem:[#allocation26_spill] sm:$0xff] }
 0x418   : > { %13923 = vst [vmem:[#allocation31_spill] sm:$0xff] %v12698_v15  ;;  %v12705_v9 = vadd.f32 %v5141_v46, %v13924_v41  ;;  %v13926_v41 = vld [vmem:[#allocation20_spill] sm:$0xff] }
 0x419   : > { %v12708_v48 = vadd.f32 %v5133_v33, %v13925_v6 }
 0x41b   : > { %v7655_v30 = vpop.f32.mrb[184].mxu1  ;;  %v4944_v57 = vpop.f32.mrb[248].mxu0 }
 0x41c   : > { %v5154_v44 = vadd.f32 %v7655_v30, %v4928_v14  ;;  %v5145_v13 = vpop.f32.mrb[185].mxu1  ;;  %v4946_v8 = vpop.f32.mrb[249].mxu0 }
 0x41d   : > { %v5146_v20 = vadd.f32 %v5145_v13, %v4920_v55  ;;  %v7656_v11 = vpop.f32.mrb[186].mxu1  ;;  %v4947_v6 = vpop.f32.mrb[250].mxu0 }
 0x41e   : > { %v12711_v15 = vadd.f32 %v5154_v44, %v12495_v16  ;;  %v5157_v19 = vadd.f32 %v7656_v11, %v4931_v56  ;;  %v5148_v52 = vpop.f32.mrb[187].mxu1  ;;  %v4949_v55 = vpop.f32.mrb[251].mxu0 }
 0x41f   : > { %v12714_v45 = vadd.f32 %v5146_v20, %v12498_v58  ;;  %v5149_v46 = vadd.f32 %v5148_v52, %v4923_v21  ;;  %v13930_v52 = vld [vmem:[#allocation27_spill] sm:$0xff] }
 0x420   : > { %v12717_v33 = vadd.f32 %v5157_v19, %v13926_v41  ;;  %v13934_v55 = vld [vmem:[#allocation43_spill] sm:$0xff] }
 0x421   : > { %v12720_v14 = vadd.f32 %v5149_v46, %v13928_v27 }
 0x422   : > { %13927 = vst [vmem:[#allocation21_spill] sm:$0xff] %v12717_v33  ;;  %v13932_v33 = vld [vmem:[#allocation42_spill] sm:$0xff] }
 0x423   : > { %v7659_v30 = vpop.f32.mrb[188].mxu1  ;;  %v7679_v21 = vpop.f32.mrb[252].mxu0 }
 0x424   : > { %v5170_v13 = vadd.f32 %v7659_v30, %v4944_v57  ;;  %v5161_v16 = vpop.f32.mrb[189].mxu1  ;;  %v5748_v41 = vpop.f32.mrb[253].mxu0 }
 0x425   : > { %v5162_v44 = vadd.f32 %v5161_v16, %v4936_v32  ;;  %v7660_v56 = vpop.f32.mrb[190].mxu1  ;;  %v7680_v27 = vpop.f32.mrb[254].mxu0 }
 0x426   : > { %v12723_v11 = vadd.f32 %v5170_v13, %v12511_v62  ;;  %v5173_v58 = vadd.f32 %v7660_v56, %v4947_v6  ;;  %v5164_v20 = vpop.f32.mrb[191].mxu1  ;;  %v5751_v32 = vpop.f32.mrb[255].mxu0  ;;  %v12737_v6 = vld [vmem:[%s13036_s4] ss:$0 sm:$0xff] }
 0x427   : > { %v12726_v8 = vadd.f32 %v5162_v44, %v13930_v52  ;;  %v5165_v19 = vadd.f32 %v5164_v20, %v4939_v2 }
 0x428   : > { %13929 = vst [vmem:[#allocation22_spill] sm:$0xff] %v12723_v11  ;;  %v12729_v46 = vadd.f32 %v5173_v58, %v13932_v33 }
 0x429   : > { %13931 = vst [vmem:[#allocation24_spill] sm:$0xff] %v12726_v8  ;;  %v12732_v57 = vadd.f32 %v5165_v19, %v13934_v55 }
 0x42a   : > { %13933 = vst [vmem:[#allocation23_spill] sm:$0xff] %v12729_v46 }
 0x42b   : > { %13935 = vst [vmem:[#allocation41_spill] sm:$0xff] %v12732_v57  ;;  %v5523_v30 = vpop.f32.mrb[192].mxu1  ;;  %v7683_v56 = vpop.f32.mrb[0].mxu0 }
 0x42c   : > { %v5749_v62 = vadd.f32 %v5748_v41, %v5523_v30  ;;  %v5525_v13 = vpop.f32.mrb[193].mxu1  ;;  %v5764_v58 = vpop.f32.mrb[1].mxu0 }
 0x42d   : > { %v5526_v16 = vpop.f32.mrb[194].mxu1  ;;  %v7684_v19 = vpop.f32.mrb[2].mxu0 }
 0x42e   : > { %v5939_v2 = vadd.f32 %v5749_v62, %v12535_v59  ;;  %v5752_v44 = vadd.f32 %v5751_v32, %v5526_v16  ;;  %v5528_v33 = vpop.f32.mrb[195].mxu1  ;;  %v5767_v41 = vpop.f32.mrb[3].mxu0 }
 0x430   : > { %v5994_v20 = vadd.f32 %v12737_v6, %v5939_v2  ;;  %v5940_v52 = vadd.f32 %v5752_v44, %v12544_v10 }
 0x432   : > { %v5995_v55 = vadd.f32 %v12737_v6, %v5940_v52  ;;  %v6042_v13 = vmax.f32 %v5994_v20, 0.0 }
 0x433   : > { %v5531_v30 = vpop.f32.mrb[196].mxu1  ;;  %v12745_v33 = vpop.f32.mrb[4].mxu0 }
 0x434   : > { %v6043_v46 = vmax.f32 %v5995_v55, 0.0  ;;  %v5757_v11 = vadd.f32 %v7679_v21, %v5531_v30  ;;  %v5533_v57 = vpop.f32.mrb[197].mxu1  ;;  %v5780_v2 = vpop.f32.mrb[5].mxu0 }
 0x435   : > { %v5534_v8 = vpop.f32.mrb[198].mxu1  ;;  %v12752_v21 = vpop.f32.mrb[6].mxu0 }
 0x436   : > { %v7016_v59 = vpack.c.bf16 %v6043_v46, %v6042_v13  ;;  %v5941_v32 = vadd.f32 %v5757_v11, %v12529_v23  ;;  %v5760_v62 = vadd.f32 %v7680_v27, %v5534_v8  ;;  %v5536_v16 = vpop.f32.mrb[199].mxu1  ;;  %v5783_v57 = vpop.f32.mrb[7].mxu0 }
 0x438   : > { %7017 = vst [vmem:[%s12747_s17] sm:$0xff] %v7016_v59   ;;  %v5996_v10 = vadd.f32 %v12737_v6, %v5941_v32  ;;  %v5942_v44 = vadd.f32 %v5760_v62, %v12539_v35 }
 0x43a   : > { %v5997_v46 = vadd.f32 %v12737_v6, %v5942_v44  ;;  %v6044_v11 = vmax.f32 %v5996_v10, 0.0 }
 0x43b   : > { %v5539_v23 = vpop.f32.mrb[200].mxu1  ;;  %v12756_v32 = vpop.f32.mrb[8].mxu0 }
 0x43c   : > { %v6045_v8 = vmax.f32 %v5997_v46, 0.0  ;;  %v5765_v27 = vadd.f32 %v5764_v58, %v5539_v23  ;;  %v5541_v20 = vpop.f32.mrb[201].mxu1  ;;  %v12758_v35 = vpop.f32.mrb[9].mxu0 }
 0x43d   : > { %v5542_v52 = vpop.f32.mrb[202].mxu1  ;;  %v12763_v10 = vpop.f32.mrb[10].mxu0 }
 0x43e   : > { %v7021_v55 = vpack.c.bf16 %v6045_v8, %v6044_v11  ;;  %v5943_v30 = vadd.f32 %v5765_v27, %v12555_v25  ;;  %v5768_v13 = vadd.f32 %v5767_v41, %v5542_v52  ;;  %v5544_v59 = vpop.f32.mrb[203].mxu1  ;;  %v12765_v58 = vpop.f32.mrb[11].mxu0 }
 0x440   : > { %7159 = vst [vmem:[%s12747_s17 + $0x8] sm:$0xff] %v7021_v55   ;;  %v5998_v62 = vadd.f32 %v12737_v6, %v5943_v30  ;;  %v5944_v16 = vadd.f32 %v5768_v13, %v12564_v47 }
 0x442   : > { %v5999_v44 = vadd.f32 %v12737_v6, %v5944_v16  ;;  %v6046_v25 = vmax.f32 %v5998_v62, 0.0 }
 0x443   : > { %v5547_v46 = vpop.f32.mrb[204].mxu1  ;;  %v12769_v30 = vpop.f32.mrb[12].mxu0 }
 0x444   : > { %v6047_v41 = vmax.f32 %v5999_v44, 0.0  ;;  %v5773_v23 = vadd.f32 %v7683_v56, %v5547_v46  ;;  %v5549_v11 = vpop.f32.mrb[205].mxu1  ;;  %v12771_v47 = vpop.f32.mrb[13].mxu0 }
 0x445   : > { %v5550_v8 = vpop.f32.mrb[206].mxu1  ;;  %v12776_v62 = vpop.f32.mrb[14].mxu0 }
 0x446   : > { %v7026_v27 = vpack.c.bf16 %v6047_v41, %v6046_v25  ;;  %v5945_v20 = vadd.f32 %v5773_v23, %v12549_v18  ;;  %v5776_v52 = vadd.f32 %v7684_v19, %v5550_v8  ;;  %v5552_v55 = vpop.f32.mrb[207].mxu1  ;;  %v12778_v56 = vpop.f32.mrb[15].mxu0 }
 0x448   : > { %7160 = vst [vmem:[%s12747_s17 + $0x10] sm:$0xff] %v7026_v27   ;;  %v6000_v13 = vadd.f32 %v12737_v6, %v5945_v20  ;;  %v5946_v59 = vadd.f32 %v5776_v52, %v12559_v5 }
 0x44a   : > { %v6001_v16 = vadd.f32 %v12737_v6, %v5946_v59  ;;  %v6048_v18 = vmax.f32 %v6000_v13, 0.0 }
 0x44b   : > { %v5555_v44 = vpop.f32.mrb[208].mxu1  ;;  %v12782_v20 = vpop.f32.mrb[16].mxu0 }
 0x44c   : > { %v6049_v19 = vmax.f32 %v6001_v16, 0.0  ;;  %v5781_v46 = vadd.f32 %v5780_v2, %v5555_v44  ;;  %v5557_v25 = vpop.f32.mrb[209].mxu1  ;;  %v12784_v5 = vpop.f32.mrb[17].mxu0 }
 0x44d   : > { %v5558_v41 = vpop.f32.mrb[210].mxu1  ;;  %v12789_v13 = vpop.f32.mrb[18].mxu0 }
 0x44e   : > { %v7031_v23 = vpack.c.bf16 %v6049_v19, %v6048_v18  ;;  %v5947_v11 = vadd.f32 %v5781_v46, %v12575_v1  ;;  %v5784_v8 = vadd.f32 %v5783_v57, %v5558_v41  ;;  %v5560_v27 = vpop.f32.mrb[211].mxu1  ;;  %v12791_v2 = vpop.f32.mrb[19].mxu0 }
 0x450   : > { %7161 = vst [vmem:[%s12747_s17 + $0x18] sm:$0xff] %v7031_v23   ;;  %v6002_v52 = vadd.f32 %v12737_v6, %v5947_v11  ;;  %v5948_v55 = vadd.f32 %v5784_v8, %v12584_v29 }
 0x452   : > { %v6003_v59 = vadd.f32 %v12737_v6, %v5948_v55  ;;  %v6050_v1 = vmax.f32 %v6002_v52, 0.0 }
 0x453   : > { %v5563_v16 = vpop.f32.mrb[212].mxu1  ;;  %v12797_v23 = vpop.f32.mrb[20].mxu0 }
 0x454   : > { %v6051_v57 = vmax.f32 %v6003_v59, 0.0  ;;  %v5789_v44 = vadd.f32 %v12745_v33, %v5563_v16  ;;  %v5565_v18 = vpop.f32.mrb[213].mxu1  ;;  %v12799_v11 = vpop.f32.mrb[21].mxu0 }
 0x455   : > { %v5566_v19 = vpop.f32.mrb[214].mxu1  ;;  %v12804_v52 = vpop.f32.mrb[22].mxu0 }
 0x456   : > { %v7036_v46 = vpack.c.bf16 %v6051_v57, %v6050_v1  ;;  %v5949_v25 = vadd.f32 %v5789_v44, %v12569_v53  ;;  %v5792_v41 = vadd.f32 %v12752_v21, %v5566_v19  ;;  %v5568_v29 = vpop.f32.mrb[215].mxu1  ;;  %v12806_v33 = vpop.f32.mrb[23].mxu0 }
 0x458   : > { %7162 = vst [vmem:[%s12747_s17 + $0x20] sm:$0xff] %v7036_v46   ;;  %v6004_v8 = vadd.f32 %v12737_v6, %v5949_v25  ;;  %v5950_v27 = vadd.f32 %v5792_v41, %v12579_v34 }
 0x45a   : > { %v6005_v55 = vadd.f32 %v12737_v6, %v5950_v27  ;;  %v6052_v59 = vmax.f32 %v6004_v8, 0.0 }
 0x45b   : > { %v5571_v53 = vpop.f32.mrb[216].mxu1  ;;  %v12812_v46 = vpop.f32.mrb[24].mxu0 }
 0x45c   : > { %v6053_v21 = vmax.f32 %v6005_v55, 0.0  ;;  %v5797_v16 = vadd.f32 %v12758_v35, %v5571_v53  ;;  %v5573_v1 = vpop.f32.mrb[217].mxu1  ;;  %v12814_v25 = vpop.f32.mrb[25].mxu0 }
 0x45d   : > { %v5574_v57 = vpop.f32.mrb[218].mxu1  ;;  %v12819_v8 = vpop.f32.mrb[26].mxu0 }
 0x45e   : > { %v7041_v44 = vpack.c.bf16 %v6053_v21, %v6052_v59  ;;  %v5951_v18 = vadd.f32 %v5797_v16, %v12595_v37  ;;  %v5800_v19 = vadd.f32 %v12765_v58, %v5574_v57  ;;  %v5576_v34 = vpop.f32.mrb[219].mxu1  ;;  %v12821_v35 = vpop.f32.mrb[27].mxu0 }
 0x460   : > { %7163 = vst [vmem:[%s12747_s17 + $0x28] sm:$0xff] %v7041_v44   ;;  %v6006_v41 = vadd.f32 %v12737_v6, %v5951_v18  ;;  %v5952_v29 = vadd.f32 %v5800_v19, %v12604_v4 }
 0x462   : > { %v6007_v27 = vadd.f32 %v12737_v6, %v5952_v29  ;;  %v6054_v55 = vmax.f32 %v6006_v41, 0.0 }
 0x463   : > { %v5579_v37 = vpop.f32.mrb[220].mxu1  ;;  %v12827_v44 = vpop.f32.mrb[28].mxu0 }
 0x464   : > { %v6055_v58 = vmax.f32 %v6007_v27, 0.0  ;;  %v5805_v53 = vadd.f32 %v12756_v32, %v5579_v37  ;;  %v5581_v59 = vpop.f32.mrb[221].mxu1  ;;  %v12829_v18 = vpop.f32.mrb[29].mxu0 }
 0x465   : > { %v5582_v21 = vpop.f32.mrb[222].mxu1  ;;  %v12834_v41 = vpop.f32.mrb[30].mxu0 }
 0x466   : > { %v7046_v16 = vpack.c.bf16 %v6055_v58, %v6054_v55  ;;  %v5953_v1 = vadd.f32 %v5805_v53, %v12589_v22  ;;  %v5808_v57 = vadd.f32 %v12763_v10, %v5582_v21  ;;  %v5584_v4 = vpop.f32.mrb[223].mxu1  ;;  %v12836_v32 = vpop.f32.mrb[31].mxu0 }
 0x468   : > { %7164 = vst [vmem:[%s12747_s17 + $0x30] sm:$0xff] %v7046_v16   ;;  %v6008_v19 = vadd.f32 %v12737_v6, %v5953_v1  ;;  %v5954_v34 = vadd.f32 %v5808_v57, %v12599_v50 }
 0x46a   : > { %v6009_v29 = vadd.f32 %v12737_v6, %v5954_v34  ;;  %v6056_v27 = vmax.f32 %v6008_v19, 0.0 }
 0x46b   : > { %v5587_v22 = vpop.f32.mrb[224].mxu1  ;;  %v12842_v16 = vpop.f32.mrb[32].mxu0 }
 0x46c   : > { %v6057_v10 = vmax.f32 %v6009_v29, 0.0  ;;  %v5813_v37 = vadd.f32 %v12771_v47, %v5587_v22  ;;  %v5589_v55 = vpop.f32.mrb[225].mxu1  ;;  %v12844_v1 = vpop.f32.mrb[33].mxu0 }
 0x46d   : > { %v5590_v58 = vpop.f32.mrb[226].mxu1  ;;  %v12849_v19 = vpop.f32.mrb[34].mxu0 }
 0x46e   : > { %v7051_v53 = vpack.c.bf16 %v6057_v10, %v6056_v27  ;;  %v5955_v59 = vadd.f32 %v5813_v37, %v12615_v31  ;;  %v5816_v21 = vadd.f32 %v12778_v56, %v5590_v58  ;;  %v5592_v50 = vpop.f32.mrb[227].mxu1  ;;  %v12851_v47 = vpop.f32.mrb[35].mxu0 }
 0x470   : > { %7165 = vst [vmem:[%s12747_s17 + $0x38] sm:$0xff] %v7051_v53   ;;  %v6010_v57 = vadd.f32 %v12737_v6, %v5955_v59  ;;  %v5956_v4 = vadd.f32 %v5816_v21, %v12624_v49 }
 0x472   : > { %v6011_v34 = vadd.f32 %v12737_v6, %v5956_v4  ;;  %v6058_v29 = vmax.f32 %v6010_v57, 0.0 }
 0x473   : > { %v5595_v31 = vpop.f32.mrb[228].mxu1  ;;  %v12857_v53 = vpop.f32.mrb[36].mxu0 }
 0x474   : > { %v6059_v56 = vmax.f32 %v6011_v34, 0.0  ;;  %v5821_v22 = vadd.f32 %v12769_v30, %v5595_v31  ;;  %v5597_v27 = vpop.f32.mrb[229].mxu1  ;;  %v12859_v59 = vpop.f32.mrb[37].mxu0 }
 0x475   : > { %v5598_v10 = vpop.f32.mrb[230].mxu1  ;;  %v12864_v57 = vpop.f32.mrb[38].mxu0 }
 0x476   : > { %v7056_v37 = vpack.c.bf16 %v6059_v56, %v6058_v29  ;;  %v5957_v55 = vadd.f32 %v5821_v22, %v12609_v24  ;;  %v5824_v58 = vadd.f32 %v12776_v62, %v5598_v10  ;;  %v5600_v49 = vpop.f32.mrb[231].mxu1  ;;  %v12866_v30 = vpop.f32.mrb[39].mxu0 }
 0x478   : > { %7166 = vst [vmem:[%s12747_s17 + $0x40] sm:$0xff] %v7056_v37   ;;  %v6012_v21 = vadd.f32 %v12737_v6, %v5957_v55  ;;  %v5958_v50 = vadd.f32 %v5824_v58, %v12619_v40 }
 0x47a   : > { %v6013_v4 = vadd.f32 %v12737_v6, %v5958_v50  ;;  %v6060_v34 = vmax.f32 %v6012_v21, 0.0 }
 0x47b   : > { %v5603_v24 = vpop.f32.mrb[232].mxu1  ;;  %v12872_v37 = vpop.f32.mrb[40].mxu0 }
 0x47c   : > { %v6061_v62 = vmax.f32 %v6013_v4, 0.0  ;;  %v5829_v31 = vadd.f32 %v12784_v5, %v5603_v24  ;;  %v5605_v29 = vpop.f32.mrb[233].mxu1  ;;  %v12874_v55 = vpop.f32.mrb[41].mxu0 }
 0x47d   : > { %v5606_v56 = vpop.f32.mrb[234].mxu1  ;;  %v12879_v21 = vpop.f32.mrb[42].mxu0 }
 0x47e   : > { %v7061_v22 = vpack.c.bf16 %v6061_v62, %v6060_v34  ;;  %v5959_v27 = vadd.f32 %v5829_v31, %v12635_v38  ;;  %v5832_v10 = vadd.f32 %v12791_v2, %v5606_v56  ;;  %v5608_v40 = vpop.f32.mrb[235].mxu1  ;;  %v12881_v5 = vpop.f32.mrb[43].mxu0 }
 0x480   : > { %7167 = vst [vmem:[%s12747_s17 + $0x48] sm:$0xff] %v7061_v22   ;;  %v6014_v58 = vadd.f32 %v12737_v6, %v5959_v27  ;;  %v5960_v49 = vadd.f32 %v5832_v10, %v12644_v51 }
 0x482   : > { %v6015_v50 = vadd.f32 %v12737_v6, %v5960_v49  ;;  %v6062_v4 = vmax.f32 %v6014_v58, 0.0 }
 0x483   : > { %v5611_v38 = vpop.f32.mrb[236].mxu1 }
 0x484   : > { %v6063_v2 = vmax.f32 %v6015_v50, 0.0  ;;  %v5837_v24 = vadd.f32 %v12782_v20, %v5611_v38  ;;  %v5613_v34 = vpop.f32.mrb[237].mxu1 }
 0x485   : > { %v5614_v62 = vpop.f32.mrb[238].mxu1 }
 0x486   : > { %v7066_v31 = vpack.c.bf16 %v6063_v2, %v6062_v4  ;;  %v5961_v29 = vadd.f32 %v5837_v24, %v12629_v63  ;;  %v5840_v56 = vadd.f32 %v12789_v13, %v5614_v62  ;;  %v5616_v51 = vpop.f32.mrb[239].mxu1 }
 0x488   : > { %7168 = vst [vmem:[%s12747_s17 + $0x50] sm:$0xff] %v7066_v31   ;;  %v6016_v22 = vadd.f32 %v12737_v6, %v5961_v29  ;;  %v5962_v27 = vadd.f32 %v5840_v56, %v12639_v3 }
 0x48a   : > { %v6017_v10 = vadd.f32 %v12737_v6, %v5962_v27  ;;  %v6064_v58 = vmax.f32 %v6016_v22, 0.0 }
 0x48b   : > { %v5619_v40 = vpop.f32.mrb[240].mxu1 }
 0x48c   : > { %v6065_v49 = vmax.f32 %v6017_v10, 0.0  ;;  %v5845_v20 = vadd.f32 %v12799_v11, %v5619_v40  ;;  %v5621_v50 = vpop.f32.mrb[241].mxu1 }
 0x48d   : > { %v5622_v38 = vpop.f32.mrb[242].mxu1 }
 0x48e   : > { %v7071_v4 = vpack.c.bf16 %v6065_v49, %v6064_v58  ;;  %v5963_v63 = vadd.f32 %v5845_v20, %v12653_v61  ;;  %v5848_v13 = vadd.f32 %v12806_v33, %v5622_v38  ;;  %v5624_v2 = vpop.f32.mrb[243].mxu1 }
 0x490   : > { %7169 = vst [vmem:[%s12747_s17 + $0x58] sm:$0xff] %v7071_v4   ;;  %v6018_v24 = vadd.f32 %v12737_v6, %v5963_v63  ;;  %v5964_v3 = vadd.f32 %v5848_v13, %v12661_v17 }
 0x492   : > { %v6019_v34 = vadd.f32 %v12737_v6, %v5964_v3  ;;  %v6066_v31 = vmax.f32 %v6018_v24, 0.0 }
 0x493   : > { %v5627_v62 = vpop.f32.mrb[244].mxu1 }
 0x494   : > { %v6067_v29 = vmax.f32 %v6019_v34, 0.0  ;;  %v5853_v11 = vadd.f32 %v12797_v23, %v5627_v62  ;;  %v5629_v56 = vpop.f32.mrb[245].mxu1 }
 0x495   : > { %v5630_v51 = vpop.f32.mrb[246].mxu1 }
 0x496   : > { %v7076_v22 = vpack.c.bf16 %v6067_v29, %v6066_v31  ;;  %v5965_v61 = vadd.f32 %v5853_v11, %v12649_v28  ;;  %v5856_v33 = vadd.f32 %v12804_v52, %v5630_v51  ;;  %v5632_v27 = vpop.f32.mrb[247].mxu1 }
 0x498   : > { %7170 = vst [vmem:[%s12747_s17 + $0x60] sm:$0xff] %v7076_v22   ;;  %v6020_v10 = vadd.f32 %v12737_v6, %v5965_v61  ;;  %v5966_v17 = vadd.f32 %v5856_v33, %v12657_v60 }
 0x49a   : > { %v6021_v40 = vadd.f32 %v12737_v6, %v5966_v17  ;;  %v6068_v49 = vmax.f32 %v6020_v10, 0.0 }
 0x49b   : > { %v5635_v58 = vpop.f32.mrb[248].mxu1 }
 0x49c   : > { %v6069_v20 = vmax.f32 %v6021_v40, 0.0  ;;  %v5861_v23 = vadd.f32 %v12814_v25, %v5635_v58  ;;  %v5637_v50 = vpop.f32.mrb[249].mxu1 }
 0x49d   : > { %v5638_v38 = vpop.f32.mrb[250].mxu1 }
 0x49e   : > { %v7081_v4 = vpack.c.bf16 %v6069_v20, %v6068_v49  ;;  %v5967_v28 = vadd.f32 %v5861_v23, %v12670_v54  ;;  %v5864_v52 = vadd.f32 %v12821_v35, %v5638_v38  ;;  %v5640_v63 = vpop.f32.mrb[251].mxu1 }
 0x4a0   : > { %7171 = vst [vmem:[%s12747_s17 + $0x68] sm:$0xff] %v7081_v4   ;;  %v6022_v13 = vadd.f32 %v12737_v6, %v5967_v28  ;;  %v5968_v60 = vadd.f32 %v5864_v52, %v12677_v12 }
 0x4a2   : > { %v6023_v2 = vadd.f32 %v12737_v6, %v5968_v60  ;;  %v6070_v3 = vmax.f32 %v6022_v13, 0.0 }
 0x4a3   : > { %v5643_v24 = vpop.f32.mrb[252].mxu1 }
 0x4a4   : > { %v6071_v34 = vmax.f32 %v6023_v2, 0.0  ;;  %v5869_v25 = vadd.f32 %v12812_v46, %v5643_v24  ;;  %v5645_v62 = vpop.f32.mrb[253].mxu1 }
 0x4a5   : > { %v5646_v31 = vpop.f32.mrb[254].mxu1 }
 0x4a6   : > { %v7086_v29 = vpack.c.bf16 %v6071_v34, %v6070_v3  ;;  %v5969_v54 = vadd.f32 %v5869_v25, %v12666_v39  ;;  %v5872_v35 = vadd.f32 %v12819_v8, %v5646_v31  ;;  %v5648_v11 = vpop.f32.mrb[255].mxu1 }
 0x4a8   : > { %7172 = vst [vmem:[%s12747_s17 + $0x70] sm:$0xff] %v7086_v29   ;;  %v6024_v56 = vadd.f32 %v12737_v6, %v5969_v54  ;;  %v5970_v12 = vadd.f32 %v5872_v35, %v12674_v36 }
 0x4aa   : > { %v6025_v51 = vadd.f32 %v12737_v6, %v5970_v12  ;;  %v6072_v61 = vmax.f32 %v6024_v56, 0.0 }
 0x4ab   : > { %v5651_v22 = vpop.f32.mrb[0].mxu1 }
 0x4ac   : > { %v6073_v33 = vmax.f32 %v6025_v51, 0.0  ;;  %v5877_v46 = vadd.f32 %v12829_v18, %v5651_v22  ;;  %v5653_v27 = vpop.f32.mrb[1].mxu1 }
 0x4ad   : > { %v5654_v10 = vpop.f32.mrb[2].mxu1 }
 0x4ae   : > { %v7091_v17 = vpack.c.bf16 %v6073_v33, %v6072_v61  ;;  %v5971_v39 = vadd.f32 %v5877_v46, %v12687_v7  ;;  %v5880_v8 = vadd.f32 %v12836_v32, %v5654_v10  ;;  %v5656_v40 = vpop.f32.mrb[3].mxu1 }
 0x4b0   : > { %7173 = vst [vmem:[%s12747_s17 + $0x78] sm:$0xff] %v7091_v17   ;;  %v6026_v58 = vadd.f32 %v12737_v6, %v5971_v39  ;;  %v5972_v36 = vadd.f32 %v5880_v8, %v12694_v43 }
 0x4b2   : > { %v6027_v49 = vadd.f32 %v12737_v6, %v5972_v36  ;;  %v6074_v23 = vmax.f32 %v6026_v58, 0.0 }
 0x4b3   : > { %v5659_v20 = vpop.f32.mrb[4].mxu1 }
 0x4b4   : > { %v6075_v50 = vmax.f32 %v6027_v49, 0.0  ;;  %v5885_v18 = vadd.f32 %v12827_v44, %v5659_v20  ;;  %v5661_v38 = vpop.f32.mrb[5].mxu1 }
 0x4b5   : > { %v5662_v4 = vpop.f32.mrb[6].mxu1 }
 0x4b6   : > { %v7096_v28 = vpack.c.bf16 %v6075_v50, %v6074_v23  ;;  %v5973_v7 = vadd.f32 %v5885_v18, %v12683_v42  ;;  %v5888_v32 = vadd.f32 %v12834_v41, %v5662_v4  ;;  %v5664_v52 = vpop.f32.mrb[7].mxu1 }
 0x4b8   : > { %7174 = vst [vmem:[%s12747_s17 + $0x80] sm:$0xff] %v7096_v28   ;;  %v6028_v63 = vadd.f32 %v12737_v6, %v5973_v7  ;;  %v5974_v43 = vadd.f32 %v5888_v32, %v12691_v26 }
 0x4ba   : > { %v6029_v13 = vadd.f32 %v12737_v6, %v5974_v43  ;;  %v6076_v2 = vmax.f32 %v6028_v63, 0.0 }
 0x4bb   : > { %v5667_v60 = vpop.f32.mrb[8].mxu1 }
 0x4bc   : > { %v6077_v24 = vmax.f32 %v6029_v13, 0.0  ;;  %v5893_v44 = vadd.f32 %v12844_v1, %v5667_v60  ;;  %v5669_v3 = vpop.f32.mrb[9].mxu1 }
 0x4bd   : > { %v5670_v34 = vpop.f32.mrb[10].mxu1 }
 0x4be   : > { %v7101_v25 = vpack.c.bf16 %v6077_v24, %v6076_v2  ;;  %v5975_v42 = vadd.f32 %v5893_v44, %v12701_v0  ;;  %v5896_v41 = vadd.f32 %v12851_v47, %v5670_v34  ;;  %v5672_v62 = vpop.f32.mrb[11].mxu1  ;;  %v13936_v0 = vld [vmem:[#allocation31_spill] sm:$0xff] }
 0x4c0   : > { %7175 = vst [vmem:[%s12747_s17 + $0x88] sm:$0xff] %v7101_v25   ;;  %v6030_v31 = vadd.f32 %v12737_v6, %v5975_v42  ;;  %v5976_v26 = vadd.f32 %v5896_v41, %v12708_v48  ;;  %v13939_v42 = vld [vmem:[#allocation41_spill] sm:$0xff] }
 0x4c2   : > { %v6031_v29 = vadd.f32 %v12737_v6, %v5976_v26  ;;  %v6078_v35 = vmax.f32 %v6030_v31, 0.0 }
 0x4c3   : > { %v5675_v54 = vpop.f32.mrb[12].mxu1 }
 0x4c4   : > { %v6079_v11 = vmax.f32 %v6031_v29, 0.0  ;;  %v5901_v1 = vadd.f32 %v12842_v16, %v5675_v54  ;;  %v5677_v56 = vpop.f32.mrb[13].mxu1 }
 0x4c5   : > { %v5678_v12 = vpop.f32.mrb[14].mxu1 }
 0x4c6   : > { %v7106_v51 = vpack.c.bf16 %v6079_v11, %v6078_v35  ;;  %v5977_v22 = vadd.f32 %v5901_v1, %v13936_v0  ;;  %v5904_v47 = vadd.f32 %v12849_v19, %v5678_v12  ;;  %v5680_v61 = vpop.f32.mrb[15].mxu1  ;;  %v13940_v11 = vld [vmem:[#allocation22_spill] sm:$0xff]  ;;  %v13941_v0 = vld [vmem:[#allocation23_spill] sm:$0xff] }
 0x4c8   : > { %7176 = vst [vmem:[%s12747_s17 + $0x90] sm:$0xff] %v7106_v51   ;;  %v6032_v33 = vadd.f32 %v12737_v6, %v5977_v22  ;;  %v5978_v48 = vadd.f32 %v5904_v47, %v12705_v9 }
 0x4ca   : > { %v6033_v46 = vadd.f32 %v12737_v6, %v5978_v48  ;;  %v6080_v10 = vmax.f32 %v6032_v33, 0.0 }
 0x4cb   : > { %v5683_v27 = vpop.f32.mrb[16].mxu1 }
 0x4cc   : > { %v6081_v17 = vmax.f32 %v6033_v46, 0.0  ;;  %v5909_v16 = vadd.f32 %v12859_v59, %v5683_v27  ;;  %v5685_v39 = vpop.f32.mrb[17].mxu1 }
 0x4cd   : > { %v5686_v8 = vpop.f32.mrb[18].mxu1 }
 0x4ce   : > { %v7111_v40 = vpack.c.bf16 %v6081_v17, %v6080_v10  ;;  %v5979_v58 = vadd.f32 %v5909_v16, %v12714_v45  ;;  %v5912_v19 = vadd.f32 %v12866_v30, %v5686_v8  ;;  %v5688_v36 = vpop.f32.mrb[19].mxu1 }
 0x4d0   : > { %7177 = vst [vmem:[%s12747_s17 + $0x98] sm:$0xff] %v7111_v40   ;;  %v6034_v49 = vadd.f32 %v12737_v6, %v5979_v58  ;;  %v5980_v9 = vadd.f32 %v5912_v19, %v12720_v14  ;;  %v13937_v14 = vld [vmem:[#allocation21_spill] sm:$0xff] }
 0x4d2   : > { %v6035_v20 = vadd.f32 %v12737_v6, %v5980_v9  ;;  %v6082_v50 = vmax.f32 %v6034_v49, 0.0 }
 0x4d3   : > { %v5691_v23 = vpop.f32.mrb[20].mxu1 }
 0x4d4   : > { %v6083_v18 = vmax.f32 %v6035_v20, 0.0  ;;  %v5917_v59 = vadd.f32 %v12857_v53, %v5691_v23  ;;  %v5693_v38 = vpop.f32.mrb[21].mxu1 }
 0x4d5   : > { %v5694_v4 = vpop.f32.mrb[22].mxu1 }
 0x4d6   : > { %v7116_v28 = vpack.c.bf16 %v6083_v18, %v6082_v50  ;;  %v5981_v45 = vadd.f32 %v5917_v59, %v12711_v15  ;;  %v5920_v30 = vadd.f32 %v12864_v57, %v5694_v4  ;;  %v5696_v7 = vpop.f32.mrb[23].mxu1  ;;  %v13938_v15 = vld [vmem:[#allocation24_spill] sm:$0xff] }
 0x4d8   : > { %7178 = vst [vmem:[%s12747_s17 + $0xa0] sm:$0xff] %v7116_v28   ;;  %v6036_v32 = vadd.f32 %v12737_v6, %v5981_v45  ;;  %v5982_v52 = vadd.f32 %v5920_v30, %v13937_v14 }
 0x4da   : > { %v6037_v63 = vadd.f32 %v12737_v6, %v5982_v52  ;;  %v6084_v13 = vmax.f32 %v6036_v32, 0.0 }
 0x4db   : > { %v5699_v43 = vpop.f32.mrb[24].mxu1 }
 0x4dc   : > { %v6085_v60 = vmax.f32 %v6037_v63, 0.0  ;;  %v5925_v53 = vadd.f32 %v12874_v55, %v5699_v43  ;;  %v5701_v2 = vpop.f32.mrb[25].mxu1 }
 0x4dd   : > { %v5702_v24 = vpop.f32.mrb[26].mxu1 }
 0x4de   : > { %v7121_v44 = vpack.c.bf16 %v6085_v60, %v6084_v13  ;;  %v5983_v3 = vadd.f32 %v5925_v53, %v13938_v15  ;;  %v5928_v57 = vadd.f32 %v12881_v5, %v5702_v24  ;;  %v5704_v34 = vpop.f32.mrb[27].mxu1 }
 0x4e0   : > { %7179 = vst [vmem:[%s12747_s17 + $0xa8] sm:$0xff] %v7121_v44   ;;  %v6038_v25 = vadd.f32 %v12737_v6, %v5983_v3  ;;  %v5984_v41 = vadd.f32 %v5928_v57, %v13939_v42 }
 0x4e2   : > { %v6039_v62 = vadd.f32 %v12737_v6, %v5984_v41  ;;  %v6086_v55 = vmax.f32 %v6038_v25, 0.0 }
 0x4e3   : > { %v5707_v31 = vpop.f32.mrb[28].mxu1 }
 0x4e4   : > { %v6087_v26 = vmax.f32 %v6039_v62, 0.0  ;;  %v5933_v29 = vadd.f32 %v12872_v37, %v5707_v31  ;;  %v5709_v54 = vpop.f32.mrb[29].mxu1 }
 0x4e5   : > { %v5710_v35 = vpop.f32.mrb[30].mxu1 }
 0x4e6   : > { %v7126_v5 = vpack.c.bf16 %v6087_v26, %v6086_v55  ;;  %v5985_v1 = vadd.f32 %v5933_v29, %v13940_v11  ;;  %v5936_v56 = vadd.f32 %v12879_v21, %v5710_v35  ;;  %v5712_v12 = vpop.f32.mrb[31].mxu1 }
 0x4e8   : > { %7180 = vst [vmem:[%s12747_s17 + $0xb0] sm:$0xff] %v7126_v5   ;;  %v6040_v51 = vadd.f32 %v12737_v6, %v5985_v1  ;;  %v5986_v22 = vadd.f32 %v5936_v56, %v13941_v0 }
 0x4ea   : > { %v6041_v47 = vadd.f32 %v12737_v6, %v5986_v22  ;;  %v6088_v37 = vmax.f32 %v6040_v51, 0.0 }
 0x4ec   : > { %v6089_v61 = vmax.f32 %v6041_v47, 0.0 }
 0x4ee   : > { %v7131_v33 = vpack.c.bf16 %v6089_v61, %v6088_v37 }
 0x4f0   : > { %7181 = vst [vmem:[%s12747_s17 + $0xb8] sm:$0xff] %v7131_v33  }
 0x4f1   : > { %8340 = shalt.err (!%p8337_p0)
}
 0x4f2   : > { %s8341_s14 = scalar_lea.hbm %s12980_s7, 3072  ;;  %s8345_s16 = scalar_lea.hbm %s13942_s29, 6144 }
 0x4f3   : > { %p8342_p4 = scmp.ne.s32.totalorder %s12980_s7, %s8341_s14  ;;  %p8346_p12 = scmp.lt.u32.totalorder %s12980_s7, %s13942_s29 }
 0x4f4   : > { %p8347_p1 = scmp.lt.u32.totalorder %s8345_s16, %s8341_s14  ;;  %p8349_p13 = scmp.lt.u32.totalorder %s8341_s14, %s12980_s7 }
 0x4f5   : > { %p8343_p2 = pnand %p8342_p4, %p8626_p10 }
 0x4f6   : > { %p8348_p11 = por %p8347_p1, %p8346_p12 }
 0x4f7   : > { %p8344_p8 = pneg %p8343_p2 }
 0x4f8   : > { %p8350_p6 = por %p8349_p13, %p8348_p11 }
 0x4fa   : > { %p8351_p3 = pnand %p8350_p6, %p8344_p8 }
 0x4fc   : > { %8354 = shalt.err (!%p8351_p3)
}
 0x4fd   : > { %s8429_s19 = smov 64   ;;  %s8430_s10 = smov 4  }
 0x4fe   : > { %7852 = dma.vmem_to_hbm [thread:$0]  (%p8626_p10), %s12982_s20, 3072, %s12980_s7, %s6331_s9, %s8429_s19, %s8429_s19, %s8430_s10  }
 0x4ff PF: > { %s13943_s13 = sld [smem:[#allocation17_spill]]  ;;  %s13944_s18 = sld [smem:[#allocation18_spill]] }
 0x500   : > { %p13946_p7 = scmp.ge.s32.totalorder %s8417_s26, 2 }
 0x505   : > { %s6361_s24 = sand.u32 1, %s13943_s13   ;;  %p13945_p5 = scmp.ne.s32.totalorder %s13944_s18, 0 }
 0x506   : > { %s6362_s27 = scalar_lea.sflag [#allocation6], %s6361_s24 }
 0x507   : > { %p7869_p9 = pnand %p13946_p7, %p13945_p5 }
 0x509   : > { %8392 = dma.done.wait (!%p7869_p9), %s6362_s27, 3072  }
 0x50a   : > { %8394 = vsyncadd (!%p7869_p9), %s6362_s27, 4294964224  ;;  %s24_s26 = sadd.s32 1, %s8417_s26   ;;  %s13947_s21 = smov %s8401_s22 }
 0x50b   : > { %p21_p0 = scmp.ge.s32.totalorder %s24_s26, 4   ;;  %s13948_s22 = smov %s8405_s23 }
 0x50c   : > { %s13949_s23 = smov %s8642_s30  ;;  %s13950_s24 = smov %s8413_s25 }
 0x50d   : > { %s13951_s25 = smov %s13953_s12  ;;  %23 = sbr.rel (!%p21_p0) target bundleno = 10 (0xa), region = 103 }
 0x514   :  { %6367 = vsyncpa [#allocation5], 1 }
 0x515   :  { %6369 = vsyncpa [#allocation5 + $0x1], 1 }
 0x516   :  { %6370 = vsyncpa [#allocation8], 1 }
 0x517   :  { %6371 = vsyncpa [#allocation11], 1 }
 0x518   :  { %6372 = vsyncpa [#allocation6], 1 }
 0x519   :  { %6374 = vsyncpa [#allocation6 + $0x1], 1 }

</bundles_post_ra>
